<compile_context>
chip_gen: v5e
topology: v5e:2x2
jax: 0.10.0
libtpu: 0.0.40
codegen_flags: <defaults>
</compile_context>

<pallas_src>
from functools import partial

import numpy as np
import jax
import jax.numpy as jnp
from jax.experimental import pallas as pl
from jax.experimental.pallas import tpu as pltpu


X_SHIFT = 0.004807692307692308
X_INV_SCALE = 1.0 / 0.011519762343566905
BN_EPS = 1e-5


# ----------------------------------------------------------------------------
# In-kernel helpers (traced inside the Pallas kernel body).
# ----------------------------------------------------------------------------

def _lane_shift(x, s):
    """y[..., i] = x[..., i + s]; positions shifted in from outside are zero."""
    if s == 0:
        return x
    c, n = x.shape
    if s > 0:
        pad = jnp.zeros((c, s), x.dtype)
        return jnp.concatenate([x[:, s:], pad], axis=1)
    pad = jnp.zeros((c, -s), x.dtype)
    return jnp.concatenate([pad, x[:, :n + s]], axis=1)


def _make_tap_masks(B, H, W):
    """f32 multiplicative boundary masks [1, B*H*W] for every 3x3 tap (dh, dw)."""
    n = B * H * W
    assert (H & (H - 1)) == 0 and (W & (W - 1)) == 0, "H, W must be powers of 2"
    lane = jax.lax.broadcasted_iota(jnp.int32, (1, n), 1)
    w_pos = lane & (W - 1)                         # w index within a row
    h_pos = (lane >> (W.bit_length() - 1)) & (H - 1)  # h index within an image

    sel_h = {-1: (h_pos >= 1).astype(jnp.float32),
             1: (h_pos <= H - 2).astype(jnp.float32)}
    sel_w = {-1: (w_pos >= 1).astype(jnp.float32),
             1: (w_pos <= W - 2).astype(jnp.float32)}

    masks = {}
    for dh in (-1, 0, 1):
        for dw in (-1, 0, 1):
            mh, mw = sel_h.get(dh), sel_w.get(dw)
            if mh is None and mw is None:
                masks[(dh, dw)] = None
            elif mh is None:
                masks[(dh, dw)] = mw
            elif mw is None:
                masks[(dh, dw)] = mh
            else:
                masks[(dh, dw)] = mh * mw
    return masks


def _tap(act, dh, dw, W, masks):
    """act[c, (b,h,w)] -> act[c, (b, h+dh, w+dw)] with zero padding."""
    t = _lane_shift(act, dh * W + dw)
    m = masks[(dh, dw)]
    return t if m is None else t * m


def _conv3x3(act, w_ref, W, masks):
    """3x3 conv (padding=1, no bias) as 9 accumulated MXU matmuls.

    act: [Cin, N]; w_ref: [9, Cout, Cin] with tap index (dh+1)*3 + (dw+1).
    """
    out = None
    t_idx = 0
    for dh in (-1, 0, 1):
        for dw in (-1, 0, 1):
            tap = _tap(act, dh, dw, W, masks)
            contrib = jnp.dot(w_ref[t_idx], tap,
                              preferred_element_type=jnp.float32)
            out = contrib if out is None else out + contrib
            t_idx += 1
    return out


def _blur3x3(act, W, masks):
    """Depthwise [1,2,1]x[1,2,1]/16 blur (zero padded) as separable shifted adds."""
    horiz = (_tap(act, 0, -1, W, masks) + 2.0 * act
             + _tap(act, 0, 1, W, masks)) * 0.25
    return (_tap(horiz, -1, 0, W, masks) + 2.0 * horiz
            + _tap(horiz, 1, 0, W, masks)) * 0.25


def _batch_norm(y, gamma, beta):
    """Training-mode BatchNorm: per-channel stats over all B*H*W columns."""
    mean = jnp.mean(y, axis=1, keepdims=True)
    var = jnp.mean(jnp.square(y - mean), axis=1, keepdims=True)
    return (y - mean) * (gamma * jax.lax.rsqrt(var + BN_EPS)) + beta


# ----------------------------------------------------------------------------
# The fused kernel.
# ----------------------------------------------------------------------------

def _stylegan_kernel(x_ref, fg_ref,
                     b1c1_ref, b1v1_ref, b1c2_ref, b1v2_ref, pool1_ref,
                     b2c1_ref, b2v1_ref, b2c2_ref, b2v2_ref, pool2_ref,
                     b3c1_ref, b3v1_ref, b3dw_ref,
                     fc2w_ref, tail_ref,
                     o_ref, *, B, H, W):
    # Input standardization + from_grayscale (1x1 conv + ReLU; the module's
    # second ReLU is idempotent).
    x = (x_ref[...] - X_SHIFT) * X_INV_SCALE                  # [1, B*H*W]
    fg = fg_ref[...]                                          # [cs, 2]
    act = jnp.maximum(fg[:, 0:1] * x + fg[:, 1:2], 0.0)       # [cs, B*H*W]

    def conv_block(act, h, w, c1_ref, v1_ref, c2_ref, v2_ref, pool_ref):
        masks = _make_tap_masks(B, h, w)
        v1 = v1_ref[...]                                      # [cin, 3]
        y = _conv3x3(act, c1_ref, w, masks) + v1[:, 0:1]      # conv_1 + bias_1
        y = _batch_norm(y, v1[:, 1:2], v1[:, 2:3])            # bn1
        y = jnp.where(y >= 0.0, y, 0.2 * y)                   # leaky_relu(0.2)
        y = _blur3x3(y, w, masks)                             # blur
        y = _conv3x3(y, c2_ref, w, masks)                     # conv_2
        y = jnp.dot(y, pool_ref[...],                         # 2x2 avg pool
                    preferred_element_type=jnp.float32)
        v2 = v2_ref[...]                                      # [cout, 3]
        y = y + v2[:, 0:1]                                    # + bias_2
        y = _batch_norm(y, v2[:, 1:2], v2[:, 2:3])            # bn2
        return jnp.maximum(y, 0.0)                            # ReLU

    act = conv_block(act, H, W,
                     b1c1_ref, b1v1_ref, b1c2_ref, b1v2_ref, pool1_ref)
    act = conv_block(act, H // 2, W // 2,
                     b2c1_ref, b2v1_ref, b2c2_ref, b2v2_ref, pool2_ref)

    # Last block: conv_1 + bias_1, bn1, leaky ReLU, dense on the (c, h, w)
    # flattened activation (flatten order folded into the weight layout), ReLU.
    h3, w3 = H // 4, W // 4
    hw3 = h3 * w3
    masks3 = _make_tap_masks(B, h3, w3)
    v1 = b3v1_ref[...]                                        # [c3, 4]
    y = _conv3x3(act, b3c1_ref, w3, masks3) + v1[:, 0:1]
    y = _batch_norm(y, v1[:, 1:2], v1[:, 2:3])
    y = jnp.where(y >= 0.0, y, 0.2 * y)                       # [c3, B*hw3]

    wd = b3dw_ref[...]                                        # [out, c3, hw3]
    cols = []
    for b in range(B):
        sb = y[:, b * hw3:(b + 1) * hw3]                      # [c3, hw3]
        frob = jnp.sum(jnp.sum(wd * sb[None, :, :], axis=2),
                       axis=1, keepdims=True)                 # [out, 1]
        cols.append(frob)
    z = jnp.concatenate(cols, axis=1) + v1[:, 3:4]            # + dense bias
    z = jnp.maximum(z, 0.0)                                   # [out, B]

    # fc2 + y_std / y_mean de-normalization (output kept as [3, B]).
    tail = tail_ref[...]                                      # [3, 3]
    out = jnp.dot(fc2w_ref[...], z, preferred_element_type=jnp.float32)
    out = out + tail[:, 0:1]
    o_ref[...] = out * tail[:, 1:2] + tail[:, 2:3]


# ----------------------------------------------------------------------------
# Host-side constants, parameters and the forward wrapper.
# ----------------------------------------------------------------------------

def _pool_matrix(B, H, W):
    """[B*H*W, B*(H/2)*(W/2)] matrix implementing 2x2 average pooling."""
    h2, w2 = H // 2, W // 2
    P = np.zeros((B * H * W, B * h2 * w2), np.float32)
    for b in range(B):
        for h in range(H):
            for w in range(W):
                P[b * H * W + h * W + w,
                  b * h2 * w2 + (h // 2) * w2 + (w // 2)] = 0.25
    return jnp.asarray(P)


def _winit(key, shape, fan_in):
    return (jax.random.normal(key, shape, dtype=jnp.float32)
            / np.sqrt(float(fan_in))).astype(jnp.float32)


def init_params(key, channels_start):
    """Deterministic synthetic parameters (bias_1/bias_2 zero, BN gamma=1 /
    beta=0 like the PyTorch module's init; conv/dense weights ~ N(0, 1/fan_in))."""
    cs = channels_start
    c1, c2, c3 = cs, 2 * cs, 4 * cs
    ks = jax.random.split(key, 11)

    def conv_w(k, cout, cin):
        # Tap-major [9, cout, cin] layout; tap index = kh*3 + kw.
        return _winit(k, (9, cout, cin), cin * 9)

    def chan_vec(c, extra=None):
        cols = [jnp.zeros((c, 1), jnp.float32),   # bias_1 / bias_2 (zero init)
                jnp.ones((c, 1), jnp.float32),    # BN gamma
                jnp.zeros((c, 1), jnp.float32)]   # BN beta
        if extra is not None:
            cols.append(extra)
        return jnp.concatenate(cols, axis=1)

    p = {}
    # from_grayscale: Conv2d(1, cs, 1) weight / bias packed as [cs, 2].
    p["fg"] = jnp.concatenate([_winit(ks[0], (cs, 1), 1),
                               _winit(ks[1], (cs, 1), 1) * 0.1], axis=1)

    p["b1_c1"] = conv_w(ks[2], c1, c1)
    p["b1_v1"] = chan_vec(c1)
    p["b1_c2"] = conv_w(ks[3], c2, c1)
    p["b1_v2"] = chan_vec(c2)

    p["b2_c1"] = conv_w(ks[4], c2, c2)
    p["b2_v1"] = chan_vec(c2)
    p["b2_c2"] = conv_w(ks[5], c3, c2)
    p["b2_v2"] = chan_vec(c3)

    dense_in = c3 * 4 * 4
    p["b3_c1"] = conv_w(ks[6], c3, c3)
    # Last block has inputs == outputs, so the dense bias rides in column 3.
    p["b3_v1"] = chan_vec(c3, extra=_winit(ks[7], (c3, 1), dense_in))
    # Dense weight with torch's (c, h, w) flatten order folded into its layout.
    p["b3_dw"] = _winit(ks[8], (c3, c3, 4 * 4), dense_in)

    p["fc2_w"] = _winit(ks[9], (3, c3), c3)
    fc2_b = _winit(ks[10], (3, 1), c3)
    y_std = jnp.asarray([[1.71550884], [4.66580994], [1.02815766]], jnp.float32)
    y_mean = jnp.asarray([[34.8605725], [-0.784542022], [0.000552984166]],
                         jnp.float32)
    p["tail"] = jnp.concatenate([fc2_b, y_std, y_mean], axis=1)     # [3, 3]
    return p


def stylegan_inspired_net(params, x):
    """x: grayscale input [B, H, W] float32 (H = W = 16 for this architecture)."""
    B, H, W = x.shape
    x2 = x.reshape(1, B * H * W).astype(jnp.float32)   # (b, h, w) lane order
    pool1 = _pool_matrix(B, H, W)
    pool2 = _pool_matrix(B, H // 2, W // 2)

    inputs = [x2, params["fg"],
              params["b1_c1"], params["b1_v1"], params["b1_c2"],
              params["b1_v2"], pool1,
              params["b2_c1"], params["b2_v1"], params["b2_c2"],
              params["b2_v2"], pool2,
              params["b3_c1"], params["b3_v1"], params["b3_dw"],
              params["fc2_w"], params["tail"]]

    out = pl.pallas_call(
        partial(_stylegan_kernel, B=B, H=H, W=W),
        out_shape=jax.ShapeDtypeStruct((3, B), jnp.float32),
        grid=(1,),
        in_specs=[pl.BlockSpec(a.shape, lambda i, nd=a.ndim: (0,) * nd)
                  for a in inputs],
        out_specs=pl.BlockSpec((3, B), lambda i: (0, 0)),
        compiler_params=pltpu.CompilerParams(
            dimension_semantics=("arbitrary",)),
    )(*inputs)

    # [3, B] -> [B, 3]; .squeeze() matches the module (no-op for B > 1).
    return jnp.squeeze(out.T)


# ----------------------------------------------------------------------------

if __name__ == "__main__":
    key = jax.random.PRNGKey(0)
    k_params, k_input = jax.random.split(key)

    CHANNELS_START = 4           # cfg.MODEL.CHANNELS_START
    B, H, W = 2, 16, 16          # two /2 downscales -> 4x4 before the dense head

    params = init_params(k_params, CHANNELS_START)
    x = jax.random.uniform(k_input, (B, H, W), dtype=jnp.float32)

    fwd = jax.jit(stylegan_inspired_net)
    y = jax.block_until_ready(fwd(params, x))
    assert y.shape == (B, 3), y.shape
    assert bool(jnp.all(jnp.isfinite(y)))
    print("KERNEL_OK")
</pallas_src>

<mosaic_0001>
module attributes {stable_mosaic.version = 11 : i64} {
  func.func @_stylegan_kernel(%arg0: i32, %arg1: memref<1x512xf32, #tpu.memory_space<vmem>>, %arg2: memref<4x2xf32, #tpu.memory_space<vmem>>, %arg3: memref<9x4x4xf32, #tpu.memory_space<vmem>>, %arg4: memref<4x3xf32, #tpu.memory_space<vmem>>, %arg5: memref<9x8x4xf32, #tpu.memory_space<vmem>>, %arg6: memref<8x3xf32, #tpu.memory_space<vmem>>, %arg7: memref<512x128xf32, #tpu.memory_space<vmem>>, %arg8: memref<9x8x8xf32, #tpu.memory_space<vmem>>, %arg9: memref<8x3xf32, #tpu.memory_space<vmem>>, %arg10: memref<9x16x8xf32, #tpu.memory_space<vmem>>, %arg11: memref<16x3xf32, #tpu.memory_space<vmem>>, %arg12: memref<128x32xf32, #tpu.memory_space<vmem>>, %arg13: memref<9x16x16xf32, #tpu.memory_space<vmem>>, %arg14: memref<16x4xf32, #tpu.memory_space<vmem>>, %arg15: memref<16x16x16xf32, #tpu.memory_space<vmem>>, %arg16: memref<3x16xf32, #tpu.memory_space<vmem>>, %arg17: memref<3x3xf32, #tpu.memory_space<vmem>>, %arg18: memref<3x2xf32, #tpu.memory_space<vmem>>) attributes {dimension_semantics = [#tpu.dimension_semantics<arbitrary>], iteration_bounds = array<i64: 1>, scalar_prefetch = 0 : i64, scratch_operands = 0 : i64, tpu.core_type = #tpu.core_type<tc>, window_params = [{pipeline_mode = #tpu.pipeline_mode<synchronous>, transform_indices = @transform_0, window_bounds = array<i64: 1, 512>}, {pipeline_mode = #tpu.pipeline_mode<synchronous>, transform_indices = @transform_1, window_bounds = array<i64: 4, 2>}, {pipeline_mode = #tpu.pipeline_mode<synchronous>, transform_indices = @transform_2, window_bounds = array<i64: 9, 4, 4>}, {pipeline_mode = #tpu.pipeline_mode<synchronous>, transform_indices = @transform_3, window_bounds = array<i64: 4, 3>}, {pipeline_mode = #tpu.pipeline_mode<synchronous>, transform_indices = @transform_4, window_bounds = array<i64: 9, 8, 4>}, {pipeline_mode = #tpu.pipeline_mode<synchronous>, transform_indices = @transform_5, window_bounds = array<i64: 8, 3>}, {pipeline_mode = #tpu.pipeline_mode<synchronous>, transform_indices = @transform_6, window_bounds = array<i64: 512, 128>}, {pipeline_mode = #tpu.pipeline_mode<synchronous>, transform_indices = @transform_7, window_bounds = array<i64: 9, 8, 8>}, {pipeline_mode = #tpu.pipeline_mode<synchronous>, transform_indices = @transform_8, window_bounds = array<i64: 8, 3>}, {pipeline_mode = #tpu.pipeline_mode<synchronous>, transform_indices = @transform_9, window_bounds = array<i64: 9, 16, 8>}, {pipeline_mode = #tpu.pipeline_mode<synchronous>, transform_indices = @transform_10, window_bounds = array<i64: 16, 3>}, {pipeline_mode = #tpu.pipeline_mode<synchronous>, transform_indices = @transform_11, window_bounds = array<i64: 128, 32>}, {pipeline_mode = #tpu.pipeline_mode<synchronous>, transform_indices = @transform_12, window_bounds = array<i64: 9, 16, 16>}, {pipeline_mode = #tpu.pipeline_mode<synchronous>, transform_indices = @transform_13, window_bounds = array<i64: 16, 4>}, {pipeline_mode = #tpu.pipeline_mode<synchronous>, transform_indices = @transform_14, window_bounds = array<i64: 16, 16, 16>}, {pipeline_mode = #tpu.pipeline_mode<synchronous>, transform_indices = @transform_15, window_bounds = array<i64: 3, 16>}, {pipeline_mode = #tpu.pipeline_mode<synchronous>, transform_indices = @transform_16, window_bounds = array<i64: 3, 3>}, {pipeline_mode = #tpu.pipeline_mode<synchronous>, transform_indices = @transform_17, window_bounds = array<i64: 3, 2>}]} {
    %c0 = arith.constant 0 : index
    %c0_0 = arith.constant 0 : index
    %0 = vector.load %arg1[%c0, %c0_0] : memref<1x512xf32, #tpu.memory_space<vmem>>, vector<1x512xf32>
    %cst = arith.constant 0.00480769249 : f32
    %1 = vector.broadcast %cst : f32 to vector<1x512xf32>
    %2 = arith.subf %0, %1 : vector<1x512xf32>
    %cst_1 = arith.constant 86.8073502 : f32
    %3 = vector.broadcast %cst_1 : f32 to vector<1x512xf32>
    %4 = arith.mulf %2, %3 : vector<1x512xf32>
    %c0_2 = arith.constant 0 : index
    %c0_3 = arith.constant 0 : index
    %5 = vector.load %arg2[%c0_2, %c0_3] : memref<4x2xf32, #tpu.memory_space<vmem>>, vector<4x2xf32>
    %6 = vector.extract_strided_slice %5 {offsets = [0, 0], sizes = [4, 1], strides = [1, 1]} : vector<4x2xf32> to vector<4x1xf32>
    %7 = vector.broadcast %6 : vector<4x1xf32> to vector<4x512xf32>
    %8 = vector.broadcast %4 : vector<1x512xf32> to vector<4x512xf32>
    %9 = arith.mulf %7, %8 : vector<4x512xf32>
    %10 = vector.extract_strided_slice %5 {offsets = [0, 1], sizes = [4, 1], strides = [1, 1]} : vector<4x2xf32> to vector<4x1xf32>
    %11 = vector.broadcast %10 : vector<4x1xf32> to vector<4x512xf32>
    %12 = arith.addf %9, %11 : vector<4x512xf32>
    %cst_4 = arith.constant 0.000000e+00 : f32
    %13 = vector.broadcast %cst_4 : f32 to vector<4x512xf32>
    %14 = arith.maximumf %12, %13 : vector<4x512xf32>
    %15 = tpu.iota {dimensions = array<i32: 1>} : vector<1x512xi32>
    %c15_i32 = arith.constant 15 : i32
    %16 = vector.broadcast %c15_i32 : i32 to vector<1x512xi32>
    %17 = arith.andi %15, %16 : vector<1x512xi32>
    %c4_i32 = arith.constant 4 : i32
    %18 = vector.broadcast %c4_i32 : i32 to vector<1x512xi32>
    %19 = arith.shrsi %15, %18 : vector<1x512xi32>
    %c15_i32_5 = arith.constant 15 : i32
    %20 = vector.broadcast %c15_i32_5 : i32 to vector<1x512xi32>
    %21 = arith.andi %19, %20 : vector<1x512xi32>
    %c1_i32 = arith.constant 1 : i32
    %22 = vector.broadcast %c1_i32 : i32 to vector<1x512xi32>
    %23 = arith.cmpi sge, %21, %22 : vector<1x512xi32>
    %24 = arith.extui %23 : vector<1x512xi1> to vector<1x512xi32>
    %25 = arith.sitofp %24 : vector<1x512xi32> to vector<1x512xf32>
    %c14_i32 = arith.constant 14 : i32
    %26 = vector.broadcast %c14_i32 : i32 to vector<1x512xi32>
    %27 = arith.cmpi sle, %21, %26 : vector<1x512xi32>
    %28 = arith.extui %27 : vector<1x512xi1> to vector<1x512xi32>
    %29 = arith.sitofp %28 : vector<1x512xi32> to vector<1x512xf32>
    %c1_i32_6 = arith.constant 1 : i32
    %30 = vector.broadcast %c1_i32_6 : i32 to vector<1x512xi32>
    %31 = arith.cmpi sge, %17, %30 : vector<1x512xi32>
    %32 = arith.extui %31 : vector<1x512xi1> to vector<1x512xi32>
    %33 = arith.sitofp %32 : vector<1x512xi32> to vector<1x512xf32>
    %c14_i32_7 = arith.constant 14 : i32
    %34 = vector.broadcast %c14_i32_7 : i32 to vector<1x512xi32>
    %35 = arith.cmpi sle, %17, %34 : vector<1x512xi32>
    %36 = arith.extui %35 : vector<1x512xi1> to vector<1x512xi32>
    %37 = arith.sitofp %36 : vector<1x512xi32> to vector<1x512xf32>
    %38 = arith.mulf %25, %33 : vector<1x512xf32>
    %39 = arith.mulf %25, %37 : vector<1x512xf32>
    %40 = arith.mulf %29, %33 : vector<1x512xf32>
    %41 = arith.mulf %29, %37 : vector<1x512xf32>
    %c0_8 = arith.constant 0 : index
    %c0_9 = arith.constant 0 : index
    %42 = vector.load %arg4[%c0_8, %c0_9] : memref<4x3xf32, #tpu.memory_space<vmem>>, vector<4x3xf32>
    %cst_10 = arith.constant 0.000000e+00 : f32
    %43 = vector.broadcast %cst_10 : f32 to vector<4x17xf32>
    %44 = vector.extract_strided_slice %14 {offsets = [0, 0], sizes = [4, 495], strides = [1, 1]} : vector<4x512xf32> to vector<4x495xf32>
    %45 = tpu.concatenate %43, %44 in 1 : vector<4x17xf32>, vector<4x495xf32> -> vector<4x512xf32>
    %46 = vector.broadcast %38 : vector<1x512xf32> to vector<4x512xf32>
    %47 = arith.mulf %45, %46 : vector<4x512xf32>
    %c0_11 = arith.constant 0 : index
    %c0_12 = arith.constant 0 : index
    %c0_13 = arith.constant 0 : index
    %48 = vector.load %arg3[%c0_11, %c0_12, %c0_13] : memref<9x4x4xf32, #tpu.memory_space<vmem>>, vector<1x4x4xf32>
    %49 = vector.shape_cast %48 : vector<1x4x4xf32> to vector<4x4xf32>
    %cst_14 = arith.constant dense<0.000000e+00> : vector<4x512xf32>
    %50 = tpu.matmul %49, %47, %cst_14 {dimension_numbers = #tpu.dot_dimension_numbers<[1], [0], [0], [1], [0, 0, 1, 1], [], []>} : vector<4x4xf32>, vector<4x512xf32>, vector<4x512xf32> -> vector<4x512xf32>
    %cst_15 = arith.constant 0.000000e+00 : f32
    %51 = vector.broadcast %cst_15 : f32 to vector<4x16xf32>
    %52 = vector.extract_strided_slice %14 {offsets = [0, 0], sizes = [4, 496], strides = [1, 1]} : vector<4x512xf32> to vector<4x496xf32>
    %53 = tpu.concatenate %51, %52 in 1 : vector<4x16xf32>, vector<4x496xf32> -> vector<4x512xf32>
    %54 = vector.broadcast %25 : vector<1x512xf32> to vector<4x512xf32>
    %55 = arith.mulf %53, %54 : vector<4x512xf32>
    %c1 = arith.constant 1 : index
    %c0_16 = arith.constant 0 : index
    %c0_17 = arith.constant 0 : index
    %56 = vector.load %arg3[%c1, %c0_16, %c0_17] : memref<9x4x4xf32, #tpu.memory_space<vmem>>, vector<1x4x4xf32>
    %57 = vector.shape_cast %56 : vector<1x4x4xf32> to vector<4x4xf32>
    %cst_18 = arith.constant dense<0.000000e+00> : vector<4x512xf32>
    %58 = tpu.matmul %57, %55, %cst_18 {dimension_numbers = #tpu.dot_dimension_numbers<[1], [0], [0], [1], [0, 0, 1, 1], [], []>} : vector<4x4xf32>, vector<4x512xf32>, vector<4x512xf32> -> vector<4x512xf32>
    %59 = arith.addf %50, %58 : vector<4x512xf32>
    %cst_19 = arith.constant 0.000000e+00 : f32
    %60 = vector.broadcast %cst_19 : f32 to vector<4x15xf32>
    %61 = vector.extract_strided_slice %14 {offsets = [0, 0], sizes = [4, 497], strides = [1, 1]} : vector<4x512xf32> to vector<4x497xf32>
    %62 = tpu.concatenate %60, %61 in 1 : vector<4x15xf32>, vector<4x497xf32> -> vector<4x512xf32>
    %63 = vector.broadcast %39 : vector<1x512xf32> to vector<4x512xf32>
    %64 = arith.mulf %62, %63 : vector<4x512xf32>
    %c2 = arith.constant 2 : index
    %c0_20 = arith.constant 0 : index
    %c0_21 = arith.constant 0 : index
    %65 = vector.load %arg3[%c2, %c0_20, %c0_21] : memref<9x4x4xf32, #tpu.memory_space<vmem>>, vector<1x4x4xf32>
    %66 = vector.shape_cast %65 : vector<1x4x4xf32> to vector<4x4xf32>
    %cst_22 = arith.constant dense<0.000000e+00> : vector<4x512xf32>
    %67 = tpu.matmul %66, %64, %cst_22 {dimension_numbers = #tpu.dot_dimension_numbers<[1], [0], [0], [1], [0, 0, 1, 1], [], []>} : vector<4x4xf32>, vector<4x512xf32>, vector<4x512xf32> -> vector<4x512xf32>
    %68 = arith.addf %59, %67 : vector<4x512xf32>
    %cst_23 = arith.constant 0.000000e+00 : f32
    %69 = vector.broadcast %cst_23 : f32 to vector<4x1xf32>
    %70 = vector.extract_strided_slice %14 {offsets = [0, 0], sizes = [4, 511], strides = [1, 1]} : vector<4x512xf32> to vector<4x511xf32>
    %71 = tpu.concatenate %69, %70 in 1 : vector<4x1xf32>, vector<4x511xf32> -> vector<4x512xf32>
    %72 = vector.broadcast %33 : vector<1x512xf32> to vector<4x512xf32>
    %73 = arith.mulf %71, %72 : vector<4x512xf32>
    %c3 = arith.constant 3 : index
    %c0_24 = arith.constant 0 : index
    %c0_25 = arith.constant 0 : index
    %74 = vector.load %arg3[%c3, %c0_24, %c0_25] : memref<9x4x4xf32, #tpu.memory_space<vmem>>, vector<1x4x4xf32>
    %75 = vector.shape_cast %74 : vector<1x4x4xf32> to vector<4x4xf32>
    %cst_26 = arith.constant dense<0.000000e+00> : vector<4x512xf32>
    %76 = tpu.matmul %75, %73, %cst_26 {dimension_numbers = #tpu.dot_dimension_numbers<[1], [0], [0], [1], [0, 0, 1, 1], [], []>} : vector<4x4xf32>, vector<4x512xf32>, vector<4x512xf32> -> vector<4x512xf32>
    %77 = arith.addf %68, %76 : vector<4x512xf32>
    %c4 = arith.constant 4 : index
    %c0_27 = arith.constant 0 : index
    %c0_28 = arith.constant 0 : index
    %78 = vector.load %arg3[%c4, %c0_27, %c0_28] : memref<9x4x4xf32, #tpu.memory_space<vmem>>, vector<1x4x4xf32>
    %79 = vector.shape_cast %78 : vector<1x4x4xf32> to vector<4x4xf32>
    %cst_29 = arith.constant dense<0.000000e+00> : vector<4x512xf32>
    %80 = tpu.matmul %79, %14, %cst_29 {dimension_numbers = #tpu.dot_dimension_numbers<[1], [0], [0], [1], [0, 0, 1, 1], [], []>} : vector<4x4xf32>, vector<4x512xf32>, vector<4x512xf32> -> vector<4x512xf32>
    %81 = arith.addf %77, %80 : vector<4x512xf32>
    %cst_30 = arith.constant 0.000000e+00 : f32
    %82 = vector.broadcast %cst_30 : f32 to vector<4x1xf32>
    %83 = vector.extract_strided_slice %14 {offsets = [0, 1], sizes = [4, 511], strides = [1, 1]} : vector<4x512xf32> to vector<4x511xf32>
    %84 = tpu.concatenate %83, %82 in 1 : vector<4x511xf32>, vector<4x1xf32> -> vector<4x512xf32>
    %85 = vector.broadcast %37 : vector<1x512xf32> to vector<4x512xf32>
    %86 = arith.mulf %84, %85 : vector<4x512xf32>
    %c5 = arith.constant 5 : index
    %c0_31 = arith.constant 0 : index
    %c0_32 = arith.constant 0 : index
    %87 = vector.load %arg3[%c5, %c0_31, %c0_32] : memref<9x4x4xf32, #tpu.memory_space<vmem>>, vector<1x4x4xf32>
    %88 = vector.shape_cast %87 : vector<1x4x4xf32> to vector<4x4xf32>
    %cst_33 = arith.constant dense<0.000000e+00> : vector<4x512xf32>
    %89 = tpu.matmul %88, %86, %cst_33 {dimension_numbers = #tpu.dot_dimension_numbers<[1], [0], [0], [1], [0, 0, 1, 1], [], []>} : vector<4x4xf32>, vector<4x512xf32>, vector<4x512xf32> -> vector<4x512xf32>
    %90 = arith.addf %81, %89 : vector<4x512xf32>
    %cst_34 = arith.constant 0.000000e+00 : f32
    %91 = vector.broadcast %cst_34 : f32 to vector<4x15xf32>
    %92 = vector.extract_strided_slice %14 {offsets = [0, 15], sizes = [4, 497], strides = [1, 1]} : vector<4x512xf32> to vector<4x497xf32>
    %93 = tpu.concatenate %92, %91 in 1 : vector<4x497xf32>, vector<4x15xf32> -> vector<4x512xf32>
    %94 = vector.broadcast %40 : vector<1x512xf32> to vector<4x512xf32>
    %95 = arith.mulf %93, %94 : vector<4x512xf32>
    %c6 = arith.constant 6 : index
    %c0_35 = arith.constant 0 : index
    %c0_36 = arith.constant 0 : index
    %96 = vector.load %arg3[%c6, %c0_35, %c0_36] : memref<9x4x4xf32, #tpu.memory_space<vmem>>, vector<1x4x4xf32>
    %97 = vector.shape_cast %96 : vector<1x4x4xf32> to vector<4x4xf32>
    %cst_37 = arith.constant dense<0.000000e+00> : vector<4x512xf32>
    %98 = tpu.matmul %97, %95, %cst_37 {dimension_numbers = #tpu.dot_dimension_numbers<[1], [0], [0], [1], [0, 0, 1, 1], [], []>} : vector<4x4xf32>, vector<4x512xf32>, vector<4x512xf32> -> vector<4x512xf32>
    %99 = arith.addf %90, %98 : vector<4x512xf32>
    %cst_38 = arith.constant 0.000000e+00 : f32
    %100 = vector.broadcast %cst_38 : f32 to vector<4x16xf32>
    %101 = vector.extract_strided_slice %14 {offsets = [0, 16], sizes = [4, 496], strides = [1, 1]} : vector<4x512xf32> to vector<4x496xf32>
    %102 = tpu.concatenate %101, %100 in 1 : vector<4x496xf32>, vector<4x16xf32> -> vector<4x512xf32>
    %103 = vector.broadcast %29 : vector<1x512xf32> to vector<4x512xf32>
    %104 = arith.mulf %102, %103 : vector<4x512xf32>
    %c7 = arith.constant 7 : index
    %c0_39 = arith.constant 0 : index
    %c0_40 = arith.constant 0 : index
    %105 = vector.load %arg3[%c7, %c0_39, %c0_40] : memref<9x4x4xf32, #tpu.memory_space<vmem>>, vector<1x4x4xf32>
    %106 = vector.shape_cast %105 : vector<1x4x4xf32> to vector<4x4xf32>
    %cst_41 = arith.constant dense<0.000000e+00> : vector<4x512xf32>
    %107 = tpu.matmul %106, %104, %cst_41 {dimension_numbers = #tpu.dot_dimension_numbers<[1], [0], [0], [1], [0, 0, 1, 1], [], []>} : vector<4x4xf32>, vector<4x512xf32>, vector<4x512xf32> -> vector<4x512xf32>
    %108 = arith.addf %99, %107 : vector<4x512xf32>
    %cst_42 = arith.constant 0.000000e+00 : f32
    %109 = vector.broadcast %cst_42 : f32 to vector<4x17xf32>
    %110 = vector.extract_strided_slice %14 {offsets = [0, 17], sizes = [4, 495], strides = [1, 1]} : vector<4x512xf32> to vector<4x495xf32>
    %111 = tpu.concatenate %110, %109 in 1 : vector<4x495xf32>, vector<4x17xf32> -> vector<4x512xf32>
    %112 = vector.broadcast %41 : vector<1x512xf32> to vector<4x512xf32>
    %113 = arith.mulf %111, %112 : vector<4x512xf32>
    %c8 = arith.constant 8 : index
    %c0_43 = arith.constant 0 : index
    %c0_44 = arith.constant 0 : index
    %114 = vector.load %arg3[%c8, %c0_43, %c0_44] : memref<9x4x4xf32, #tpu.memory_space<vmem>>, vector<1x4x4xf32>
    %115 = vector.shape_cast %114 : vector<1x4x4xf32> to vector<4x4xf32>
    %cst_45 = arith.constant dense<0.000000e+00> : vector<4x512xf32>
    %116 = tpu.matmul %115, %113, %cst_45 {dimension_numbers = #tpu.dot_dimension_numbers<[1], [0], [0], [1], [0, 0, 1, 1], [], []>} : vector<4x4xf32>, vector<4x512xf32>, vector<4x512xf32> -> vector<4x512xf32>
    %117 = arith.addf %108, %116 : vector<4x512xf32>
    %118 = vector.extract_strided_slice %42 {offsets = [0, 0], sizes = [4, 1], strides = [1, 1]} : vector<4x3xf32> to vector<4x1xf32>
    %119 = vector.broadcast %118 : vector<4x1xf32> to vector<4x512xf32>
    %120 = arith.addf %117, %119 : vector<4x512xf32>
    %121 = vector.extract_strided_slice %42 {offsets = [0, 1], sizes = [4, 1], strides = [1, 1]} : vector<4x3xf32> to vector<4x1xf32>
    %122 = vector.extract_strided_slice %42 {offsets = [0, 2], sizes = [4, 1], strides = [1, 1]} : vector<4x3xf32> to vector<4x1xf32>
    %cst_46 = arith.constant dense<0.000000e+00> : vector<4xf32>
    %123 = vector.multi_reduction <add>, %120, %cst_46 [1] : vector<4x512xf32> to vector<4xf32>
    %124 = vector.shape_cast %123 : vector<4xf32> to vector<4x1xf32>
    %cst_47 = arith.constant 5.120000e+02 : f32
    %125 = vector.broadcast %cst_47 : f32 to vector<4x1xf32>
    %126 = arith.divf %124, %125 : vector<4x1xf32>
    %127 = vector.broadcast %126 : vector<4x1xf32> to vector<4x512xf32>
    %128 = arith.subf %120, %127 : vector<4x512xf32>
    %129 = arith.mulf %128, %128 : vector<4x512xf32>
    %cst_48 = arith.constant dense<0.000000e+00> : vector<4xf32>
    %130 = vector.multi_reduction <add>, %129, %cst_48 [1] : vector<4x512xf32> to vector<4xf32>
    %131 = vector.shape_cast %130 : vector<4xf32> to vector<4x1xf32>
    %cst_49 = arith.constant 5.120000e+02 : f32
    %132 = vector.broadcast %cst_49 : f32 to vector<4x1xf32>
    %133 = arith.divf %131, %132 : vector<4x1xf32>
    %134 = vector.broadcast %126 : vector<4x1xf32> to vector<4x512xf32>
    %135 = arith.subf %120, %134 : vector<4x512xf32>
    %cst_50 = arith.constant 9.99999974E-6 : f32
    %136 = vector.broadcast %cst_50 : f32 to vector<4x1xf32>
    %137 = arith.addf %133, %136 : vector<4x1xf32>
    %138 = math.rsqrt %137 : vector<4x1xf32>
    %139 = arith.mulf %121, %138 : vector<4x1xf32>
    %140 = vector.broadcast %139 : vector<4x1xf32> to vector<4x512xf32>
    %141 = arith.mulf %135, %140 : vector<4x512xf32>
    %142 = vector.broadcast %122 : vector<4x1xf32> to vector<4x512xf32>
    %143 = arith.addf %141, %142 : vector<4x512xf32>
    %cst_51 = arith.constant 0.000000e+00 : f32
    %144 = vector.broadcast %cst_51 : f32 to vector<4x512xf32>
    %145 = arith.cmpf oge, %143, %144 : vector<4x512xf32>
    %cst_52 = arith.constant 2.000000e-01 : f32
    %146 = vector.broadcast %cst_52 : f32 to vector<4x512xf32>
    %147 = arith.mulf %146, %143 : vector<4x512xf32>
    %148 = arith.select %145, %143, %147 : vector<4x512xi1>, vector<4x512xf32>
    %cst_53 = arith.constant 0.000000e+00 : f32
    %149 = vector.broadcast %cst_53 : f32 to vector<4x1xf32>
    %150 = vector.extract_strided_slice %148 {offsets = [0, 0], sizes = [4, 511], strides = [1, 1]} : vector<4x512xf32> to vector<4x511xf32>
    %151 = tpu.concatenate %149, %150 in 1 : vector<4x1xf32>, vector<4x511xf32> -> vector<4x512xf32>
    %152 = vector.broadcast %33 : vector<1x512xf32> to vector<4x512xf32>
    %153 = arith.mulf %151, %152 : vector<4x512xf32>
    %cst_54 = arith.constant 2.000000e+00 : f32
    %154 = vector.broadcast %cst_54 : f32 to vector<4x512xf32>
    %155 = arith.mulf %154, %148 : vector<4x512xf32>
    %156 = arith.addf %153, %155 : vector<4x512xf32>
    %cst_55 = arith.constant 0.000000e+00 : f32
    %157 = vector.broadcast %cst_55 : f32 to vector<4x1xf32>
    %158 = vector.extract_strided_slice %148 {offsets = [0, 1], sizes = [4, 511], strides = [1, 1]} : vector<4x512xf32> to vector<4x511xf32>
    %159 = tpu.concatenate %158, %157 in 1 : vector<4x511xf32>, vector<4x1xf32> -> vector<4x512xf32>
    %160 = vector.broadcast %37 : vector<1x512xf32> to vector<4x512xf32>
    %161 = arith.mulf %159, %160 : vector<4x512xf32>
    %162 = arith.addf %156, %161 : vector<4x512xf32>
    %cst_56 = arith.constant 2.500000e-01 : f32
    %163 = vector.broadcast %cst_56 : f32 to vector<4x512xf32>
    %164 = arith.mulf %162, %163 : vector<4x512xf32>
    %cst_57 = arith.constant 0.000000e+00 : f32
    %165 = vector.broadcast %cst_57 : f32 to vector<4x16xf32>
    %166 = vector.extract_strided_slice %164 {offsets = [0, 0], sizes = [4, 496], strides = [1, 1]} : vector<4x512xf32> to vector<4x496xf32>
    %167 = tpu.concatenate %165, %166 in 1 : vector<4x16xf32>, vector<4x496xf32> -> vector<4x512xf32>
    %168 = vector.broadcast %25 : vector<1x512xf32> to vector<4x512xf32>
    %169 = arith.mulf %167, %168 : vector<4x512xf32>
    %cst_58 = arith.constant 2.000000e+00 : f32
    %170 = vector.broadcast %cst_58 : f32 to vector<4x512xf32>
    %171 = arith.mulf %170, %164 : vector<4x512xf32>
    %172 = arith.addf %169, %171 : vector<4x512xf32>
    %cst_59 = arith.constant 0.000000e+00 : f32
    %173 = vector.broadcast %cst_59 : f32 to vector<4x16xf32>
    %174 = vector.extract_strided_slice %164 {offsets = [0, 16], sizes = [4, 496], strides = [1, 1]} : vector<4x512xf32> to vector<4x496xf32>
    %175 = tpu.concatenate %174, %173 in 1 : vector<4x496xf32>, vector<4x16xf32> -> vector<4x512xf32>
    %176 = vector.broadcast %29 : vector<1x512xf32> to vector<4x512xf32>
    %177 = arith.mulf %175, %176 : vector<4x512xf32>
    %178 = arith.addf %172, %177 : vector<4x512xf32>
    %cst_60 = arith.constant 2.500000e-01 : f32
    %179 = vector.broadcast %cst_60 : f32 to vector<4x512xf32>
    %180 = arith.mulf %178, %179 : vector<4x512xf32>
    %cst_61 = arith.constant 0.000000e+00 : f32
    %181 = vector.broadcast %cst_61 : f32 to vector<4x17xf32>
    %182 = vector.extract_strided_slice %180 {offsets = [0, 0], sizes = [4, 495], strides = [1, 1]} : vector<4x512xf32> to vector<4x495xf32>
    %183 = tpu.concatenate %181, %182 in 1 : vector<4x17xf32>, vector<4x495xf32> -> vector<4x512xf32>
    %184 = vector.broadcast %38 : vector<1x512xf32> to vector<4x512xf32>
    %185 = arith.mulf %183, %184 : vector<4x512xf32>
    %c0_62 = arith.constant 0 : index
    %c0_63 = arith.constant 0 : index
    %c0_64 = arith.constant 0 : index
    %186 = vector.load %arg5[%c0_62, %c0_63, %c0_64] : memref<9x8x4xf32, #tpu.memory_space<vmem>>, vector<1x8x4xf32>
    %187 = vector.shape_cast %186 : vector<1x8x4xf32> to vector<8x4xf32>
    %cst_65 = arith.constant dense<0.000000e+00> : vector<8x512xf32>
    %188 = tpu.matmul %187, %185, %cst_65 {dimension_numbers = #tpu.dot_dimension_numbers<[1], [0], [0], [1], [0, 0, 1, 1], [], []>} : vector<8x4xf32>, vector<4x512xf32>, vector<8x512xf32> -> vector<8x512xf32>
    %cst_66 = arith.constant 0.000000e+00 : f32
    %189 = vector.broadcast %cst_66 : f32 to vector<4x16xf32>
    %190 = vector.extract_strided_slice %180 {offsets = [0, 0], sizes = [4, 496], strides = [1, 1]} : vector<4x512xf32> to vector<4x496xf32>
    %191 = tpu.concatenate %189, %190 in 1 : vector<4x16xf32>, vector<4x496xf32> -> vector<4x512xf32>
    %192 = vector.broadcast %25 : vector<1x512xf32> to vector<4x512xf32>
    %193 = arith.mulf %191, %192 : vector<4x512xf32>
    %c1_67 = arith.constant 1 : index
    %c0_68 = arith.constant 0 : index
    %c0_69 = arith.constant 0 : index
    %194 = vector.load %arg5[%c1_67, %c0_68, %c0_69] : memref<9x8x4xf32, #tpu.memory_space<vmem>>, vector<1x8x4xf32>
    %195 = vector.shape_cast %194 : vector<1x8x4xf32> to vector<8x4xf32>
    %cst_70 = arith.constant dense<0.000000e+00> : vector<8x512xf32>
    %196 = tpu.matmul %195, %193, %cst_70 {dimension_numbers = #tpu.dot_dimension_numbers<[1], [0], [0], [1], [0, 0, 1, 1], [], []>} : vector<8x4xf32>, vector<4x512xf32>, vector<8x512xf32> -> vector<8x512xf32>
    %197 = arith.addf %188, %196 : vector<8x512xf32>
    %cst_71 = arith.constant 0.000000e+00 : f32
    %198 = vector.broadcast %cst_71 : f32 to vector<4x15xf32>
    %199 = vector.extract_strided_slice %180 {offsets = [0, 0], sizes = [4, 497], strides = [1, 1]} : vector<4x512xf32> to vector<4x497xf32>
    %200 = tpu.concatenate %198, %199 in 1 : vector<4x15xf32>, vector<4x497xf32> -> vector<4x512xf32>
    %201 = vector.broadcast %39 : vector<1x512xf32> to vector<4x512xf32>
    %202 = arith.mulf %200, %201 : vector<4x512xf32>
    %c2_72 = arith.constant 2 : index
    %c0_73 = arith.constant 0 : index
    %c0_74 = arith.constant 0 : index
    %203 = vector.load %arg5[%c2_72, %c0_73, %c0_74] : memref<9x8x4xf32, #tpu.memory_space<vmem>>, vector<1x8x4xf32>
    %204 = vector.shape_cast %203 : vector<1x8x4xf32> to vector<8x4xf32>
    %cst_75 = arith.constant dense<0.000000e+00> : vector<8x512xf32>
    %205 = tpu.matmul %204, %202, %cst_75 {dimension_numbers = #tpu.dot_dimension_numbers<[1], [0], [0], [1], [0, 0, 1, 1], [], []>} : vector<8x4xf32>, vector<4x512xf32>, vector<8x512xf32> -> vector<8x512xf32>
    %206 = arith.addf %197, %205 : vector<8x512xf32>
    %cst_76 = arith.constant 0.000000e+00 : f32
    %207 = vector.broadcast %cst_76 : f32 to vector<4x1xf32>
    %208 = vector.extract_strided_slice %180 {offsets = [0, 0], sizes = [4, 511], strides = [1, 1]} : vector<4x512xf32> to vector<4x511xf32>
    %209 = tpu.concatenate %207, %208 in 1 : vector<4x1xf32>, vector<4x511xf32> -> vector<4x512xf32>
    %210 = vector.broadcast %33 : vector<1x512xf32> to vector<4x512xf32>
    %211 = arith.mulf %209, %210 : vector<4x512xf32>
    %c3_77 = arith.constant 3 : index
    %c0_78 = arith.constant 0 : index
    %c0_79 = arith.constant 0 : index
    %212 = vector.load %arg5[%c3_77, %c0_78, %c0_79] : memref<9x8x4xf32, #tpu.memory_space<vmem>>, vector<1x8x4xf32>
    %213 = vector.shape_cast %212 : vector<1x8x4xf32> to vector<8x4xf32>
    %cst_80 = arith.constant dense<0.000000e+00> : vector<8x512xf32>
    %214 = tpu.matmul %213, %211, %cst_80 {dimension_numbers = #tpu.dot_dimension_numbers<[1], [0], [0], [1], [0, 0, 1, 1], [], []>} : vector<8x4xf32>, vector<4x512xf32>, vector<8x512xf32> -> vector<8x512xf32>
    %215 = arith.addf %206, %214 : vector<8x512xf32>
    %c4_81 = arith.constant 4 : index
    %c0_82 = arith.constant 0 : index
    %c0_83 = arith.constant 0 : index
    %216 = vector.load %arg5[%c4_81, %c0_82, %c0_83] : memref<9x8x4xf32, #tpu.memory_space<vmem>>, vector<1x8x4xf32>
    %217 = vector.shape_cast %216 : vector<1x8x4xf32> to vector<8x4xf32>
    %cst_84 = arith.constant dense<0.000000e+00> : vector<8x512xf32>
    %218 = tpu.matmul %217, %180, %cst_84 {dimension_numbers = #tpu.dot_dimension_numbers<[1], [0], [0], [1], [0, 0, 1, 1], [], []>} : vector<8x4xf32>, vector<4x512xf32>, vector<8x512xf32> -> vector<8x512xf32>
    %219 = arith.addf %215, %218 : vector<8x512xf32>
    %cst_85 = arith.constant 0.000000e+00 : f32
    %220 = vector.broadcast %cst_85 : f32 to vector<4x1xf32>
    %221 = vector.extract_strided_slice %180 {offsets = [0, 1], sizes = [4, 511], strides = [1, 1]} : vector<4x512xf32> to vector<4x511xf32>
    %222 = tpu.concatenate %221, %220 in 1 : vector<4x511xf32>, vector<4x1xf32> -> vector<4x512xf32>
    %223 = vector.broadcast %37 : vector<1x512xf32> to vector<4x512xf32>
    %224 = arith.mulf %222, %223 : vector<4x512xf32>
    %c5_86 = arith.constant 5 : index
    %c0_87 = arith.constant 0 : index
    %c0_88 = arith.constant 0 : index
    %225 = vector.load %arg5[%c5_86, %c0_87, %c0_88] : memref<9x8x4xf32, #tpu.memory_space<vmem>>, vector<1x8x4xf32>
    %226 = vector.shape_cast %225 : vector<1x8x4xf32> to vector<8x4xf32>
    %cst_89 = arith.constant dense<0.000000e+00> : vector<8x512xf32>
    %227 = tpu.matmul %226, %224, %cst_89 {dimension_numbers = #tpu.dot_dimension_numbers<[1], [0], [0], [1], [0, 0, 1, 1], [], []>} : vector<8x4xf32>, vector<4x512xf32>, vector<8x512xf32> -> vector<8x512xf32>
    %228 = arith.addf %219, %227 : vector<8x512xf32>
    %cst_90 = arith.constant 0.000000e+00 : f32
    %229 = vector.broadcast %cst_90 : f32 to vector<4x15xf32>
    %230 = vector.extract_strided_slice %180 {offsets = [0, 15], sizes = [4, 497], strides = [1, 1]} : vector<4x512xf32> to vector<4x497xf32>
    %231 = tpu.concatenate %230, %229 in 1 : vector<4x497xf32>, vector<4x15xf32> -> vector<4x512xf32>
    %232 = vector.broadcast %40 : vector<1x512xf32> to vector<4x512xf32>
    %233 = arith.mulf %231, %232 : vector<4x512xf32>
    %c6_91 = arith.constant 6 : index
    %c0_92 = arith.constant 0 : index
    %c0_93 = arith.constant 0 : index
    %234 = vector.load %arg5[%c6_91, %c0_92, %c0_93] : memref<9x8x4xf32, #tpu.memory_space<vmem>>, vector<1x8x4xf32>
    %235 = vector.shape_cast %234 : vector<1x8x4xf32> to vector<8x4xf32>
    %cst_94 = arith.constant dense<0.000000e+00> : vector<8x512xf32>
    %236 = tpu.matmul %235, %233, %cst_94 {dimension_numbers = #tpu.dot_dimension_numbers<[1], [0], [0], [1], [0, 0, 1, 1], [], []>} : vector<8x4xf32>, vector<4x512xf32>, vector<8x512xf32> -> vector<8x512xf32>
    %237 = arith.addf %228, %236 : vector<8x512xf32>
    %cst_95 = arith.constant 0.000000e+00 : f32
    %238 = vector.broadcast %cst_95 : f32 to vector<4x16xf32>
    %239 = vector.extract_strided_slice %180 {offsets = [0, 16], sizes = [4, 496], strides = [1, 1]} : vector<4x512xf32> to vector<4x496xf32>
    %240 = tpu.concatenate %239, %238 in 1 : vector<4x496xf32>, vector<4x16xf32> -> vector<4x512xf32>
    %241 = vector.broadcast %29 : vector<1x512xf32> to vector<4x512xf32>
    %242 = arith.mulf %240, %241 : vector<4x512xf32>
    %c7_96 = arith.constant 7 : index
    %c0_97 = arith.constant 0 : index
    %c0_98 = arith.constant 0 : index
    %243 = vector.load %arg5[%c7_96, %c0_97, %c0_98] : memref<9x8x4xf32, #tpu.memory_space<vmem>>, vector<1x8x4xf32>
    %244 = vector.shape_cast %243 : vector<1x8x4xf32> to vector<8x4xf32>
    %cst_99 = arith.constant dense<0.000000e+00> : vector<8x512xf32>
    %245 = tpu.matmul %244, %242, %cst_99 {dimension_numbers = #tpu.dot_dimension_numbers<[1], [0], [0], [1], [0, 0, 1, 1], [], []>} : vector<8x4xf32>, vector<4x512xf32>, vector<8x512xf32> -> vector<8x512xf32>
    %246 = arith.addf %237, %245 : vector<8x512xf32>
    %cst_100 = arith.constant 0.000000e+00 : f32
    %247 = vector.broadcast %cst_100 : f32 to vector<4x17xf32>
    %248 = vector.extract_strided_slice %180 {offsets = [0, 17], sizes = [4, 495], strides = [1, 1]} : vector<4x512xf32> to vector<4x495xf32>
    %249 = tpu.concatenate %248, %247 in 1 : vector<4x495xf32>, vector<4x17xf32> -> vector<4x512xf32>
    %250 = vector.broadcast %41 : vector<1x512xf32> to vector<4x512xf32>
    %251 = arith.mulf %249, %250 : vector<4x512xf32>
    %c8_101 = arith.constant 8 : index
    %c0_102 = arith.constant 0 : index
    %c0_103 = arith.constant 0 : index
    %252 = vector.load %arg5[%c8_101, %c0_102, %c0_103] : memref<9x8x4xf32, #tpu.memory_space<vmem>>, vector<1x8x4xf32>
    %253 = vector.shape_cast %252 : vector<1x8x4xf32> to vector<8x4xf32>
    %cst_104 = arith.constant dense<0.000000e+00> : vector<8x512xf32>
    %254 = tpu.matmul %253, %251, %cst_104 {dimension_numbers = #tpu.dot_dimension_numbers<[1], [0], [0], [1], [0, 0, 1, 1], [], []>} : vector<8x4xf32>, vector<4x512xf32>, vector<8x512xf32> -> vector<8x512xf32>
    %255 = arith.addf %246, %254 : vector<8x512xf32>
    %c0_105 = arith.constant 0 : index
    %c0_106 = arith.constant 0 : index
    %256 = vector.load %arg7[%c0_105, %c0_106] : memref<512x128xf32, #tpu.memory_space<vmem>>, vector<512x128xf32>
    %cst_107 = arith.constant dense<0.000000e+00> : vector<8x128xf32>
    %257 = tpu.matmul %255, %256, %cst_107 {dimension_numbers = #tpu.dot_dimension_numbers<[1], [0], [0], [1], [0, 0, 1, 1], [], []>} : vector<8x512xf32>, vector<512x128xf32>, vector<8x128xf32> -> vector<8x128xf32>
    %c0_108 = arith.constant 0 : index
    %c0_109 = arith.constant 0 : index
    %258 = vector.load %arg6[%c0_108, %c0_109] : memref<8x3xf32, #tpu.memory_space<vmem>>, vector<8x3xf32>
    %259 = vector.extract_strided_slice %258 {offsets = [0, 0], sizes = [8, 1], strides = [1, 1]} : vector<8x3xf32> to vector<8x1xf32>
    %260 = vector.broadcast %259 : vector<8x1xf32> to vector<8x128xf32>
    %261 = arith.addf %257, %260 : vector<8x128xf32>
    %262 = vector.extract_strided_slice %258 {offsets = [0, 1], sizes = [8, 1], strides = [1, 1]} : vector<8x3xf32> to vector<8x1xf32>
    %263 = vector.extract_strided_slice %258 {offsets = [0, 2], sizes = [8, 1], strides = [1, 1]} : vector<8x3xf32> to vector<8x1xf32>
    %cst_110 = arith.constant dense<0.000000e+00> : vector<8xf32>
    %264 = vector.multi_reduction <add>, %261, %cst_110 [1] : vector<8x128xf32> to vector<8xf32>
    %265 = vector.shape_cast %264 : vector<8xf32> to vector<8x1xf32>
    %cst_111 = arith.constant 1.280000e+02 : f32
    %266 = vector.broadcast %cst_111 : f32 to vector<8x1xf32>
    %267 = arith.divf %265, %266 : vector<8x1xf32>
    %268 = vector.broadcast %267 : vector<8x1xf32> to vector<8x128xf32>
    %269 = arith.subf %261, %268 : vector<8x128xf32>
    %270 = arith.mulf %269, %269 : vector<8x128xf32>
    %cst_112 = arith.constant dense<0.000000e+00> : vector<8xf32>
    %271 = vector.multi_reduction <add>, %270, %cst_112 [1] : vector<8x128xf32> to vector<8xf32>
    %272 = vector.shape_cast %271 : vector<8xf32> to vector<8x1xf32>
    %cst_113 = arith.constant 1.280000e+02 : f32
    %273 = vector.broadcast %cst_113 : f32 to vector<8x1xf32>
    %274 = arith.divf %272, %273 : vector<8x1xf32>
    %275 = vector.broadcast %267 : vector<8x1xf32> to vector<8x128xf32>
    %276 = arith.subf %261, %275 : vector<8x128xf32>
    %cst_114 = arith.constant 9.99999974E-6 : f32
    %277 = vector.broadcast %cst_114 : f32 to vector<8x1xf32>
    %278 = arith.addf %274, %277 : vector<8x1xf32>
    %279 = math.rsqrt %278 : vector<8x1xf32>
    %280 = arith.mulf %262, %279 : vector<8x1xf32>
    %281 = vector.broadcast %280 : vector<8x1xf32> to vector<8x128xf32>
    %282 = arith.mulf %276, %281 : vector<8x128xf32>
    %283 = vector.broadcast %263 : vector<8x1xf32> to vector<8x128xf32>
    %284 = arith.addf %282, %283 : vector<8x128xf32>
    %cst_115 = arith.constant 0.000000e+00 : f32
    %285 = vector.broadcast %cst_115 : f32 to vector<8x128xf32>
    %286 = arith.maximumf %284, %285 : vector<8x128xf32>
    %287 = tpu.iota {dimensions = array<i32: 1>} : vector<1x128xi32>
    %c7_i32 = arith.constant 7 : i32
    %288 = vector.broadcast %c7_i32 : i32 to vector<1x128xi32>
    %289 = arith.andi %287, %288 : vector<1x128xi32>
    %c3_i32 = arith.constant 3 : i32
    %290 = vector.broadcast %c3_i32 : i32 to vector<1x128xi32>
    %291 = arith.shrsi %287, %290 : vector<1x128xi32>
    %c7_i32_116 = arith.constant 7 : i32
    %292 = vector.broadcast %c7_i32_116 : i32 to vector<1x128xi32>
    %293 = arith.andi %291, %292 : vector<1x128xi32>
    %c1_i32_117 = arith.constant 1 : i32
    %294 = vector.broadcast %c1_i32_117 : i32 to vector<1x128xi32>
    %295 = arith.cmpi sge, %293, %294 : vector<1x128xi32>
    %296 = arith.extui %295 : vector<1x128xi1> to vector<1x128xi32>
    %297 = arith.sitofp %296 : vector<1x128xi32> to vector<1x128xf32>
    %c6_i32 = arith.constant 6 : i32
    %298 = vector.broadcast %c6_i32 : i32 to vector<1x128xi32>
    %299 = arith.cmpi sle, %293, %298 : vector<1x128xi32>
    %300 = arith.extui %299 : vector<1x128xi1> to vector<1x128xi32>
    %301 = arith.sitofp %300 : vector<1x128xi32> to vector<1x128xf32>
    %c1_i32_118 = arith.constant 1 : i32
    %302 = vector.broadcast %c1_i32_118 : i32 to vector<1x128xi32>
    %303 = arith.cmpi sge, %289, %302 : vector<1x128xi32>
    %304 = arith.extui %303 : vector<1x128xi1> to vector<1x128xi32>
    %305 = arith.sitofp %304 : vector<1x128xi32> to vector<1x128xf32>
    %c6_i32_119 = arith.constant 6 : i32
    %306 = vector.broadcast %c6_i32_119 : i32 to vector<1x128xi32>
    %307 = arith.cmpi sle, %289, %306 : vector<1x128xi32>
    %308 = arith.extui %307 : vector<1x128xi1> to vector<1x128xi32>
    %309 = arith.sitofp %308 : vector<1x128xi32> to vector<1x128xf32>
    %310 = arith.mulf %297, %305 : vector<1x128xf32>
    %311 = arith.mulf %297, %309 : vector<1x128xf32>
    %312 = arith.mulf %301, %305 : vector<1x128xf32>
    %313 = arith.mulf %301, %309 : vector<1x128xf32>
    %c0_120 = arith.constant 0 : index
    %c0_121 = arith.constant 0 : index
    %314 = vector.load %arg9[%c0_120, %c0_121] : memref<8x3xf32, #tpu.memory_space<vmem>>, vector<8x3xf32>
    %cst_122 = arith.constant 0.000000e+00 : f32
    %315 = vector.broadcast %cst_122 : f32 to vector<8x9xf32>
    %316 = vector.extract_strided_slice %286 {offsets = [0, 0], sizes = [8, 119], strides = [1, 1]} : vector<8x128xf32> to vector<8x119xf32>
    %317 = tpu.concatenate %315, %316 in 1 : vector<8x9xf32>, vector<8x119xf32> -> vector<8x128xf32>
    %318 = vector.broadcast %310 : vector<1x128xf32> to vector<8x128xf32>
    %319 = arith.mulf %317, %318 : vector<8x128xf32>
    %c0_123 = arith.constant 0 : index
    %c0_124 = arith.constant 0 : index
    %c0_125 = arith.constant 0 : index
    %320 = vector.load %arg8[%c0_123, %c0_124, %c0_125] : memref<9x8x8xf32, #tpu.memory_space<vmem>>, vector<1x8x8xf32>
    %321 = vector.shape_cast %320 : vector<1x8x8xf32> to vector<8x8xf32>
    %cst_126 = arith.constant dense<0.000000e+00> : vector<8x128xf32>
    %322 = tpu.matmul %321, %319, %cst_126 {dimension_numbers = #tpu.dot_dimension_numbers<[1], [0], [0], [1], [0, 0, 1, 1], [], []>} : vector<8x8xf32>, vector<8x128xf32>, vector<8x128xf32> -> vector<8x128xf32>
    %cst_127 = arith.constant 0.000000e+00 : f32
    %323 = vector.broadcast %cst_127 : f32 to vector<8x8xf32>
    %324 = vector.extract_strided_slice %286 {offsets = [0, 0], sizes = [8, 120], strides = [1, 1]} : vector<8x128xf32> to vector<8x120xf32>
    %325 = tpu.concatenate %323, %324 in 1 : vector<8x8xf32>, vector<8x120xf32> -> vector<8x128xf32>
    %326 = vector.broadcast %297 : vector<1x128xf32> to vector<8x128xf32>
    %327 = arith.mulf %325, %326 : vector<8x128xf32>
    %c1_128 = arith.constant 1 : index
    %c0_129 = arith.constant 0 : index
    %c0_130 = arith.constant 0 : index
    %328 = vector.load %arg8[%c1_128, %c0_129, %c0_130] : memref<9x8x8xf32, #tpu.memory_space<vmem>>, vector<1x8x8xf32>
    %329 = vector.shape_cast %328 : vector<1x8x8xf32> to vector<8x8xf32>
    %cst_131 = arith.constant dense<0.000000e+00> : vector<8x128xf32>
    %330 = tpu.matmul %329, %327, %cst_131 {dimension_numbers = #tpu.dot_dimension_numbers<[1], [0], [0], [1], [0, 0, 1, 1], [], []>} : vector<8x8xf32>, vector<8x128xf32>, vector<8x128xf32> -> vector<8x128xf32>
    %331 = arith.addf %322, %330 : vector<8x128xf32>
    %cst_132 = arith.constant 0.000000e+00 : f32
    %332 = vector.broadcast %cst_132 : f32 to vector<8x7xf32>
    %333 = vector.extract_strided_slice %286 {offsets = [0, 0], sizes = [8, 121], strides = [1, 1]} : vector<8x128xf32> to vector<8x121xf32>
    %334 = tpu.concatenate %332, %333 in 1 : vector<8x7xf32>, vector<8x121xf32> -> vector<8x128xf32>
    %335 = vector.broadcast %311 : vector<1x128xf32> to vector<8x128xf32>
    %336 = arith.mulf %334, %335 : vector<8x128xf32>
    %c2_133 = arith.constant 2 : index
    %c0_134 = arith.constant 0 : index
    %c0_135 = arith.constant 0 : index
    %337 = vector.load %arg8[%c2_133, %c0_134, %c0_135] : memref<9x8x8xf32, #tpu.memory_space<vmem>>, vector<1x8x8xf32>
    %338 = vector.shape_cast %337 : vector<1x8x8xf32> to vector<8x8xf32>
    %cst_136 = arith.constant dense<0.000000e+00> : vector<8x128xf32>
    %339 = tpu.matmul %338, %336, %cst_136 {dimension_numbers = #tpu.dot_dimension_numbers<[1], [0], [0], [1], [0, 0, 1, 1], [], []>} : vector<8x8xf32>, vector<8x128xf32>, vector<8x128xf32> -> vector<8x128xf32>
    %340 = arith.addf %331, %339 : vector<8x128xf32>
    %cst_137 = arith.constant 0.000000e+00 : f32
    %341 = vector.broadcast %cst_137 : f32 to vector<8x1xf32>
    %342 = vector.extract_strided_slice %286 {offsets = [0, 0], sizes = [8, 127], strides = [1, 1]} : vector<8x128xf32> to vector<8x127xf32>
    %343 = tpu.concatenate %341, %342 in 1 : vector<8x1xf32>, vector<8x127xf32> -> vector<8x128xf32>
    %344 = vector.broadcast %305 : vector<1x128xf32> to vector<8x128xf32>
    %345 = arith.mulf %343, %344 : vector<8x128xf32>
    %c3_138 = arith.constant 3 : index
    %c0_139 = arith.constant 0 : index
    %c0_140 = arith.constant 0 : index
    %346 = vector.load %arg8[%c3_138, %c0_139, %c0_140] : memref<9x8x8xf32, #tpu.memory_space<vmem>>, vector<1x8x8xf32>
    %347 = vector.shape_cast %346 : vector<1x8x8xf32> to vector<8x8xf32>
    %cst_141 = arith.constant dense<0.000000e+00> : vector<8x128xf32>
    %348 = tpu.matmul %347, %345, %cst_141 {dimension_numbers = #tpu.dot_dimension_numbers<[1], [0], [0], [1], [0, 0, 1, 1], [], []>} : vector<8x8xf32>, vector<8x128xf32>, vector<8x128xf32> -> vector<8x128xf32>
    %349 = arith.addf %340, %348 : vector<8x128xf32>
    %c4_142 = arith.constant 4 : index
    %c0_143 = arith.constant 0 : index
    %c0_144 = arith.constant 0 : index
    %350 = vector.load %arg8[%c4_142, %c0_143, %c0_144] : memref<9x8x8xf32, #tpu.memory_space<vmem>>, vector<1x8x8xf32>
    %351 = vector.shape_cast %350 : vector<1x8x8xf32> to vector<8x8xf32>
    %cst_145 = arith.constant dense<0.000000e+00> : vector<8x128xf32>
    %352 = tpu.matmul %351, %286, %cst_145 {dimension_numbers = #tpu.dot_dimension_numbers<[1], [0], [0], [1], [0, 0, 1, 1], [], []>} : vector<8x8xf32>, vector<8x128xf32>, vector<8x128xf32> -> vector<8x128xf32>
    %353 = arith.addf %349, %352 : vector<8x128xf32>
    %cst_146 = arith.constant 0.000000e+00 : f32
    %354 = vector.broadcast %cst_146 : f32 to vector<8x1xf32>
    %355 = vector.extract_strided_slice %286 {offsets = [0, 1], sizes = [8, 127], strides = [1, 1]} : vector<8x128xf32> to vector<8x127xf32>
    %356 = tpu.concatenate %355, %354 in 1 : vector<8x127xf32>, vector<8x1xf32> -> vector<8x128xf32>
    %357 = vector.broadcast %309 : vector<1x128xf32> to vector<8x128xf32>
    %358 = arith.mulf %356, %357 : vector<8x128xf32>
    %c5_147 = arith.constant 5 : index
    %c0_148 = arith.constant 0 : index
    %c0_149 = arith.constant 0 : index
    %359 = vector.load %arg8[%c5_147, %c0_148, %c0_149] : memref<9x8x8xf32, #tpu.memory_space<vmem>>, vector<1x8x8xf32>
    %360 = vector.shape_cast %359 : vector<1x8x8xf32> to vector<8x8xf32>
    %cst_150 = arith.constant dense<0.000000e+00> : vector<8x128xf32>
    %361 = tpu.matmul %360, %358, %cst_150 {dimension_numbers = #tpu.dot_dimension_numbers<[1], [0], [0], [1], [0, 0, 1, 1], [], []>} : vector<8x8xf32>, vector<8x128xf32>, vector<8x128xf32> -> vector<8x128xf32>
    %362 = arith.addf %353, %361 : vector<8x128xf32>
    %cst_151 = arith.constant 0.000000e+00 : f32
    %363 = vector.broadcast %cst_151 : f32 to vector<8x7xf32>
    %364 = vector.extract_strided_slice %286 {offsets = [0, 7], sizes = [8, 121], strides = [1, 1]} : vector<8x128xf32> to vector<8x121xf32>
    %365 = tpu.concatenate %364, %363 in 1 : vector<8x121xf32>, vector<8x7xf32> -> vector<8x128xf32>
    %366 = vector.broadcast %312 : vector<1x128xf32> to vector<8x128xf32>
    %367 = arith.mulf %365, %366 : vector<8x128xf32>
    %c6_152 = arith.constant 6 : index
    %c0_153 = arith.constant 0 : index
    %c0_154 = arith.constant 0 : index
    %368 = vector.load %arg8[%c6_152, %c0_153, %c0_154] : memref<9x8x8xf32, #tpu.memory_space<vmem>>, vector<1x8x8xf32>
    %369 = vector.shape_cast %368 : vector<1x8x8xf32> to vector<8x8xf32>
    %cst_155 = arith.constant dense<0.000000e+00> : vector<8x128xf32>
    %370 = tpu.matmul %369, %367, %cst_155 {dimension_numbers = #tpu.dot_dimension_numbers<[1], [0], [0], [1], [0, 0, 1, 1], [], []>} : vector<8x8xf32>, vector<8x128xf32>, vector<8x128xf32> -> vector<8x128xf32>
    %371 = arith.addf %362, %370 : vector<8x128xf32>
    %cst_156 = arith.constant 0.000000e+00 : f32
    %372 = vector.broadcast %cst_156 : f32 to vector<8x8xf32>
    %373 = vector.extract_strided_slice %286 {offsets = [0, 8], sizes = [8, 120], strides = [1, 1]} : vector<8x128xf32> to vector<8x120xf32>
    %374 = tpu.concatenate %373, %372 in 1 : vector<8x120xf32>, vector<8x8xf32> -> vector<8x128xf32>
    %375 = vector.broadcast %301 : vector<1x128xf32> to vector<8x128xf32>
    %376 = arith.mulf %374, %375 : vector<8x128xf32>
    %c7_157 = arith.constant 7 : index
    %c0_158 = arith.constant 0 : index
    %c0_159 = arith.constant 0 : index
    %377 = vector.load %arg8[%c7_157, %c0_158, %c0_159] : memref<9x8x8xf32, #tpu.memory_space<vmem>>, vector<1x8x8xf32>
    %378 = vector.shape_cast %377 : vector<1x8x8xf32> to vector<8x8xf32>
    %cst_160 = arith.constant dense<0.000000e+00> : vector<8x128xf32>
    %379 = tpu.matmul %378, %376, %cst_160 {dimension_numbers = #tpu.dot_dimension_numbers<[1], [0], [0], [1], [0, 0, 1, 1], [], []>} : vector<8x8xf32>, vector<8x128xf32>, vector<8x128xf32> -> vector<8x128xf32>
    %380 = arith.addf %371, %379 : vector<8x128xf32>
    %cst_161 = arith.constant 0.000000e+00 : f32
    %381 = vector.broadcast %cst_161 : f32 to vector<8x9xf32>
    %382 = vector.extract_strided_slice %286 {offsets = [0, 9], sizes = [8, 119], strides = [1, 1]} : vector<8x128xf32> to vector<8x119xf32>
    %383 = tpu.concatenate %382, %381 in 1 : vector<8x119xf32>, vector<8x9xf32> -> vector<8x128xf32>
    %384 = vector.broadcast %313 : vector<1x128xf32> to vector<8x128xf32>
    %385 = arith.mulf %383, %384 : vector<8x128xf32>
    %c8_162 = arith.constant 8 : index
    %c0_163 = arith.constant 0 : index
    %c0_164 = arith.constant 0 : index
    %386 = vector.load %arg8[%c8_162, %c0_163, %c0_164] : memref<9x8x8xf32, #tpu.memory_space<vmem>>, vector<1x8x8xf32>
    %387 = vector.shape_cast %386 : vector<1x8x8xf32> to vector<8x8xf32>
    %cst_165 = arith.constant dense<0.000000e+00> : vector<8x128xf32>
    %388 = tpu.matmul %387, %385, %cst_165 {dimension_numbers = #tpu.dot_dimension_numbers<[1], [0], [0], [1], [0, 0, 1, 1], [], []>} : vector<8x8xf32>, vector<8x128xf32>, vector<8x128xf32> -> vector<8x128xf32>
    %389 = arith.addf %380, %388 : vector<8x128xf32>
    %390 = vector.extract_strided_slice %314 {offsets = [0, 0], sizes = [8, 1], strides = [1, 1]} : vector<8x3xf32> to vector<8x1xf32>
    %391 = vector.broadcast %390 : vector<8x1xf32> to vector<8x128xf32>
    %392 = arith.addf %389, %391 : vector<8x128xf32>
    %393 = vector.extract_strided_slice %314 {offsets = [0, 1], sizes = [8, 1], strides = [1, 1]} : vector<8x3xf32> to vector<8x1xf32>
    %394 = vector.extract_strided_slice %314 {offsets = [0, 2], sizes = [8, 1], strides = [1, 1]} : vector<8x3xf32> to vector<8x1xf32>
    %cst_166 = arith.constant dense<0.000000e+00> : vector<8xf32>
    %395 = vector.multi_reduction <add>, %392, %cst_166 [1] : vector<8x128xf32> to vector<8xf32>
    %396 = vector.shape_cast %395 : vector<8xf32> to vector<8x1xf32>
    %cst_167 = arith.constant 1.280000e+02 : f32
    %397 = vector.broadcast %cst_167 : f32 to vector<8x1xf32>
    %398 = arith.divf %396, %397 : vector<8x1xf32>
    %399 = vector.broadcast %398 : vector<8x1xf32> to vector<8x128xf32>
    %400 = arith.subf %392, %399 : vector<8x128xf32>
    %401 = arith.mulf %400, %400 : vector<8x128xf32>
    %cst_168 = arith.constant dense<0.000000e+00> : vector<8xf32>
    %402 = vector.multi_reduction <add>, %401, %cst_168 [1] : vector<8x128xf32> to vector<8xf32>
    %403 = vector.shape_cast %402 : vector<8xf32> to vector<8x1xf32>
    %cst_169 = arith.constant 1.280000e+02 : f32
    %404 = vector.broadcast %cst_169 : f32 to vector<8x1xf32>
    %405 = arith.divf %403, %404 : vector<8x1xf32>
    %406 = vector.broadcast %398 : vector<8x1xf32> to vector<8x128xf32>
    %407 = arith.subf %392, %406 : vector<8x128xf32>
    %cst_170 = arith.constant 9.99999974E-6 : f32
    %408 = vector.broadcast %cst_170 : f32 to vector<8x1xf32>
    %409 = arith.addf %405, %408 : vector<8x1xf32>
    %410 = math.rsqrt %409 : vector<8x1xf32>
    %411 = arith.mulf %393, %410 : vector<8x1xf32>
    %412 = vector.broadcast %411 : vector<8x1xf32> to vector<8x128xf32>
    %413 = arith.mulf %407, %412 : vector<8x128xf32>
    %414 = vector.broadcast %394 : vector<8x1xf32> to vector<8x128xf32>
    %415 = arith.addf %413, %414 : vector<8x128xf32>
    %cst_171 = arith.constant 0.000000e+00 : f32
    %416 = vector.broadcast %cst_171 : f32 to vector<8x128xf32>
    %417 = arith.cmpf oge, %415, %416 : vector<8x128xf32>
    %cst_172 = arith.constant 2.000000e-01 : f32
    %418 = vector.broadcast %cst_172 : f32 to vector<8x128xf32>
    %419 = arith.mulf %418, %415 : vector<8x128xf32>
    %420 = arith.select %417, %415, %419 : vector<8x128xi1>, vector<8x128xf32>
    %cst_173 = arith.constant 0.000000e+00 : f32
    %421 = vector.broadcast %cst_173 : f32 to vector<8x1xf32>
    %422 = vector.extract_strided_slice %420 {offsets = [0, 0], sizes = [8, 127], strides = [1, 1]} : vector<8x128xf32> to vector<8x127xf32>
    %423 = tpu.concatenate %421, %422 in 1 : vector<8x1xf32>, vector<8x127xf32> -> vector<8x128xf32>
    %424 = vector.broadcast %305 : vector<1x128xf32> to vector<8x128xf32>
    %425 = arith.mulf %423, %424 : vector<8x128xf32>
    %cst_174 = arith.constant 2.000000e+00 : f32
    %426 = vector.broadcast %cst_174 : f32 to vector<8x128xf32>
    %427 = arith.mulf %426, %420 : vector<8x128xf32>
    %428 = arith.addf %425, %427 : vector<8x128xf32>
    %cst_175 = arith.constant 0.000000e+00 : f32
    %429 = vector.broadcast %cst_175 : f32 to vector<8x1xf32>
    %430 = vector.extract_strided_slice %420 {offsets = [0, 1], sizes = [8, 127], strides = [1, 1]} : vector<8x128xf32> to vector<8x127xf32>
    %431 = tpu.concatenate %430, %429 in 1 : vector<8x127xf32>, vector<8x1xf32> -> vector<8x128xf32>
    %432 = vector.broadcast %309 : vector<1x128xf32> to vector<8x128xf32>
    %433 = arith.mulf %431, %432 : vector<8x128xf32>
    %434 = arith.addf %428, %433 : vector<8x128xf32>
    %cst_176 = arith.constant 2.500000e-01 : f32
    %435 = vector.broadcast %cst_176 : f32 to vector<8x128xf32>
    %436 = arith.mulf %434, %435 : vector<8x128xf32>
    %cst_177 = arith.constant 0.000000e+00 : f32
    %437 = vector.broadcast %cst_177 : f32 to vector<8x8xf32>
    %438 = vector.extract_strided_slice %436 {offsets = [0, 0], sizes = [8, 120], strides = [1, 1]} : vector<8x128xf32> to vector<8x120xf32>
    %439 = tpu.concatenate %437, %438 in 1 : vector<8x8xf32>, vector<8x120xf32> -> vector<8x128xf32>
    %440 = vector.broadcast %297 : vector<1x128xf32> to vector<8x128xf32>
    %441 = arith.mulf %439, %440 : vector<8x128xf32>
    %cst_178 = arith.constant 2.000000e+00 : f32
    %442 = vector.broadcast %cst_178 : f32 to vector<8x128xf32>
    %443 = arith.mulf %442, %436 : vector<8x128xf32>
    %444 = arith.addf %441, %443 : vector<8x128xf32>
    %cst_179 = arith.constant 0.000000e+00 : f32
    %445 = vector.broadcast %cst_179 : f32 to vector<8x8xf32>
    %446 = vector.extract_strided_slice %436 {offsets = [0, 8], sizes = [8, 120], strides = [1, 1]} : vector<8x128xf32> to vector<8x120xf32>
    %447 = tpu.concatenate %446, %445 in 1 : vector<8x120xf32>, vector<8x8xf32> -> vector<8x128xf32>
    %448 = vector.broadcast %301 : vector<1x128xf32> to vector<8x128xf32>
    %449 = arith.mulf %447, %448 : vector<8x128xf32>
    %450 = arith.addf %444, %449 : vector<8x128xf32>
    %cst_180 = arith.constant 2.500000e-01 : f32
    %451 = vector.broadcast %cst_180 : f32 to vector<8x128xf32>
    %452 = arith.mulf %450, %451 : vector<8x128xf32>
    %cst_181 = arith.constant 0.000000e+00 : f32
    %453 = vector.broadcast %cst_181 : f32 to vector<8x9xf32>
    %454 = vector.extract_strided_slice %452 {offsets = [0, 0], sizes = [8, 119], strides = [1, 1]} : vector<8x128xf32> to vector<8x119xf32>
    %455 = tpu.concatenate %453, %454 in 1 : vector<8x9xf32>, vector<8x119xf32> -> vector<8x128xf32>
    %456 = vector.broadcast %310 : vector<1x128xf32> to vector<8x128xf32>
    %457 = arith.mulf %455, %456 : vector<8x128xf32>
    %c0_182 = arith.constant 0 : index
    %c0_183 = arith.constant 0 : index
    %c0_184 = arith.constant 0 : index
    %458 = vector.load %arg10[%c0_182, %c0_183, %c0_184] : memref<9x16x8xf32, #tpu.memory_space<vmem>>, vector<1x16x8xf32>
    %459 = vector.shape_cast %458 : vector<1x16x8xf32> to vector<16x8xf32>
    %cst_185 = arith.constant dense<0.000000e+00> : vector<16x128xf32>
    %460 = tpu.matmul %459, %457, %cst_185 {dimension_numbers = #tpu.dot_dimension_numbers<[1], [0], [0], [1], [0, 0, 1, 1], [], []>} : vector<16x8xf32>, vector<8x128xf32>, vector<16x128xf32> -> vector<16x128xf32>
    %cst_186 = arith.constant 0.000000e+00 : f32
    %461 = vector.broadcast %cst_186 : f32 to vector<8x8xf32>
    %462 = vector.extract_strided_slice %452 {offsets = [0, 0], sizes = [8, 120], strides = [1, 1]} : vector<8x128xf32> to vector<8x120xf32>
    %463 = tpu.concatenate %461, %462 in 1 : vector<8x8xf32>, vector<8x120xf32> -> vector<8x128xf32>
    %464 = vector.broadcast %297 : vector<1x128xf32> to vector<8x128xf32>
    %465 = arith.mulf %463, %464 : vector<8x128xf32>
    %c1_187 = arith.constant 1 : index
    %c0_188 = arith.constant 0 : index
    %c0_189 = arith.constant 0 : index
    %466 = vector.load %arg10[%c1_187, %c0_188, %c0_189] : memref<9x16x8xf32, #tpu.memory_space<vmem>>, vector<1x16x8xf32>
    %467 = vector.shape_cast %466 : vector<1x16x8xf32> to vector<16x8xf32>
    %cst_190 = arith.constant dense<0.000000e+00> : vector<16x128xf32>
    %468 = tpu.matmul %467, %465, %cst_190 {dimension_numbers = #tpu.dot_dimension_numbers<[1], [0], [0], [1], [0, 0, 1, 1], [], []>} : vector<16x8xf32>, vector<8x128xf32>, vector<16x128xf32> -> vector<16x128xf32>
    %469 = arith.addf %460, %468 : vector<16x128xf32>
    %cst_191 = arith.constant 0.000000e+00 : f32
    %470 = vector.broadcast %cst_191 : f32 to vector<8x7xf32>
    %471 = vector.extract_strided_slice %452 {offsets = [0, 0], sizes = [8, 121], strides = [1, 1]} : vector<8x128xf32> to vector<8x121xf32>
    %472 = tpu.concatenate %470, %471 in 1 : vector<8x7xf32>, vector<8x121xf32> -> vector<8x128xf32>
    %473 = vector.broadcast %311 : vector<1x128xf32> to vector<8x128xf32>
    %474 = arith.mulf %472, %473 : vector<8x128xf32>
    %c2_192 = arith.constant 2 : index
    %c0_193 = arith.constant 0 : index
    %c0_194 = arith.constant 0 : index
    %475 = vector.load %arg10[%c2_192, %c0_193, %c0_194] : memref<9x16x8xf32, #tpu.memory_space<vmem>>, vector<1x16x8xf32>
    %476 = vector.shape_cast %475 : vector<1x16x8xf32> to vector<16x8xf32>
    %cst_195 = arith.constant dense<0.000000e+00> : vector<16x128xf32>
    %477 = tpu.matmul %476, %474, %cst_195 {dimension_numbers = #tpu.dot_dimension_numbers<[1], [0], [0], [1], [0, 0, 1, 1], [], []>} : vector<16x8xf32>, vector<8x128xf32>, vector<16x128xf32> -> vector<16x128xf32>
    %478 = arith.addf %469, %477 : vector<16x128xf32>
    %cst_196 = arith.constant 0.000000e+00 : f32
    %479 = vector.broadcast %cst_196 : f32 to vector<8x1xf32>
    %480 = vector.extract_strided_slice %452 {offsets = [0, 0], sizes = [8, 127], strides = [1, 1]} : vector<8x128xf32> to vector<8x127xf32>
    %481 = tpu.concatenate %479, %480 in 1 : vector<8x1xf32>, vector<8x127xf32> -> vector<8x128xf32>
    %482 = vector.broadcast %305 : vector<1x128xf32> to vector<8x128xf32>
    %483 = arith.mulf %481, %482 : vector<8x128xf32>
    %c3_197 = arith.constant 3 : index
    %c0_198 = arith.constant 0 : index
    %c0_199 = arith.constant 0 : index
    %484 = vector.load %arg10[%c3_197, %c0_198, %c0_199] : memref<9x16x8xf32, #tpu.memory_space<vmem>>, vector<1x16x8xf32>
    %485 = vector.shape_cast %484 : vector<1x16x8xf32> to vector<16x8xf32>
    %cst_200 = arith.constant dense<0.000000e+00> : vector<16x128xf32>
    %486 = tpu.matmul %485, %483, %cst_200 {dimension_numbers = #tpu.dot_dimension_numbers<[1], [0], [0], [1], [0, 0, 1, 1], [], []>} : vector<16x8xf32>, vector<8x128xf32>, vector<16x128xf32> -> vector<16x128xf32>
    %487 = arith.addf %478, %486 : vector<16x128xf32>
    %c4_201 = arith.constant 4 : index
    %c0_202 = arith.constant 0 : index
    %c0_203 = arith.constant 0 : index
    %488 = vector.load %arg10[%c4_201, %c0_202, %c0_203] : memref<9x16x8xf32, #tpu.memory_space<vmem>>, vector<1x16x8xf32>
    %489 = vector.shape_cast %488 : vector<1x16x8xf32> to vector<16x8xf32>
    %cst_204 = arith.constant dense<0.000000e+00> : vector<16x128xf32>
    %490 = tpu.matmul %489, %452, %cst_204 {dimension_numbers = #tpu.dot_dimension_numbers<[1], [0], [0], [1], [0, 0, 1, 1], [], []>} : vector<16x8xf32>, vector<8x128xf32>, vector<16x128xf32> -> vector<16x128xf32>
    %491 = arith.addf %487, %490 : vector<16x128xf32>
    %cst_205 = arith.constant 0.000000e+00 : f32
    %492 = vector.broadcast %cst_205 : f32 to vector<8x1xf32>
    %493 = vector.extract_strided_slice %452 {offsets = [0, 1], sizes = [8, 127], strides = [1, 1]} : vector<8x128xf32> to vector<8x127xf32>
    %494 = tpu.concatenate %493, %492 in 1 : vector<8x127xf32>, vector<8x1xf32> -> vector<8x128xf32>
    %495 = vector.broadcast %309 : vector<1x128xf32> to vector<8x128xf32>
    %496 = arith.mulf %494, %495 : vector<8x128xf32>
    %c5_206 = arith.constant 5 : index
    %c0_207 = arith.constant 0 : index
    %c0_208 = arith.constant 0 : index
    %497 = vector.load %arg10[%c5_206, %c0_207, %c0_208] : memref<9x16x8xf32, #tpu.memory_space<vmem>>, vector<1x16x8xf32>
    %498 = vector.shape_cast %497 : vector<1x16x8xf32> to vector<16x8xf32>
    %cst_209 = arith.constant dense<0.000000e+00> : vector<16x128xf32>
    %499 = tpu.matmul %498, %496, %cst_209 {dimension_numbers = #tpu.dot_dimension_numbers<[1], [0], [0], [1], [0, 0, 1, 1], [], []>} : vector<16x8xf32>, vector<8x128xf32>, vector<16x128xf32> -> vector<16x128xf32>
    %500 = arith.addf %491, %499 : vector<16x128xf32>
    %cst_210 = arith.constant 0.000000e+00 : f32
    %501 = vector.broadcast %cst_210 : f32 to vector<8x7xf32>
    %502 = vector.extract_strided_slice %452 {offsets = [0, 7], sizes = [8, 121], strides = [1, 1]} : vector<8x128xf32> to vector<8x121xf32>
    %503 = tpu.concatenate %502, %501 in 1 : vector<8x121xf32>, vector<8x7xf32> -> vector<8x128xf32>
    %504 = vector.broadcast %312 : vector<1x128xf32> to vector<8x128xf32>
    %505 = arith.mulf %503, %504 : vector<8x128xf32>
    %c6_211 = arith.constant 6 : index
    %c0_212 = arith.constant 0 : index
    %c0_213 = arith.constant 0 : index
    %506 = vector.load %arg10[%c6_211, %c0_212, %c0_213] : memref<9x16x8xf32, #tpu.memory_space<vmem>>, vector<1x16x8xf32>
    %507 = vector.shape_cast %506 : vector<1x16x8xf32> to vector<16x8xf32>
    %cst_214 = arith.constant dense<0.000000e+00> : vector<16x128xf32>
    %508 = tpu.matmul %507, %505, %cst_214 {dimension_numbers = #tpu.dot_dimension_numbers<[1], [0], [0], [1], [0, 0, 1, 1], [], []>} : vector<16x8xf32>, vector<8x128xf32>, vector<16x128xf32> -> vector<16x128xf32>
    %509 = arith.addf %500, %508 : vector<16x128xf32>
    %cst_215 = arith.constant 0.000000e+00 : f32
    %510 = vector.broadcast %cst_215 : f32 to vector<8x8xf32>
    %511 = vector.extract_strided_slice %452 {offsets = [0, 8], sizes = [8, 120], strides = [1, 1]} : vector<8x128xf32> to vector<8x120xf32>
    %512 = tpu.concatenate %511, %510 in 1 : vector<8x120xf32>, vector<8x8xf32> -> vector<8x128xf32>
    %513 = vector.broadcast %301 : vector<1x128xf32> to vector<8x128xf32>
    %514 = arith.mulf %512, %513 : vector<8x128xf32>
    %c7_216 = arith.constant 7 : index
    %c0_217 = arith.constant 0 : index
    %c0_218 = arith.constant 0 : index
    %515 = vector.load %arg10[%c7_216, %c0_217, %c0_218] : memref<9x16x8xf32, #tpu.memory_space<vmem>>, vector<1x16x8xf32>
    %516 = vector.shape_cast %515 : vector<1x16x8xf32> to vector<16x8xf32>
    %cst_219 = arith.constant dense<0.000000e+00> : vector<16x128xf32>
    %517 = tpu.matmul %516, %514, %cst_219 {dimension_numbers = #tpu.dot_dimension_numbers<[1], [0], [0], [1], [0, 0, 1, 1], [], []>} : vector<16x8xf32>, vector<8x128xf32>, vector<16x128xf32> -> vector<16x128xf32>
    %518 = arith.addf %509, %517 : vector<16x128xf32>
    %cst_220 = arith.constant 0.000000e+00 : f32
    %519 = vector.broadcast %cst_220 : f32 to vector<8x9xf32>
    %520 = vector.extract_strided_slice %452 {offsets = [0, 9], sizes = [8, 119], strides = [1, 1]} : vector<8x128xf32> to vector<8x119xf32>
    %521 = tpu.concatenate %520, %519 in 1 : vector<8x119xf32>, vector<8x9xf32> -> vector<8x128xf32>
    %522 = vector.broadcast %313 : vector<1x128xf32> to vector<8x128xf32>
    %523 = arith.mulf %521, %522 : vector<8x128xf32>
    %c8_221 = arith.constant 8 : index
    %c0_222 = arith.constant 0 : index
    %c0_223 = arith.constant 0 : index
    %524 = vector.load %arg10[%c8_221, %c0_222, %c0_223] : memref<9x16x8xf32, #tpu.memory_space<vmem>>, vector<1x16x8xf32>
    %525 = vector.shape_cast %524 : vector<1x16x8xf32> to vector<16x8xf32>
    %cst_224 = arith.constant dense<0.000000e+00> : vector<16x128xf32>
    %526 = tpu.matmul %525, %523, %cst_224 {dimension_numbers = #tpu.dot_dimension_numbers<[1], [0], [0], [1], [0, 0, 1, 1], [], []>} : vector<16x8xf32>, vector<8x128xf32>, vector<16x128xf32> -> vector<16x128xf32>
    %527 = arith.addf %518, %526 : vector<16x128xf32>
    %c0_225 = arith.constant 0 : index
    %c0_226 = arith.constant 0 : index
    %528 = vector.load %arg12[%c0_225, %c0_226] : memref<128x32xf32, #tpu.memory_space<vmem>>, vector<128x32xf32>
    %cst_227 = arith.constant dense<0.000000e+00> : vector<16x32xf32>
    %529 = tpu.matmul %527, %528, %cst_227 {dimension_numbers = #tpu.dot_dimension_numbers<[1], [0], [0], [1], [0, 0, 1, 1], [], []>} : vector<16x128xf32>, vector<128x32xf32>, vector<16x32xf32> -> vector<16x32xf32>
    %c0_228 = arith.constant 0 : index
    %c0_229 = arith.constant 0 : index
    %530 = vector.load %arg11[%c0_228, %c0_229] : memref<16x3xf32, #tpu.memory_space<vmem>>, vector<16x3xf32>
    %531 = vector.extract_strided_slice %530 {offsets = [0, 0], sizes = [16, 1], strides = [1, 1]} : vector<16x3xf32> to vector<16x1xf32>
    %532 = vector.broadcast %531 : vector<16x1xf32> to vector<16x32xf32>
    %533 = arith.addf %529, %532 : vector<16x32xf32>
    %534 = vector.extract_strided_slice %530 {offsets = [0, 1], sizes = [16, 1], strides = [1, 1]} : vector<16x3xf32> to vector<16x1xf32>
    %535 = vector.extract_strided_slice %530 {offsets = [0, 2], sizes = [16, 1], strides = [1, 1]} : vector<16x3xf32> to vector<16x1xf32>
    %cst_230 = arith.constant dense<0.000000e+00> : vector<16xf32>
    %536 = vector.multi_reduction <add>, %533, %cst_230 [1] : vector<16x32xf32> to vector<16xf32>
    %537 = vector.shape_cast %536 : vector<16xf32> to vector<16x1xf32>
    %cst_231 = arith.constant 3.200000e+01 : f32
    %538 = vector.broadcast %cst_231 : f32 to vector<16x1xf32>
    %539 = arith.divf %537, %538 : vector<16x1xf32>
    %540 = vector.broadcast %539 : vector<16x1xf32> to vector<16x32xf32>
    %541 = arith.subf %533, %540 : vector<16x32xf32>
    %542 = arith.mulf %541, %541 : vector<16x32xf32>
    %cst_232 = arith.constant dense<0.000000e+00> : vector<16xf32>
    %543 = vector.multi_reduction <add>, %542, %cst_232 [1] : vector<16x32xf32> to vector<16xf32>
    %544 = vector.shape_cast %543 : vector<16xf32> to vector<16x1xf32>
    %cst_233 = arith.constant 3.200000e+01 : f32
    %545 = vector.broadcast %cst_233 : f32 to vector<16x1xf32>
    %546 = arith.divf %544, %545 : vector<16x1xf32>
    %547 = vector.broadcast %539 : vector<16x1xf32> to vector<16x32xf32>
    %548 = arith.subf %533, %547 : vector<16x32xf32>
    %cst_234 = arith.constant 9.99999974E-6 : f32
    %549 = vector.broadcast %cst_234 : f32 to vector<16x1xf32>
    %550 = arith.addf %546, %549 : vector<16x1xf32>
    %551 = math.rsqrt %550 : vector<16x1xf32>
    %552 = arith.mulf %534, %551 : vector<16x1xf32>
    %553 = vector.broadcast %552 : vector<16x1xf32> to vector<16x32xf32>
    %554 = arith.mulf %548, %553 : vector<16x32xf32>
    %555 = vector.broadcast %535 : vector<16x1xf32> to vector<16x32xf32>
    %556 = arith.addf %554, %555 : vector<16x32xf32>
    %cst_235 = arith.constant 0.000000e+00 : f32
    %557 = vector.broadcast %cst_235 : f32 to vector<16x32xf32>
    %558 = arith.maximumf %556, %557 : vector<16x32xf32>
    %559 = tpu.iota {dimensions = array<i32: 1>} : vector<1x32xi32>
    %c3_i32_236 = arith.constant 3 : i32
    %560 = vector.broadcast %c3_i32_236 : i32 to vector<1x32xi32>
    %561 = arith.andi %559, %560 : vector<1x32xi32>
    %c2_i32 = arith.constant 2 : i32
    %562 = vector.broadcast %c2_i32 : i32 to vector<1x32xi32>
    %563 = arith.shrsi %559, %562 : vector<1x32xi32>
    %c3_i32_237 = arith.constant 3 : i32
    %564 = vector.broadcast %c3_i32_237 : i32 to vector<1x32xi32>
    %565 = arith.andi %563, %564 : vector<1x32xi32>
    %c1_i32_238 = arith.constant 1 : i32
    %566 = vector.broadcast %c1_i32_238 : i32 to vector<1x32xi32>
    %567 = arith.cmpi sge, %565, %566 : vector<1x32xi32>
    %568 = arith.extui %567 : vector<1x32xi1> to vector<1x32xi32>
    %569 = arith.sitofp %568 : vector<1x32xi32> to vector<1x32xf32>
    %c2_i32_239 = arith.constant 2 : i32
    %570 = vector.broadcast %c2_i32_239 : i32 to vector<1x32xi32>
    %571 = arith.cmpi sle, %565, %570 : vector<1x32xi32>
    %572 = arith.extui %571 : vector<1x32xi1> to vector<1x32xi32>
    %573 = arith.sitofp %572 : vector<1x32xi32> to vector<1x32xf32>
    %c1_i32_240 = arith.constant 1 : i32
    %574 = vector.broadcast %c1_i32_240 : i32 to vector<1x32xi32>
    %575 = arith.cmpi sge, %561, %574 : vector<1x32xi32>
    %576 = arith.extui %575 : vector<1x32xi1> to vector<1x32xi32>
    %577 = arith.sitofp %576 : vector<1x32xi32> to vector<1x32xf32>
    %c2_i32_241 = arith.constant 2 : i32
    %578 = vector.broadcast %c2_i32_241 : i32 to vector<1x32xi32>
    %579 = arith.cmpi sle, %561, %578 : vector<1x32xi32>
    %580 = arith.extui %579 : vector<1x32xi1> to vector<1x32xi32>
    %581 = arith.sitofp %580 : vector<1x32xi32> to vector<1x32xf32>
    %582 = arith.mulf %569, %577 : vector<1x32xf32>
    %583 = arith.mulf %569, %581 : vector<1x32xf32>
    %584 = arith.mulf %573, %577 : vector<1x32xf32>
    %585 = arith.mulf %573, %581 : vector<1x32xf32>
    %c0_242 = arith.constant 0 : index
    %c0_243 = arith.constant 0 : index
    %586 = vector.load %arg14[%c0_242, %c0_243] : memref<16x4xf32, #tpu.memory_space<vmem>>, vector<16x4xf32>
    %cst_244 = arith.constant 0.000000e+00 : f32
    %587 = vector.broadcast %cst_244 : f32 to vector<16x5xf32>
    %588 = vector.extract_strided_slice %558 {offsets = [0, 0], sizes = [16, 27], strides = [1, 1]} : vector<16x32xf32> to vector<16x27xf32>
    %589 = tpu.concatenate %587, %588 in 1 : vector<16x5xf32>, vector<16x27xf32> -> vector<16x32xf32>
    %590 = vector.broadcast %582 : vector<1x32xf32> to vector<16x32xf32>
    %591 = arith.mulf %589, %590 : vector<16x32xf32>
    %c0_245 = arith.constant 0 : index
    %c0_246 = arith.constant 0 : index
    %c0_247 = arith.constant 0 : index
    %592 = vector.load %arg13[%c0_245, %c0_246, %c0_247] : memref<9x16x16xf32, #tpu.memory_space<vmem>>, vector<1x16x16xf32>
    %593 = vector.shape_cast %592 : vector<1x16x16xf32> to vector<16x16xf32>
    %cst_248 = arith.constant dense<0.000000e+00> : vector<16x32xf32>
    %594 = tpu.matmul %593, %591, %cst_248 {dimension_numbers = #tpu.dot_dimension_numbers<[1], [0], [0], [1], [0, 0, 1, 1], [], []>} : vector<16x16xf32>, vector<16x32xf32>, vector<16x32xf32> -> vector<16x32xf32>
    %cst_249 = arith.constant 0.000000e+00 : f32
    %595 = vector.broadcast %cst_249 : f32 to vector<16x4xf32>
    %596 = vector.extract_strided_slice %558 {offsets = [0, 0], sizes = [16, 28], strides = [1, 1]} : vector<16x32xf32> to vector<16x28xf32>
    %597 = tpu.concatenate %595, %596 in 1 : vector<16x4xf32>, vector<16x28xf32> -> vector<16x32xf32>
    %598 = vector.broadcast %569 : vector<1x32xf32> to vector<16x32xf32>
    %599 = arith.mulf %597, %598 : vector<16x32xf32>
    %c1_250 = arith.constant 1 : index
    %c0_251 = arith.constant 0 : index
    %c0_252 = arith.constant 0 : index
    %600 = vector.load %arg13[%c1_250, %c0_251, %c0_252] : memref<9x16x16xf32, #tpu.memory_space<vmem>>, vector<1x16x16xf32>
    %601 = vector.shape_cast %600 : vector<1x16x16xf32> to vector<16x16xf32>
    %cst_253 = arith.constant dense<0.000000e+00> : vector<16x32xf32>
    %602 = tpu.matmul %601, %599, %cst_253 {dimension_numbers = #tpu.dot_dimension_numbers<[1], [0], [0], [1], [0, 0, 1, 1], [], []>} : vector<16x16xf32>, vector<16x32xf32>, vector<16x32xf32> -> vector<16x32xf32>
    %603 = arith.addf %594, %602 : vector<16x32xf32>
    %cst_254 = arith.constant 0.000000e+00 : f32
    %604 = vector.broadcast %cst_254 : f32 to vector<16x3xf32>
    %605 = vector.extract_strided_slice %558 {offsets = [0, 0], sizes = [16, 29], strides = [1, 1]} : vector<16x32xf32> to vector<16x29xf32>
    %606 = tpu.concatenate %604, %605 in 1 : vector<16x3xf32>, vector<16x29xf32> -> vector<16x32xf32>
    %607 = vector.broadcast %583 : vector<1x32xf32> to vector<16x32xf32>
    %608 = arith.mulf %606, %607 : vector<16x32xf32>
    %c2_255 = arith.constant 2 : index
    %c0_256 = arith.constant 0 : index
    %c0_257 = arith.constant 0 : index
    %609 = vector.load %arg13[%c2_255, %c0_256, %c0_257] : memref<9x16x16xf32, #tpu.memory_space<vmem>>, vector<1x16x16xf32>
    %610 = vector.shape_cast %609 : vector<1x16x16xf32> to vector<16x16xf32>
    %cst_258 = arith.constant dense<0.000000e+00> : vector<16x32xf32>
    %611 = tpu.matmul %610, %608, %cst_258 {dimension_numbers = #tpu.dot_dimension_numbers<[1], [0], [0], [1], [0, 0, 1, 1], [], []>} : vector<16x16xf32>, vector<16x32xf32>, vector<16x32xf32> -> vector<16x32xf32>
    %612 = arith.addf %603, %611 : vector<16x32xf32>
    %cst_259 = arith.constant 0.000000e+00 : f32
    %613 = vector.broadcast %cst_259 : f32 to vector<16x1xf32>
    %614 = vector.extract_strided_slice %558 {offsets = [0, 0], sizes = [16, 31], strides = [1, 1]} : vector<16x32xf32> to vector<16x31xf32>
    %615 = tpu.concatenate %613, %614 in 1 : vector<16x1xf32>, vector<16x31xf32> -> vector<16x32xf32>
    %616 = vector.broadcast %577 : vector<1x32xf32> to vector<16x32xf32>
    %617 = arith.mulf %615, %616 : vector<16x32xf32>
    %c3_260 = arith.constant 3 : index
    %c0_261 = arith.constant 0 : index
    %c0_262 = arith.constant 0 : index
    %618 = vector.load %arg13[%c3_260, %c0_261, %c0_262] : memref<9x16x16xf32, #tpu.memory_space<vmem>>, vector<1x16x16xf32>
    %619 = vector.shape_cast %618 : vector<1x16x16xf32> to vector<16x16xf32>
    %cst_263 = arith.constant dense<0.000000e+00> : vector<16x32xf32>
    %620 = tpu.matmul %619, %617, %cst_263 {dimension_numbers = #tpu.dot_dimension_numbers<[1], [0], [0], [1], [0, 0, 1, 1], [], []>} : vector<16x16xf32>, vector<16x32xf32>, vector<16x32xf32> -> vector<16x32xf32>
    %621 = arith.addf %612, %620 : vector<16x32xf32>
    %c4_264 = arith.constant 4 : index
    %c0_265 = arith.constant 0 : index
    %c0_266 = arith.constant 0 : index
    %622 = vector.load %arg13[%c4_264, %c0_265, %c0_266] : memref<9x16x16xf32, #tpu.memory_space<vmem>>, vector<1x16x16xf32>
    %623 = vector.shape_cast %622 : vector<1x16x16xf32> to vector<16x16xf32>
    %cst_267 = arith.constant dense<0.000000e+00> : vector<16x32xf32>
    %624 = tpu.matmul %623, %558, %cst_267 {dimension_numbers = #tpu.dot_dimension_numbers<[1], [0], [0], [1], [0, 0, 1, 1], [], []>} : vector<16x16xf32>, vector<16x32xf32>, vector<16x32xf32> -> vector<16x32xf32>
    %625 = arith.addf %621, %624 : vector<16x32xf32>
    %cst_268 = arith.constant 0.000000e+00 : f32
    %626 = vector.broadcast %cst_268 : f32 to vector<16x1xf32>
    %627 = vector.extract_strided_slice %558 {offsets = [0, 1], sizes = [16, 31], strides = [1, 1]} : vector<16x32xf32> to vector<16x31xf32>
    %628 = tpu.concatenate %627, %626 in 1 : vector<16x31xf32>, vector<16x1xf32> -> vector<16x32xf32>
    %629 = vector.broadcast %581 : vector<1x32xf32> to vector<16x32xf32>
    %630 = arith.mulf %628, %629 : vector<16x32xf32>
    %c5_269 = arith.constant 5 : index
    %c0_270 = arith.constant 0 : index
    %c0_271 = arith.constant 0 : index
    %631 = vector.load %arg13[%c5_269, %c0_270, %c0_271] : memref<9x16x16xf32, #tpu.memory_space<vmem>>, vector<1x16x16xf32>
    %632 = vector.shape_cast %631 : vector<1x16x16xf32> to vector<16x16xf32>
    %cst_272 = arith.constant dense<0.000000e+00> : vector<16x32xf32>
    %633 = tpu.matmul %632, %630, %cst_272 {dimension_numbers = #tpu.dot_dimension_numbers<[1], [0], [0], [1], [0, 0, 1, 1], [], []>} : vector<16x16xf32>, vector<16x32xf32>, vector<16x32xf32> -> vector<16x32xf32>
    %634 = arith.addf %625, %633 : vector<16x32xf32>
    %cst_273 = arith.constant 0.000000e+00 : f32
    %635 = vector.broadcast %cst_273 : f32 to vector<16x3xf32>
    %636 = vector.extract_strided_slice %558 {offsets = [0, 3], sizes = [16, 29], strides = [1, 1]} : vector<16x32xf32> to vector<16x29xf32>
    %637 = tpu.concatenate %636, %635 in 1 : vector<16x29xf32>, vector<16x3xf32> -> vector<16x32xf32>
    %638 = vector.broadcast %584 : vector<1x32xf32> to vector<16x32xf32>
    %639 = arith.mulf %637, %638 : vector<16x32xf32>
    %c6_274 = arith.constant 6 : index
    %c0_275 = arith.constant 0 : index
    %c0_276 = arith.constant 0 : index
    %640 = vector.load %arg13[%c6_274, %c0_275, %c0_276] : memref<9x16x16xf32, #tpu.memory_space<vmem>>, vector<1x16x16xf32>
    %641 = vector.shape_cast %640 : vector<1x16x16xf32> to vector<16x16xf32>
    %cst_277 = arith.constant dense<0.000000e+00> : vector<16x32xf32>
    %642 = tpu.matmul %641, %639, %cst_277 {dimension_numbers = #tpu.dot_dimension_numbers<[1], [0], [0], [1], [0, 0, 1, 1], [], []>} : vector<16x16xf32>, vector<16x32xf32>, vector<16x32xf32> -> vector<16x32xf32>
    %643 = arith.addf %634, %642 : vector<16x32xf32>
    %cst_278 = arith.constant 0.000000e+00 : f32
    %644 = vector.broadcast %cst_278 : f32 to vector<16x4xf32>
    %645 = vector.extract_strided_slice %558 {offsets = [0, 4], sizes = [16, 28], strides = [1, 1]} : vector<16x32xf32> to vector<16x28xf32>
    %646 = tpu.concatenate %645, %644 in 1 : vector<16x28xf32>, vector<16x4xf32> -> vector<16x32xf32>
    %647 = vector.broadcast %573 : vector<1x32xf32> to vector<16x32xf32>
    %648 = arith.mulf %646, %647 : vector<16x32xf32>
    %c7_279 = arith.constant 7 : index
    %c0_280 = arith.constant 0 : index
    %c0_281 = arith.constant 0 : index
    %649 = vector.load %arg13[%c7_279, %c0_280, %c0_281] : memref<9x16x16xf32, #tpu.memory_space<vmem>>, vector<1x16x16xf32>
    %650 = vector.shape_cast %649 : vector<1x16x16xf32> to vector<16x16xf32>
    %cst_282 = arith.constant dense<0.000000e+00> : vector<16x32xf32>
    %651 = tpu.matmul %650, %648, %cst_282 {dimension_numbers = #tpu.dot_dimension_numbers<[1], [0], [0], [1], [0, 0, 1, 1], [], []>} : vector<16x16xf32>, vector<16x32xf32>, vector<16x32xf32> -> vector<16x32xf32>
    %652 = arith.addf %643, %651 : vector<16x32xf32>
    %cst_283 = arith.constant 0.000000e+00 : f32
    %653 = vector.broadcast %cst_283 : f32 to vector<16x5xf32>
    %654 = vector.extract_strided_slice %558 {offsets = [0, 5], sizes = [16, 27], strides = [1, 1]} : vector<16x32xf32> to vector<16x27xf32>
    %655 = tpu.concatenate %654, %653 in 1 : vector<16x27xf32>, vector<16x5xf32> -> vector<16x32xf32>
    %656 = vector.broadcast %585 : vector<1x32xf32> to vector<16x32xf32>
    %657 = arith.mulf %655, %656 : vector<16x32xf32>
    %c8_284 = arith.constant 8 : index
    %c0_285 = arith.constant 0 : index
    %c0_286 = arith.constant 0 : index
    %658 = vector.load %arg13[%c8_284, %c0_285, %c0_286] : memref<9x16x16xf32, #tpu.memory_space<vmem>>, vector<1x16x16xf32>
    %659 = vector.shape_cast %658 : vector<1x16x16xf32> to vector<16x16xf32>
    %cst_287 = arith.constant dense<0.000000e+00> : vector<16x32xf32>
    %660 = tpu.matmul %659, %657, %cst_287 {dimension_numbers = #tpu.dot_dimension_numbers<[1], [0], [0], [1], [0, 0, 1, 1], [], []>} : vector<16x16xf32>, vector<16x32xf32>, vector<16x32xf32> -> vector<16x32xf32>
    %661 = arith.addf %652, %660 : vector<16x32xf32>
    %662 = vector.extract_strided_slice %586 {offsets = [0, 0], sizes = [16, 1], strides = [1, 1]} : vector<16x4xf32> to vector<16x1xf32>
    %663 = vector.broadcast %662 : vector<16x1xf32> to vector<16x32xf32>
    %664 = arith.addf %661, %663 : vector<16x32xf32>
    %665 = vector.extract_strided_slice %586 {offsets = [0, 1], sizes = [16, 1], strides = [1, 1]} : vector<16x4xf32> to vector<16x1xf32>
    %666 = vector.extract_strided_slice %586 {offsets = [0, 2], sizes = [16, 1], strides = [1, 1]} : vector<16x4xf32> to vector<16x1xf32>
    %cst_288 = arith.constant dense<0.000000e+00> : vector<16xf32>
    %667 = vector.multi_reduction <add>, %664, %cst_288 [1] : vector<16x32xf32> to vector<16xf32>
    %668 = vector.shape_cast %667 : vector<16xf32> to vector<16x1xf32>
    %cst_289 = arith.constant 3.200000e+01 : f32
    %669 = vector.broadcast %cst_289 : f32 to vector<16x1xf32>
    %670 = arith.divf %668, %669 : vector<16x1xf32>
    %671 = vector.broadcast %670 : vector<16x1xf32> to vector<16x32xf32>
    %672 = arith.subf %664, %671 : vector<16x32xf32>
    %673 = arith.mulf %672, %672 : vector<16x32xf32>
    %cst_290 = arith.constant dense<0.000000e+00> : vector<16xf32>
    %674 = vector.multi_reduction <add>, %673, %cst_290 [1] : vector<16x32xf32> to vector<16xf32>
    %675 = vector.shape_cast %674 : vector<16xf32> to vector<16x1xf32>
    %cst_291 = arith.constant 3.200000e+01 : f32
    %676 = vector.broadcast %cst_291 : f32 to vector<16x1xf32>
    %677 = arith.divf %675, %676 : vector<16x1xf32>
    %678 = vector.broadcast %670 : vector<16x1xf32> to vector<16x32xf32>
    %679 = arith.subf %664, %678 : vector<16x32xf32>
    %cst_292 = arith.constant 9.99999974E-6 : f32
    %680 = vector.broadcast %cst_292 : f32 to vector<16x1xf32>
    %681 = arith.addf %677, %680 : vector<16x1xf32>
    %682 = math.rsqrt %681 : vector<16x1xf32>
    %683 = arith.mulf %665, %682 : vector<16x1xf32>
    %684 = vector.broadcast %683 : vector<16x1xf32> to vector<16x32xf32>
    %685 = arith.mulf %679, %684 : vector<16x32xf32>
    %686 = vector.broadcast %666 : vector<16x1xf32> to vector<16x32xf32>
    %687 = arith.addf %685, %686 : vector<16x32xf32>
    %cst_293 = arith.constant 0.000000e+00 : f32
    %688 = vector.broadcast %cst_293 : f32 to vector<16x32xf32>
    %689 = arith.cmpf oge, %687, %688 : vector<16x32xf32>
    %cst_294 = arith.constant 2.000000e-01 : f32
    %690 = vector.broadcast %cst_294 : f32 to vector<16x32xf32>
    %691 = arith.mulf %690, %687 : vector<16x32xf32>
    %692 = arith.select %689, %687, %691 : vector<16x32xi1>, vector<16x32xf32>
    %c0_295 = arith.constant 0 : index
    %c0_296 = arith.constant 0 : index
    %c0_297 = arith.constant 0 : index
    %693 = vector.load %arg15[%c0_295, %c0_296, %c0_297] : memref<16x16x16xf32, #tpu.memory_space<vmem>>, vector<16x16x16xf32>
    %694 = vector.extract_strided_slice %692 {offsets = [0, 0], sizes = [16, 16], strides = [1, 1]} : vector<16x32xf32> to vector<16x16xf32>
    %695 = vector.shape_cast %694 : vector<16x16xf32> to vector<1x16x16xf32>
    %696 = vector.broadcast %695 : vector<1x16x16xf32> to vector<16x16x16xf32>
    %697 = arith.mulf %693, %696 : vector<16x16x16xf32>
    %cst_298 = arith.constant dense<0.000000e+00> : vector<16x16xf32>
    %698 = vector.multi_reduction <add>, %697, %cst_298 [2] : vector<16x16x16xf32> to vector<16x16xf32>
    %cst_299 = arith.constant dense<0.000000e+00> : vector<16xf32>
    %699 = vector.multi_reduction <add>, %698, %cst_299 [1] : vector<16x16xf32> to vector<16xf32>
    %700 = vector.shape_cast %699 : vector<16xf32> to vector<16x1xf32>
    %701 = vector.extract_strided_slice %692 {offsets = [0, 16], sizes = [16, 16], strides = [1, 1]} : vector<16x32xf32> to vector<16x16xf32>
    %702 = vector.shape_cast %701 : vector<16x16xf32> to vector<1x16x16xf32>
    %703 = vector.broadcast %702 : vector<1x16x16xf32> to vector<16x16x16xf32>
    %704 = arith.mulf %693, %703 : vector<16x16x16xf32>
    %cst_300 = arith.constant dense<0.000000e+00> : vector<16x16xf32>
    %705 = vector.multi_reduction <add>, %704, %cst_300 [2] : vector<16x16x16xf32> to vector<16x16xf32>
    %cst_301 = arith.constant dense<0.000000e+00> : vector<16xf32>
    %706 = vector.multi_reduction <add>, %705, %cst_301 [1] : vector<16x16xf32> to vector<16xf32>
    %707 = vector.shape_cast %706 : vector<16xf32> to vector<16x1xf32>
    %708 = tpu.concatenate %700, %707 in 1 : vector<16x1xf32>, vector<16x1xf32> -> vector<16x2xf32>
    %709 = vector.extract_strided_slice %586 {offsets = [0, 3], sizes = [16, 1], strides = [1, 1]} : vector<16x4xf32> to vector<16x1xf32>
    %710 = vector.broadcast %709 : vector<16x1xf32> to vector<16x2xf32>
    %711 = arith.addf %708, %710 : vector<16x2xf32>
    %cst_302 = arith.constant 0.000000e+00 : f32
    %712 = vector.broadcast %cst_302 : f32 to vector<16x2xf32>
    %713 = arith.maximumf %711, %712 : vector<16x2xf32>
    %c0_303 = arith.constant 0 : index
    %c0_304 = arith.constant 0 : index
    %714 = vector.load %arg17[%c0_303, %c0_304] : memref<3x3xf32, #tpu.memory_space<vmem>>, vector<3x3xf32>
    %c0_305 = arith.constant 0 : index
    %c0_306 = arith.constant 0 : index
    %715 = vector.load %arg16[%c0_305, %c0_306] : memref<3x16xf32, #tpu.memory_space<vmem>>, vector<3x16xf32>
    %cst_307 = arith.constant dense<0.000000e+00> : vector<3x2xf32>
    %716 = tpu.matmul %715, %713, %cst_307 {dimension_numbers = #tpu.dot_dimension_numbers<[1], [0], [0], [1], [0, 0, 1, 1], [], []>} : vector<3x16xf32>, vector<16x2xf32>, vector<3x2xf32> -> vector<3x2xf32>
    %717 = vector.extract_strided_slice %714 {offsets = [0, 0], sizes = [3, 1], strides = [1, 1]} : vector<3x3xf32> to vector<3x1xf32>
    %718 = vector.broadcast %717 : vector<3x1xf32> to vector<3x2xf32>
    %719 = arith.addf %716, %718 : vector<3x2xf32>
    %720 = vector.extract_strided_slice %714 {offsets = [0, 1], sizes = [3, 1], strides = [1, 1]} : vector<3x3xf32> to vector<3x1xf32>
    %721 = vector.broadcast %720 : vector<3x1xf32> to vector<3x2xf32>
    %722 = arith.mulf %719, %721 : vector<3x2xf32>
    %723 = vector.extract_strided_slice %714 {offsets = [0, 2], sizes = [3, 1], strides = [1, 1]} : vector<3x3xf32> to vector<3x1xf32>
    %724 = vector.broadcast %723 : vector<3x1xf32> to vector<3x2xf32>
    %725 = arith.addf %722, %724 : vector<3x2xf32>
    %c0_308 = arith.constant 0 : index
    %c0_309 = arith.constant 0 : index
    %726 = vector.load %arg18[%c0_308, %c0_309] : memref<3x2xf32, #tpu.memory_space<vmem>>, vector<3x2xf32>
    tpu.vector_store %arg18[%c0_308, %c0_309], %725 {strides = array<i32>} : memref<3x2xf32, #tpu.memory_space<vmem>>, vector<3x2xf32>,
    return
  }
  func.func @transform_0(%arg0: i32) -> (i32, i32) {
    %c0_i32 = arith.constant 0 : i32
    %c0_i32_0 = arith.constant 0 : i32
    %c0_i32_1 = arith.constant 0 : i32
    return %c0_i32, %c0_i32_0 : i32, i32
  }
  func.func @transform_1(%arg0: i32) -> (i32, i32) {
    %c0_i32 = arith.constant 0 : i32
    %c0_i32_0 = arith.constant 0 : i32
    %c0_i32_1 = arith.constant 0 : i32
    return %c0_i32, %c0_i32_0 : i32, i32
  }
  func.func @transform_2(%arg0: i32) -> (i32, i32, i32) {
    %c0_i32 = arith.constant 0 : i32
    %c0_i32_0 = arith.constant 0 : i32
    %c0_i32_1 = arith.constant 0 : i32
    %c0_i32_2 = arith.constant 0 : i32
    return %c0_i32, %c0_i32_0, %c0_i32_1 : i32, i32, i32
  }
  func.func @transform_3(%arg0: i32) -> (i32, i32) {
    %c0_i32 = arith.constant 0 : i32
    %c0_i32_0 = arith.constant 0 : i32
    %c0_i32_1 = arith.constant 0 : i32
    return %c0_i32, %c0_i32_0 : i32, i32
  }
  func.func @transform_4(%arg0: i32) -> (i32, i32, i32) {
    %c0_i32 = arith.constant 0 : i32
    %c0_i32_0 = arith.constant 0 : i32
    %c0_i32_1 = arith.constant 0 : i32
    %c0_i32_2 = arith.constant 0 : i32
    return %c0_i32, %c0_i32_0, %c0_i32_1 : i32, i32, i32
  }
  func.func @transform_5(%arg0: i32) -> (i32, i32) {
    %c0_i32 = arith.constant 0 : i32
    %c0_i32_0 = arith.constant 0 : i32
    %c0_i32_1 = arith.constant 0 : i32
    return %c0_i32, %c0_i32_0 : i32, i32
  }
  func.func @transform_6(%arg0: i32) -> (i32, i32) {
    %c0_i32 = arith.constant 0 : i32
    %c0_i32_0 = arith.constant 0 : i32
    %c0_i32_1 = arith.constant 0 : i32
    return %c0_i32, %c0_i32_0 : i32, i32
  }
  func.func @transform_7(%arg0: i32) -> (i32, i32, i32) {
    %c0_i32 = arith.constant 0 : i32
    %c0_i32_0 = arith.constant 0 : i32
    %c0_i32_1 = arith.constant 0 : i32
    %c0_i32_2 = arith.constant 0 : i32
    return %c0_i32, %c0_i32_0, %c0_i32_1 : i32, i32, i32
  }
  func.func @transform_8(%arg0: i32) -> (i32, i32) {
    %c0_i32 = arith.constant 0 : i32
    %c0_i32_0 = arith.constant 0 : i32
    %c0_i32_1 = arith.constant 0 : i32
    return %c0_i32, %c0_i32_0 : i32, i32
  }
  func.func @transform_9(%arg0: i32) -> (i32, i32, i32) {
    %c0_i32 = arith.constant 0 : i32
    %c0_i32_0 = arith.constant 0 : i32
    %c0_i32_1 = arith.constant 0 : i32
    %c0_i32_2 = arith.constant 0 : i32
    return %c0_i32, %c0_i32_0, %c0_i32_1 : i32, i32, i32
  }
  func.func @transform_10(%arg0: i32) -> (i32, i32) {
    %c0_i32 = arith.constant 0 : i32
    %c0_i32_0 = arith.constant 0 : i32
    %c0_i32_1 = arith.constant 0 : i32
    return %c0_i32, %c0_i32_0 : i32, i32
  }
  func.func @transform_11(%arg0: i32) -> (i32, i32) {
    %c0_i32 = arith.constant 0 : i32
    %c0_i32_0 = arith.constant 0 : i32
    %c0_i32_1 = arith.constant 0 : i32
    return %c0_i32, %c0_i32_0 : i32, i32
  }
  func.func @transform_12(%arg0: i32) -> (i32, i32, i32) {
    %c0_i32 = arith.constant 0 : i32
    %c0_i32_0 = arith.constant 0 : i32
    %c0_i32_1 = arith.constant 0 : i32
    %c0_i32_2 = arith.constant 0 : i32
    return %c0_i32, %c0_i32_0, %c0_i32_1 : i32, i32, i32
  }
  func.func @transform_13(%arg0: i32) -> (i32, i32) {
    %c0_i32 = arith.constant 0 : i32
    %c0_i32_0 = arith.constant 0 : i32
    %c0_i32_1 = arith.constant 0 : i32
    return %c0_i32, %c0_i32_0 : i32, i32
  }
  func.func @transform_14(%arg0: i32) -> (i32, i32, i32) {
    %c0_i32 = arith.constant 0 : i32
    %c0_i32_0 = arith.constant 0 : i32
    %c0_i32_1 = arith.constant 0 : i32
    %c0_i32_2 = arith.constant 0 : i32
    return %c0_i32, %c0_i32_0, %c0_i32_1 : i32, i32, i32
  }
  func.func @transform_15(%arg0: i32) -> (i32, i32) {
    %c0_i32 = arith.constant 0 : i32
    %c0_i32_0 = arith.constant 0 : i32
    %c0_i32_1 = arith.constant 0 : i32
    return %c0_i32, %c0_i32_0 : i32, i32
  }
  func.func @transform_16(%arg0: i32) -> (i32, i32) {
    %c0_i32 = arith.constant 0 : i32
    %c0_i32_0 = arith.constant 0 : i32
    %c0_i32_1 = arith.constant 0 : i32
    return %c0_i32, %c0_i32_0 : i32, i32
  }
  func.func @transform_17(%arg0: i32) -> (i32, i32) {
    %c0_i32 = arith.constant 0 : i32
    %c0_i32_0 = arith.constant 0 : i32
    %c0_i32_1 = arith.constant 0 : i32
    return %c0_i32, %c0_i32_0 : i32, i32
  }
}

</mosaic_0001>

<bundles_post_ra>
// kernel: stylegan_inspired_net.1
= control target key start
LH: loop header
LB: loop body
LE: loop exit
PB: predicated region body
PF: predicated region fallthrough
CT: control target
= control target key end

     0   :  { %s6917_s0 = inlined_call_operand.vmem [shape: f32[1,512], index: 0, kind: input, shape index: {}]   ;;  %s6918_s1 = inlined_call_operand.vmem [shape: f32[4,2], index: 1, kind: input, shape index: {}]   ;;  %s6919_s2 = inlined_call_operand.vmem [shape: f32[9,4,4], index: 2, kind: input, shape index: {}]   ;;  %s6920_s3 = inlined_call_operand.vmem [shape: f32[4,3], index: 3, kind: input, shape index: {}]   ;;  %s6921_s4 = inlined_call_operand.vmem [shape: f32[9,8,4], index: 4, kind: input, shape index: {}]   ;;  %s6922_s5 = inlined_call_operand.vmem [shape: f32[8,3], index: 5, kind: input, shape index: {}]   ;;  %s6923_s6 = inlined_call_operand.hbm [shape: f32[512,128], index: 6, kind: input, shape index: {}]   ;;  %s6924_s7 = inlined_call_operand.vmem [shape: f32[9,8,8], index: 7, kind: input, shape index: {}]   ;;  %s6925_s8 = inlined_call_operand.vmem [shape: f32[8,3], index: 8, kind: input, shape index: {}]   ;;  %s6926_s9 = inlined_call_operand.vmem [shape: f32[9,16,8], index: 9, kind: input, shape index: {}]   ;;  %s6927_s10 = inlined_call_operand.vmem [shape: f32[16,3], index: 10, kind: input, shape index: {}]   ;;  %s6928_s11 = inlined_call_operand.hbm [shape: f32[128,32], index: 11, kind: input, shape index: {}]   ;;  %s6929_s12 = inlined_call_operand.hbm [shape: f32[9,16,16], index: 12, kind: input, shape index: {}]   ;;  %s6930_s13 = inlined_call_operand.vmem [shape: f32[16,4], index: 13, kind: input, shape index: {}]   ;;  %s6931_s14 = inlined_call_operand.vmem [shape: f32[16,16,16], index: 14, kind: input, shape index: {}]   ;;  %s6932_s15 = inlined_call_operand.vmem [shape: f32[3,16], index: 15, kind: input, shape index: {}]   ;;  %s6933_s16 = inlined_call_operand.vmem [shape: f32[3,3], index: 16, kind: input, shape index: {}]   ;;  %s6934_s17 = inlined_call_operand.vmem [shape: f32[3,2], index: 17, kind: output, shape index: {}]  }
   0x1   :  { %6961 = sst [smem:[#allocation27_spill]] %s6917_s0 }
   0x2   :  { %6962 = sst [smem:[#allocation28_spill]] %s6918_s1 }
   0x3   :  { %22 = vsyncpa [#allocation3], 0 }
   0x4   :  { %23 = vsyncpa [#allocation5], 0  ;;  %s61_s26 = sshll.u32 %s6928_s11, 4  ;;  %s5058_s27 = smov [#allocation4]   ;;  %s62_s26 = int_to_ptr.hbm [resolvable:$true] %s61_s26 }
   0x5   :  { %s63_s28 = sshll.u32 %s5058_s27, 4  ;;  %s40_s30 = sshll.u32 %s6923_s6, 4  ;;  %s64_s28 = int_to_ptr.vmem [resolvable:$true] %s63_s28  ;;  %s41_s30 = int_to_ptr.hbm [resolvable:$true] %s40_s30 }
   0x6   :  { %s5059_s18 = smov 128   ;;  %s5060_s19 = smov 8  }
   0x7   :  { %69 = dma.hbm_to_vmem [thread:$0]  %s62_s26, 2048, %s64_s28, [#allocation5], %s5059_s18, %s5059_s18, %s5060_s19  }
   0x8   :  { %s5061_s1 = smov [#allocation2]   ;;  %s74_s23 = sshll.u32 %s6929_s12, 4  ;;  %s75_s23 = int_to_ptr.hbm [resolvable:$true] %s74_s23 }
   0x9   :  { %s42_s20 = sshll.u32 %s5061_s1, 4  ;;  %s5062_s11 = smov [#allocation6]   ;;  %s43_s20 = int_to_ptr.vmem [resolvable:$true] %s42_s20 }
   0xa   :  { %48 = dma.hbm_to_vmem [thread:$0]  %s41_s30, 8192, %s43_s20, [#allocation3], %s5059_s18, %s5059_s18, %s5060_s19  }
   0xb   :  { %s76_s24 = sshll.u32 %s5062_s11, 4  ;;  %s77_s24 = int_to_ptr.vmem [resolvable:$true] %s76_s24 }
   0xc   :  { %82 = dma.hbm_to_vmem [thread:$0]  %s75_s23, 2304, %s77_s24, [#allocation5], %s5059_s18, %s5059_s18, %s5060_s19  }
   0xd   :  { %5054 = dma.done.wait [#allocation3], 8192  }
   0xe   :  { %5055 = vsyncadd [#allocation3], 4294959104 }
   0xf   :  { %5056 = dma.done.wait [#allocation5], 4352  }
  0x10   :  { %5057 = vsyncadd [#allocation5], 4294962944  ;;  %v6937_v0 = vmov 0   ;;  %v6939_v1 = vmov 1   ;;  %s6963_s25 = sld [smem:[#allocation28_spill]]  ;;  %s5065_s29 = smov 17   ;;  %v137_v24 = vlaneseq }
  0x11   :  { %4932 = vset.pattern.permute.xlu0 %v6937_v0  ;;  %4934 = vset.pattern.permute.xlu2 %v6937_v0  ;;  %s6964_s28 = sld [smem:[#allocation27_spill]]  ;;  %s5066_s0 = smov 16   ;;  %vm253_vm1 = vcmask 130048   ;;  %v6935_v29 = vmov 0.0   ;;  %vm272_vm2 = vcmask 1043456   ;;  %vm268_vm3 = vcmask 31744  }
  0x12   :  { %4947 = vset.pattern.permute.xlu1 %v6939_v1  ;;  %s5067_s30 = smov 15   ;;  %s5068_s18 = smov 1   ;;  %v5273_v25 = vand.u32 127, %v137_v24  ;;  %v4662_v35 = vld [vmem:[%s6919_s2 + $0x4] sm:$0xf]  ;;  %vm231_vm7 = vcmask 138240  }
  0x13   :  { %s5069_s1 = smov 127   ;;  %s5070_s20 = smov 113   ;;  %vm468_vm11 = vcmask 121856  }
  0x14   :  { %s5071_s21 = smov 112   ;;  %s5072_s22 = smov 111   ;;  %6965 = vst [vmem:[#allocation9_spill] sm:$0xff] %v5273_v25  ;;  %v146_v26 = vshra.s32 %v5273_v25, 4  ;;  %v5286_v33 = vadd.s32 128, %v5273_v25  ;;  %v5296_v37 = vadd.s32 384, %v5273_v25 }
  0x15   :  { %v140_v41 = vadd.s32 256, %v5273_v25  ;;  %s5081_s11 = smov 119   ;;  %s5086_s26 = smov 124  }
  0x16   :  { %v106_v2 = vld [vmem:[%s6963_s25] sm:$0xf]  ;;  %v5278_v28 = vand.u32 15, %v146_v26  ;;  %v147_v36 = vshra.s32 %v5286_v33, 4  ;;  %v149_v40 = vshra.s32 %v5296_v37, 4  ;;  %v145_v42 = vand.u32 15, %v5296_v37 }
  0x17   :  { %109 = vperm.xlu0 %4932, %v106_v2   ;;  %v103_v3 = vld [vmem:[%s6964_s28] sm:$0xf]  ;;  %v148_v44 = vshra.s32 %v140_v41, 4  ;;  %v144_v54 = vand.u32 15, %v140_v41  ;;  %v4679_v37 = vld [vmem:[%s6919_s2 + $0x8] sm:$0xf] }
  0x18   :  { %v4645_v4 = vadd.f32 -0.0048076925, %v103_v3  ;;  %vm154_vm0 = vcmp.ge.s32.totalorder %v5278_v28, 1  ;;  %v5298_v39 = vand.u32 15, %v147_v36  ;;  %v5304_v43 = vand.u32 15, %v149_v40  ;;  %s5085_s25 = smov 125  }
  0x19   :  { %v5282_v30 = vsel %vm154_vm0, 1.0, %v6935_v29  ;;  %vm181_vm6 = vcmp.ge.s32.totalorder %v145_v42, 1  ;;  %v5316_v51 = vand.u32 15, %v148_v44  ;;  %vm180_vm9 = vcmp.ge.s32.totalorder %v144_v54, 1 }
  0x1a   :  { %v105_v6 = vmul.f32 86.80735, %v4645_v4  ;;  %vm155_vm4 = vcmp.ge.s32.totalorder %v5298_v39, 1  ;;  %vm157_vm5 = vcmp.ge.s32.totalorder %v5304_v43, 1  ;;  %v5323_v53 = vsel %vm181_vm6, 1.0, %v6935_v29 }
  0x1b   :  { %v5307_v46 = vsel %vm155_vm4, 1.0, %v6935_v29  ;;  %v5320_v52 = vsel %vm157_vm5, 1.0, %v6935_v29  ;;  %vm156_vm8 = vcmp.ge.s32.totalorder %v5316_v51, 1  ;;  %vm192_vm10 = vcmp.le.s32.totalorder %v144_v54, 14 }
  0x1c   :  { %v114_v7 = vperm.slane %v105_v6, 1  ;;  %v116_v8 = vperm.slane %v105_v6, 3  ;;  %v113_v12 = vperm.slane %v105_v6, 0  ;;  %v115_v13 = vperm.slane %v105_v6, 2 }
  0x1d   :  { %v5331_v56 = vmul.f32 %v5323_v53, %v5320_v52  ;;  %v5335_v59 = vsel %vm156_vm8, 1.0, %v6935_v29  ;;  %v5342_v3 = vsel %vm180_vm9, 1.0, %v6935_v29  ;;  %v143_v6 = vand.u32 15, %v5286_v33 }
  0x1e   :  { %vm590_vm0 = vcmask 7168   ;;  %vm193_vm4 = vcmp.le.s32.totalorder %v145_v42, 14  ;;  %vm809_vm5 = vcmask 1039360   ;;  %vm168_vm6 = vcmp.le.s32.totalorder %v5316_v51, 14 }
  0x1f   :  { %4933 = vset.pattern.permute.xlu0 %v6939_v1  ;;  %6966 = vst [vmem:[#allocation10_spill] sm:$0xff] %v5331_v56  ;;  %vm179_vm13 = vcmp.ge.s32.totalorder %v143_v6, 1  ;;  %vm191_vm15 = vcmp.le.s32.totalorder %v143_v6, 14  ;;  %v5427_v54 = vsel %vm193_vm4, 1.0, %v6935_v29  ;;  %vm169_vm8 = vcmp.le.s32.totalorder %v5304_v43, 14 }
  0x20   :  { %126 = vperm.xlu0 %4933, %v106_v2   ;;  %v5385_v24 = vsel %vm191_vm15, 1.0, %v6935_v29  ;;  %vm931_vm9 = vcmask 924672  }
  0x28   :  { %4940 = vset.pattern.permute.xlu0 %v6937_v0 }
  0x89   :  { %v110_v5 = vpop.permute.xlu0 %109 }
  0x8a   :  { %v122_v9 = vmul.f32 %v114_v7, %v110_v5  ;;  %v124_v10 = vmul.f32 %v116_v8, %v110_v5  ;;  %v121_v18 = vmul.f32 %v113_v12, %v110_v5  ;;  %v123_v19 = vmul.f32 %v115_v13, %v110_v5 }
  0x8b   :  { %v5347_v5 = vsel %vm192_vm10, 1.0, %v6935_v29  ;;  %v142_v7 = vand.u32 15, %v5273_v25  ;;  %v5356_v8 = vmul.f32 %v5342_v3, %v5335_v59  ;;  %vm167_vm10 = vcmp.le.s32.totalorder %v5298_v39, 14 }
  0x8d   :  { %6967 = vst [vmem:[#allocation11_spill] sm:$0xff] %v5356_v8  ;;  %vm178_vm12 = vcmp.ge.s32.totalorder %v142_v7, 1  ;;  %vm190_vm14 = vcmp.le.s32.totalorder %v142_v7, 14 }
  0x92   :  { %v127_v11 = vpop.permute.xlu0 %126 }
  0x93   :  { %v130_v14 = vadd.f32 %v127_v11, %v122_v9  ;;  %v132_v15 = vadd.f32 %v127_v11, %v124_v10  ;;  %v129_v20 = vadd.f32 %v127_v11, %v121_v18  ;;  %v131_v21 = vadd.f32 %v127_v11, %v123_v19 }
  0x94   :  { %v5363_v10 = vmul.f32 %v5347_v5, %v5335_v59  ;;  %v5374_v18 = vsel %vm178_vm12, 1.0, %v6935_v29  ;;  %v5377_v19 = vsel %vm179_vm13, 1.0, %v6935_v29  ;;  %vm1053_vm12 = vcmask 916480  }
  0x95   :  { %v5203_v16 = vmax.f32 %v130_v14, 0.0  ;;  %v5205_v17 = vmax.f32 %v132_v15, 0.0  ;;  %v5213_v22 = vmax.f32 %v129_v20, 0.0  ;;  %v5215_v23 = vmax.f32 %v131_v21, 0.0  ;;  %v244_v15 = vld [vmem:[%s6919_s2] sm:$0xf] }
  0x96   :  { %6968 = vst [vmem:[#allocation12_spill] sm:$0xff] %v5363_v10  ;;  %v5382_v21 = vsel %vm190_vm14, 1.0, %v6935_v29  ;;  %vm166_vm13 = vcmp.le.s32.totalorder %v5278_v28, 14  ;;  %vm1175_vm14 = vcmask 908288  }
  0x97   :  { %229 = vrot.lane.b32.xlu0 %v5205_v17, %s5065_s29  ;;  %251 = vrot.lane.b32.xlu2 %v5205_v17, %s5066_s0  ;;  %v5400_v33 = vmul.f32 %v5382_v21, %v5282_v30  ;;  %v5530_v28 = vsel %vm166_vm13, 1.0, %v6935_v29 }
  0x98   :  { %247 = vrot.lane.b32.xlu1 %v5203_v16, %s5066_s0  ;;  %6977 = vst [vmem:[#allocation21_spill] sm:$0xff] %v5530_v28 }
  0x99   :  { %6971 = vst [vmem:[#allocation15_spill] sm:$0xff] %v5400_v33 }
  0x9f   :  { %464 = vrot.lane.b32.xlu0 %v5215_v23, %s5067_s30  ;;  %245 = vrot.lane.b32.xlu2 %v5213_v22, %s5066_s0 }
  0xa0   :  { %249 = vrot.lane.b32.xlu1 %v5215_v23, %s5066_s0 }
  0xa7   :  { %584 = vrot.lane.b32.xlu0 %v5203_v16, %s5068_s18  ;;  %227 = vrot.lane.b32.xlu2 %v5215_v23, %s5065_s29 }
  0xa8   :  { %225 = vrot.lane.b32.xlu1 %v5203_v16, %s5065_s29 }
  0xaf   :  { %582 = vrot.lane.b32.xlu0 %v5213_v22, %s5068_s18  ;;  %462 = vrot.lane.b32.xlu2 %v5203_v16, %s5067_s30 }
  0xb0   :  { %223 = vrot.lane.b32.xlu1 %v5213_v22, %s5065_s29 }
  0xb7   :  { %801 = vrot.lane.b32.xlu0 %v5213_v22, %s5069_s1  ;;  %460 = vrot.lane.b32.xlu2 %v5213_v22, %s5067_s30 }
  0xb8   :  { %466 = vrot.lane.b32.xlu1 %v5205_v17, %s5067_s30 }
  0xbf   :  { %929 = vrot.lane.b32.xlu0 %v5205_v17, %s5070_s20  ;;  %588 = vrot.lane.b32.xlu2 %v5205_v17, %s5068_s18 }
  0xc0   :  { %586 = vrot.lane.b32.xlu1 %v5215_v23, %s5068_s18 }
  0xc7   :  { %1049 = vrot.lane.b32.xlu0 %v5215_v23, %s5071_s21  ;;  %807 = vrot.lane.b32.xlu2 %v5205_v17, %s5069_s1 }
  0xc8   :  { %805 = vrot.lane.b32.xlu1 %v5215_v23, %s5069_s1 }
  0xcf   :  { %1047 = vrot.lane.b32.xlu0 %v5203_v16, %s5071_s21  ;;  %927 = vrot.lane.b32.xlu2 %v5215_v23, %s5070_s20 }
  0xd0   :  { %803 = vrot.lane.b32.xlu1 %v5203_v16, %s5069_s1 }
  0xd7   :  { %1167 = vrot.lane.b32.xlu0 %v5213_v22, %s5072_s22  ;;  %925 = vrot.lane.b32.xlu2 %v5203_v16, %s5070_s20 }
  0xd8   :  { %923 = vrot.lane.b32.xlu1 %v5213_v22, %s5070_s20 }
  0xdf   :  { %1045 = vrot.lane.b32.xlu2 %v5213_v22, %s5071_s21 }
  0xe0   :  { %1051 = vrot.lane.b32.xlu1 %v5205_v17, %s5071_s21 }
  0xe7   :  { %1173 = vrot.lane.b32.xlu2 %v5205_v17, %s5072_s22 }
  0xe8   :  { %1171 = vrot.lane.b32.xlu1 %v5215_v23, %s5072_s22 }
  0xf0   :  { %1169 = vrot.lane.b32.xlu1 %v5203_v16, %s5072_s22 }
  0xf1   :  { %v252_v27 = vpop.permute.xlu2 %251 }
  0xf9   :  { %v246_v31 = vpop.permute.xlu2 %245 }
  0xfa   :  { %v261_v32 = vsel %vm253_vm1, 0.0, %v246_v31 }
  0xfb   :  { %v262_v34 = vmul.f32 %v5282_v30, %v261_v32 }
  0xfd   :  { %4663 = vmatpush.msk.msra.mxu0 %vm272_vm2, %v262_v34  ;;  %v5404_v34 = vmul.f32 %v5385_v24, %v5307_v46 }
  0xfe   :  { %4664 = vmatmul.msk.f32.vlgmr.msra.gmra.mxu0 %vm268_vm3, %v4662_v35 }
  0xff   :  { %6972 = vst [vmem:[#allocation16_spill] sm:$0xff] %v5404_v34 }
 0x101   :  { %v228_v38 = vpop.permute.xlu2 %227 }
 0x109   :  { %v230_v45 = vpop.permute.xlu0 %229  ;;  %v5309_v48 = vpop.permute.xlu2 %462 }
 0x10a   :  { %v248_v47 = vpop.permute.xlu1 %247  ;;  %v234_v58 = vsel %vm231_vm7, %v228_v38, %v230_v45 }
 0x10b   :  { %v254_v49 = vsel %vm253_vm1, %v246_v31, %v248_v47  ;;  %v243_v4 = vmul.f32 %v234_v58, %v5331_v56  ;;  %v5395_v31 = vmul.f32 %v5377_v19, %v5307_v46  ;;  %v5436_v58 = vmul.f32 %v5427_v54, %v5320_v52 }
 0x10c   :  { %v263_v50 = vmul.f32 %v5307_v46, %v254_v49 }
 0x10d   :  { %6970 = vst [vmem:[#allocation14_spill] sm:$0xff] %v5395_v31 }
 0x10e   :  { %4665 = vmatpush.msk.msra.mxu1 %vm272_vm2, %v263_v50  ;;  %6973 = vst [vmem:[#allocation17_spill] sm:$0xff] %v5436_v58 }
 0x10f   :  { %4666 = vmatmul.msk.f32.vlgmr.msra.gmra.mxu1 %vm268_vm3, %v4662_v35 }
 0x111   :  { %v5327_v55 = vpop.permute.xlu0 %464  ;;  %v461_v63 = vpop.permute.xlu2 %460 }
 0x112   :  { %v250_v57 = vpop.permute.xlu1 %249  ;;  %v470_v12 = vsel %vm468_vm11, %v5309_v48, %v5327_v55  ;;  %v469_v36 = vsel %vm468_vm11, %v461_v63, %v5309_v48 }
 0x113   :  { %v255_v60 = vsel %vm253_vm1, %v248_v47, %v250_v57  ;;  %v256_v62 = vsel %vm253_vm1, %v250_v57, %v252_v27  ;;  %v479_v20 = vmul.f32 %v470_v12, %v5363_v10  ;;  %v5391_v27 = vmul.f32 %v5374_v18, %v5282_v30 }
 0x114   :  { %v264_v61 = vmul.f32 %v5335_v59, %v255_v60  ;;  %v265_v2 = vmul.f32 %v5320_v52, %v256_v62  ;;  %v478_v50 = vmul.f32 %v469_v36, %v5404_v34  ;;  %v4697_v36 = vld [vmem:[%s6919_s2 + $0x10] sm:$0xf] }
 0x115   :  { %6969 = vst [vmem:[#allocation13_spill] sm:$0xff] %v5391_v27 }
 0x116   :  { %4667 = vmatpush.msk.msra.mxu2 %vm272_vm2, %v264_v61  ;;  %4669 = vmatpush.msk.msra.mxu3 %vm272_vm2, %v265_v2 }
 0x117   :  { %4668 = vmatmul.msk.f32.vlgmr.msra.gmra.mxu2 %vm268_vm3, %v4662_v35  ;;  %4670 = vmatmul.msk.f32.vlgmr.msra.gmra.mxu3 %vm268_vm3, %v4662_v35 }
 0x118   :  { %4677 = vmatpush.msk.msrb.mxu3 %vm272_vm2, %v243_v4 }
 0x119   :  { %v5358_v9 = vpop.permute.xlu0 %584  ;;  %v589_v26 = vpop.permute.xlu2 %588 }
 0x11a   :  { %v226_v11 = vpop.permute.xlu1 %225 }
 0x11b   :  { %v233_v13 = vsel %vm231_vm7, %v226_v11, %v228_v38  ;;  %v476_v38 = vsel %vm468_vm11, 0.0, %v461_v63 }
 0x11c   :  { %v242_v14 = vmul.f32 %v233_v13, %v5356_v8  ;;  %v477_v48 = vmul.f32 %v476_v38, %v5400_v33 }
 0x11e   :  { %4675 = vmatpush.msk.msrb.mxu2 %vm272_vm2, %v242_v14 }
 0x11f   :  { %4676 = vmatmul.msk.f32.vlgmr.msrb.gmra.mxu2 %vm268_vm3, %v244_v15  ;;  %4678 = vmatmul.msk.f32.vlgmr.msrb.gmra.mxu3 %vm268_vm3, %v244_v15 }
 0x120   :  { %4684 = vmatpush.msk.msra.mxu2 %vm272_vm2, %v479_v20 }
 0x121   :  { %v583_v32 = vpop.permute.xlu0 %582  ;;  %v808_v60 = vpop.permute.xlu2 %807 }
 0x122   :  { %v224_v35 = vpop.permute.xlu1 %223  ;;  %v598_v44 = vsel %vm590_vm0, 0.0, %v583_v32  ;;  %v591_v49 = vsel %vm590_vm0, %v583_v32, %v5358_v9  ;;  %v817_v14 = vsel %vm809_vm5, %v808_v60, 0.0 }
 0x123   :  { %v232_v40 = vsel %vm231_vm7, %v224_v35, %v226_v11  ;;  %v239_v41 = vsel %vm231_vm7, 0.0, %v224_v35  ;;  %v599_v42 = vmul.f32 %v5374_v18, %v598_v44  ;;  %v600_v57 = vmul.f32 %v5377_v19, %v591_v49 }
 0x124   :  { %v240_v45 = vmul.f32 %v239_v41, %v5391_v27  ;;  %v241_v47 = vmul.f32 %v232_v40, %v5395_v31  ;;  %v5505_v44 = vsel %vm167_vm10, 1.0, %v6935_v29 }
 0x126   :  { %4671 = vmatpush.msk.msrb.mxu0 %vm272_vm2, %v240_v45  ;;  %4673 = vmatpush.msk.msrb.mxu1 %vm272_vm2, %v241_v47  ;;  %v5513_v47 = vmul.f32 %v5377_v19, %v5505_v44 }
 0x127   :  { %4672 = vmatmul.msk.f32.vlgmr.msrb.gmra.mxu0 %vm268_vm3, %v244_v15  ;;  %4674 = vmatmul.msk.f32.vlgmr.msrb.gmra.mxu1 %vm268_vm3, %v244_v15  ;;  %v5472_v15 = vsel %vm169_vm8, 1.0, %v6935_v29 }
 0x128   :  { %4680 = vmatpush.msk.msra.mxu0 %vm272_vm2, %v477_v48  ;;  %4682 = vmatpush.msk.msra.mxu1 %vm272_vm2, %v478_v50  ;;  %6976 = vst [vmem:[#allocation20_spill] sm:$0xff] %v5513_v47 }
 0x129   :  { %4685 = vmatmul.msk.f32.vlgmr.msra.gmra.mxu2 %vm268_vm3, %v4679_v37  ;;  %v802_v61 = vpop.permute.xlu0 %801 }
 0x12a   :  { %4689 = vmatpush.msk.msrb.mxu0 %vm272_vm2, %v599_v42  ;;  %4691 = vmatpush.msk.msrb.mxu1 %vm272_vm2, %v600_v57  ;;  %v467_v62 = vpop.permute.xlu1 %466  ;;  %v4706_v57 = vld [vmem:[%s6919_s2 + $0x14] sm:$0xf] }
 0x12b   :  { %v471_v63 = vsel %vm468_vm11, %v5327_v55, %v467_v62  ;;  %v928_v55 = vpop.permute.xlu2 %927 }
 0x12c   :  { %v480_v2 = vmul.f32 %v471_v63, %v5436_v58  ;;  %v5537_v63 = vld [vmem:[%s6920_s3] sm:$0xf]  ;;  %s5084_s3 = smov 5  }
 0x12d   :  { %1291 = vperm.xlu2 %4934, %v5537_v63  }
 0x12e   :  { %4686 = vmatpush.msk.msra.mxu3 %vm272_vm2, %v480_v2 }
 0x12f   :  { %4681 = vmatmul.msk.f32.vlgmr.msra.gmra.mxu0 %vm268_vm3, %v4679_v37  ;;  %4683 = vmatmul.msk.f32.vlgmr.msra.gmra.mxu1 %vm268_vm3, %v4679_v37 }
 0x130   :  { %4687 = vmatmul.msk.f32.vlgmr.msra.gmra.mxu3 %vm268_vm3, %v4679_v37  ;;  %4698 = vmatpush.msk.msra.mxu0 %vm272_vm2, %v5213_v22  ;;  %v4688_v22 = vld [vmem:[%s6919_s2 + $0xc] sm:$0xf] }
 0x131   :  { %4700 = vmatpush.msk.msra.mxu1 %vm272_vm2, %v5203_v16  ;;  %v930_v4 = vpop.permute.xlu0 %929  ;;  %v821_v16 = vmul.f32 %v5427_v54, %v817_v14 }
 0x132   :  { %v587_v6 = vpop.permute.xlu1 %586  ;;  %v939_v35 = vsel %vm931_vm9, %v930_v4, 0.0 }
 0x133   :  { %v592_v7 = vsel %vm590_vm0, %v5358_v9, %v587_v6  ;;  %v593_v11 = vsel %vm590_vm0, %v587_v6, %v589_v26  ;;  %v5469_v9 = vsel %vm168_vm6, 1.0, %v6935_v29  ;;  %v5489_v26 = vmul.f32 %v5323_v53, %v5472_v15  ;;  %v926_v38 = vpop.permute.xlu2 %925 }
 0x134   :  { %v601_v12 = vmul.f32 %v5342_v3, %v592_v7  ;;  %v602_v13 = vmul.f32 %v5323_v53, %v593_v11  ;;  %v5485_v20 = vmul.f32 %v5342_v3, %v5469_v9  ;;  %v933_v50 = vsel %vm931_vm9, %v926_v38, %v928_v55 }
 0x135   :  { %6975 = vst [vmem:[#allocation19_spill] sm:$0xff] %v5489_v26  ;;  %v943_v41 = vmul.f32 %v939_v35, %v5489_v26 }
 0x136   :  { %4693 = vmatpush.msk.msrb.mxu2 %vm272_vm2, %v601_v12  ;;  %4695 = vmatpush.msk.msrb.mxu3 %vm272_vm2, %v602_v13  ;;  %6974 = vst [vmem:[#allocation18_spill] sm:$0xff] %v5485_v20  ;;  %v4715_v12 = vld [vmem:[%s6919_s2 + $0x18] sm:$0xf] }
 0x137   :  { %4690 = vmatmul.msk.f32.vlgmr.msrb.gmra.mxu0 %vm268_vm3, %v4688_v22  ;;  %4692 = vmatmul.msk.f32.vlgmr.msrb.gmra.mxu1 %vm268_vm3, %v4688_v22 }
 0x138   :  { %4694 = vmatmul.msk.f32.vlgmr.msrb.gmra.mxu2 %vm268_vm3, %v4688_v22  ;;  %4696 = vmatmul.msk.f32.vlgmr.msrb.gmra.mxu3 %vm268_vm3, %v4688_v22 }
 0x139   :  { %4702 = vmatpush.msk.msra.mxu2 %vm272_vm2, %v5215_v23  ;;  %4704 = vmatpush.msk.msra.mxu3 %vm272_vm2, %v5205_v17  ;;  %v5480_v43 = vpop.permute.xlu0 %1049  ;;  %v934_v23 = vsel %vm931_vm9, %v928_v55, %v930_v4  ;;  %v5544_v4 = vmul.f32 %v5374_v18, %v5530_v28 }
 0x13a   :  { %v806_v51 = vpop.permute.xlu1 %805  ;;  %v942_v40 = vmul.f32 %v934_v23, %v5485_v20 }
 0x13b   :  { %4713 = vmatpush.msk.msrb.mxu3 %vm272_vm2, %v821_v16  ;;  %v812_v32 = vsel %vm809_vm5, %v806_v51, %v808_v60  ;;  %v1046_v62 = vpop.permute.xlu2 %1045  ;;  %6978 = vst [vmem:[#allocation22_spill] sm:$0xff] %v5544_v4  ;;  %v5564_v16 = vmul.f32 %v5427_v54, %v5472_v15 }
 0x13c   :  { %v820_v17 = vmul.f32 %v5347_v5, %v812_v32 }
 0x13d   :  { %6979 = vst [vmem:[#allocation23_spill] sm:$0xff] %v5564_v16 }
 0x13e   :  { %4711 = vmatpush.msk.msrb.mxu2 %vm272_vm2, %v820_v17 }
 0x13f   :  { %4699 = vmatmul.msk.f32.vlgmr.msra.gmra.mxu0 %vm268_vm3, %v4697_v36  ;;  %4701 = vmatmul.msk.f32.vlgmr.msra.gmra.mxu1 %vm268_vm3, %v4697_v36 }
 0x140   :  { %4703 = vmatmul.msk.f32.vlgmr.msra.gmra.mxu2 %vm268_vm3, %v4697_v36  ;;  %4705 = vmatmul.msk.f32.vlgmr.msra.gmra.mxu3 %vm268_vm3, %v4697_v36  ;;  %v4724_v36 = vld [vmem:[%s6919_s2 + $0x1c] sm:$0xf] }
 0x141   :  { %4720 = vmatpush.msk.msra.mxu2 %vm272_vm2, %v942_v40  ;;  %4722 = vmatpush.msk.msra.mxu3 %vm272_vm2, %v943_v41  ;;  %v1048_v39 = vpop.permute.xlu0 %1047 }
 0x142   :  { %v804_v45 = vpop.permute.xlu1 %803  ;;  %v1055_v60 = vsel %vm1053_vm12, %v1048_v39, %v5480_v43  ;;  %v1054_v7 = vsel %vm1053_vm12, %v1046_v62, %v1048_v39 }
 0x143   :  { %v810_v49 = vsel %vm809_vm5, %v802_v61, %v804_v45  ;;  %v811_v48 = vsel %vm809_vm5, %v804_v45, %v806_v51  ;;  %v941_v61 = vmul.f32 %v933_v50, %v5513_v47  ;;  %v1063_v2 = vmul.f32 %v5505_v44, %v1055_v60  ;;  %v1174_v22 = vpop.permute.xlu2 %1173  ;;  %v4733_v45 = vld [vmem:[%s6919_s2 + $0x20] sm:$0xf] }
 0x144   :  { %v818_v37 = vmul.f32 %v5382_v21, %v810_v49  ;;  %v819_v42 = vmul.f32 %v5385_v24, %v811_v48  ;;  %v1062_v13 = vmul.f32 %v5530_v28, %v1054_v7  ;;  %v1183_v23 = vsel %vm1175_vm14, %v1174_v22, 0.0 }
 0x145   :  { %v5597_v49 = vmul.f32 %v5382_v21, %v5530_v28  ;;  %v5601_v48 = vmul.f32 %v5385_v24, %v5505_v44 }
 0x146   :  { %4707 = vmatpush.msk.msrb.mxu0 %vm272_vm2, %v818_v37  ;;  %4709 = vmatpush.msk.msrb.mxu1 %vm272_vm2, %v819_v42 }
 0x147   :  { %4708 = vmatmul.msk.f32.vlgmr.msrb.gmra.mxu0 %vm268_vm3, %v4706_v57  ;;  %4710 = vmatmul.msk.f32.vlgmr.msrb.gmra.mxu1 %vm268_vm3, %v4706_v57  ;;  %6981 = vst [vmem:[#allocation25_spill] sm:$0xff] %v5597_v49 }
 0x148   :  { %4712 = vmatmul.msk.f32.vlgmr.msrb.gmra.mxu2 %vm268_vm3, %v4706_v57  ;;  %4714 = vmatmul.msk.f32.vlgmr.msrb.gmra.mxu3 %vm268_vm3, %v4706_v57  ;;  %6982 = vst [vmem:[#allocation26_spill] sm:$0xff] %v5601_v48 }
 0x149   :  { %4718 = vmatpush.msk.msra.mxu1 %vm272_vm2, %v941_v61  ;;  %v1168_v50 = vpop.permute.xlu0 %1167 }
 0x14a   :  { %v924_v6 = vpop.permute.xlu1 %923 }
 0x14b   :  { %4727 = vmatpush.msk.msrb.mxu1 %vm272_vm2, %v1063_v2  ;;  %v932_v55 = vsel %vm931_vm9, %v924_v6, %v926_v38  ;;  %v1187_v38 = vmul.f32 %v1183_v23, %v5564_v16 }
 0x14c   :  { %v940_v11 = vmul.f32 %v932_v55, %v5544_v4 }
 0x14e   :  { %4716 = vmatpush.msk.msra.mxu0 %vm272_vm2, %v940_v11 }
 0x14f   :  { %4717 = vmatmul.msk.f32.vlgmr.msra.gmra.mxu0 %vm268_vm3, %v4715_v12  ;;  %4719 = vmatmul.msk.f32.vlgmr.msra.gmra.mxu1 %vm268_vm3, %v4715_v12 }
 0x150   :  { %4721 = vmatmul.msk.f32.vlgmr.msra.gmra.mxu2 %vm268_vm3, %v4715_v12  ;;  %4723 = vmatmul.msk.f32.vlgmr.msra.gmra.mxu3 %vm268_vm3, %v4715_v12 }
 0x151   :  { %4725 = vmatpush.msk.msrb.mxu0 %vm272_vm2, %v1062_v13 }
 0x152   :  { %v1052_v14 = vpop.permute.xlu1 %1051 }
 0x153   :  { %v1056_v51 = vsel %vm1053_vm12, %v5480_v43, %v1052_v14  ;;  %v1061_v32 = vsel %vm1053_vm12, %v1052_v14, 0.0  ;;  %v5584_v43 = vmul.f32 %v5347_v5, %v5469_v9 }
 0x154   :  { %v1064_v35 = vmul.f32 %v5469_v9, %v1056_v51  ;;  %v1065_v17 = vmul.f32 %v5472_v15, %v1061_v32 }
 0x155   :  { %6980 = vst [vmem:[#allocation24_spill] sm:$0xff] %v5584_v43 }
 0x156   :  { %4729 = vmatpush.msk.msrb.mxu2 %vm272_vm2, %v1064_v35  ;;  %4731 = vmatpush.msk.msrb.mxu3 %vm272_vm2, %v1065_v17 }
 0x157   :  { %4726 = vmatmul.msk.f32.vlgmr.msrb.gmra.mxu0 %vm268_vm3, %v4724_v36  ;;  %4728 = vmatmul.msk.f32.vlgmr.msrb.gmra.mxu1 %vm268_vm3, %v4724_v36 }
 0x158   :  { %4730 = vmatmul.msk.f32.vlgmr.msrb.gmra.mxu2 %vm268_vm3, %v4724_v36  ;;  %4732 = vmatmul.msk.f32.vlgmr.msrb.gmra.mxu3 %vm268_vm3, %v4724_v36 }
 0x159   :  { %4740 = vmatpush.msk.msra.mxu3 %vm272_vm2, %v1187_v38 }
 0x15a   :  { %v1172_v40 = vpop.permute.xlu1 %1171 }
 0x15b   :  { %v1178_v41 = vsel %vm1175_vm14, %v1172_v40, %v1174_v22 }
 0x15c   :  { %v1186_v39 = vmul.f32 %v1178_v41, %v5584_v43 }
 0x15e   :  { %4738 = vmatpush.msk.msra.mxu2 %vm272_vm2, %v1186_v39 }
 0x160   :  { %4739 = vmatmul.msk.f32.vlgmr.msra.gmra.mxu2 %vm268_vm3, %v4733_v45  ;;  %4741 = vmatmul.msk.f32.vlgmr.msra.gmra.mxu3 %vm268_vm3, %v4733_v45 }
 0x162   :  { %v1170_v37 = vpop.permute.xlu1 %1169 }
 0x163   :  { %v1176_v42 = vsel %vm1175_vm14, %v1168_v50, %v1170_v37  ;;  %v1177_v57 = vsel %vm1175_vm14, %v1170_v37, %v1172_v40 }
 0x164   :  { %v1184_v60 = vmul.f32 %v1176_v42, %v5597_v49  ;;  %v1185_v61 = vmul.f32 %v1177_v57, %v5601_v48 }
 0x166   :  { %4734 = vmatpush.msk.msra.mxu0 %vm272_vm2, %v1184_v60  ;;  %4736 = vmatpush.msk.msra.mxu1 %vm272_vm2, %v1185_v61 }
 0x167   :  { %4735 = vmatmul.msk.f32.vlgmr.msra.gmra.mxu0 %vm268_vm3, %v4733_v45  ;;  %4737 = vmatmul.msk.f32.vlgmr.msra.gmra.mxu1 %vm268_vm3, %v4733_v45 }
 0x17b   :  { %v302_v62 = vpop.f32.mrf.mxu0 }
 0x18c   :  { %v322_v2 = vpop.f32.mrf.mxu1 }
 0x19a   :  { %v342_v6 = vpop.f32.mrf.mxu2  ;;  %v362_v55 = vpop.f32.mrf.mxu3 }
 0x1a2   :  { %v437_v12 = vpop.f32.mrf.mxu2  ;;  %v457_v13 = vpop.f32.mrf.mxu3 }
 0x1a3   :  { %v438_v0 = vadd.f32 %v437_v12, %v342_v6  ;;  %v458_v48 = vadd.f32 %v457_v13, %v362_v55 }
 0x1a4   :  { %v397_v7 = vpop.f32.mrf.mxu0  ;;  %v417_v11 = vpop.f32.mrf.mxu1 }
 0x1a5   :  { %v398_v1 = vadd.f32 %v397_v7, %v302_v62  ;;  %v418_v25 = vadd.f32 %v417_v11, %v322_v2 }
 0x1ac   :  { %v515_v22 = vpop.f32.mrf.mxu0  ;;  %v535_v14 = vpop.f32.mrf.mxu1 }
 0x1ad   :  { %v555_v51 = vpop.f32.mrf.mxu2  ;;  %v578_v43 = vadd.f32 %v515_v22, %v398_v1  ;;  %v579_v16 = vadd.f32 %v535_v14, %v418_v25 }
 0x1ae   :  { %v580_v49 = vadd.f32 %v555_v51, %v438_v0 }
 0x1b3   :  { %v575_v32 = vpop.f32.mrf.mxu3 }
 0x1b4   :  { %v637_v23 = vpop.f32.mrf.mxu0  ;;  %v657_v35 = vpop.f32.mrf.mxu1  ;;  %v581_v4 = vadd.f32 %v575_v32, %v458_v48  ;;  %v5074_v32 = vmov 512.0  }
 0x1b5   :  { %v700_v20 = vadd.f32 %v637_v23, %v578_v43  ;;  %v701_v47 = vadd.f32 %v657_v35, %v579_v16  ;;  %v1292_v43 = vpop.permute.xlu2 %1291  ;;  %4960 = vrcp.f32 %v5074_v32 }
 0x1bb   :  { %v677_v17 = vpop.f32.mrf.mxu2  ;;  %v697_v36 = vpop.f32.mrf.mxu3 }
 0x1bc   :  { %v734_v38 = vpop.f32.mrf.mxu0  ;;  %v754_v40 = vpop.f32.mrf.mxu1  ;;  %v702_v26 = vadd.f32 %v677_v17, %v580_v49  ;;  %v703_v58 = vadd.f32 %v697_v36, %v581_v4 }
 0x1bd   :  { %v797_v56 = vadd.f32 %v734_v38, %v700_v20  ;;  %v798_v8 = vadd.f32 %v754_v40, %v701_v47  ;;  %v4961_v23 = vpop.eup %4960 }
 0x1be   :  { %v1308_v35 = vmul.f32 512.0, %v4961_v23  ;;  %vm1312_vm15 = vweird.f32 %v4961_v23 }
 0x1c0   :  { %v1309_v17 = vsub.f32 1.0, %v1308_v35 }
 0x1c2   :  { %v1310_v36 = vmul.f32 %v4961_v23, %v1309_v17 }
 0x1c3   :  { %v774_v41 = vpop.f32.mrf.mxu2  ;;  %v794_v39 = vpop.f32.mrf.mxu3 }
 0x1c4   :  { %v856_v45 = vpop.f32.mrf.mxu0  ;;  %v876_v50 = vpop.f32.mrf.mxu1  ;;  %v799_v33 = vadd.f32 %v774_v41, %v702_v26  ;;  %v800_v28 = vadd.f32 %v794_v39, %v703_v58  ;;  %v1311_v38 = vadd.f32 %v4961_v23, %v1310_v36 }
 0x1c5   :  { %v919_v62 = vadd.f32 %v856_v45, %v797_v56  ;;  %v920_v2 = vadd.f32 %v876_v50, %v798_v8 }
 0x1c6   :  { %v1313_v40 = vsel %vm1312_vm15, %v4961_v23, %v1311_v38 }
 0x1cb   :  { %v896_v37 = vpop.f32.mrf.mxu2  ;;  %v916_v42 = vpop.f32.mrf.mxu3 }
 0x1cc   :  { %v978_v57 = vpop.f32.mrf.mxu0  ;;  %v998_v60 = vpop.f32.mrf.mxu1  ;;  %v921_v6 = vadd.f32 %v896_v37, %v799_v33  ;;  %v922_v55 = vadd.f32 %v916_v42, %v800_v28 }
 0x1cd   :  { %v1041_v1 = vadd.f32 %v978_v57, %v919_v62  ;;  %v1042_v25 = vadd.f32 %v998_v60, %v920_v2 }
 0x1d3   :  { %v1018_v61 = vpop.f32.mrf.mxu2  ;;  %v1038_v29 = vpop.f32.mrf.mxu3 }
 0x1d4   :  { %v1100_v31 = vpop.f32.mrf.mxu0  ;;  %v1120_v27 = vpop.f32.mrf.mxu1  ;;  %v1043_v0 = vadd.f32 %v1018_v61, %v921_v6  ;;  %v1044_v48 = vadd.f32 %v1038_v29, %v922_v55 }
 0x1d5   :  { %v1163_v16 = vadd.f32 %v1100_v31, %v1041_v1  ;;  %v1164_v4 = vadd.f32 %v1120_v27, %v1042_v25 }
 0x1db   :  { %v1140_v10 = vpop.f32.mrf.mxu2  ;;  %v1160_v34 = vpop.f32.mrf.mxu3 }
 0x1dc   :  { %v1165_v49 = vadd.f32 %v1140_v10, %v1043_v0  ;;  %v1166_v7 = vadd.f32 %v1160_v34, %v1044_v48 }
 0x1e3   :  { %v1262_v11 = vpop.f32.mrf.mxu2  ;;  %v1282_v26 = vpop.f32.mrf.mxu3 }
 0x1e4   :  { %v1287_v12 = vadd.f32 %v1262_v11, %v1165_v49  ;;  %v1222_v13 = vpop.f32.mrf.mxu0  ;;  %v1242_v20 = vpop.f32.mrf.mxu1  ;;  %v1288_v47 = vadd.f32 %v1282_v26, %v1166_v7  ;;  %v5075_v49 = vmov 2  }
 0x1e5   :  { %v1285_v58 = vadd.f32 %v1222_v13, %v1163_v16  ;;  %v1286_v33 = vadd.f32 %v1242_v20, %v1164_v4  ;;  %4935 = vset.pattern.permute.xlu2 %v5075_v49 }
 0x1e6   :  { %v1296_v28 = vadd.f32 %v1292_v43, %v1287_v12  ;;  %v1297_v22 = vadd.f32 %v1292_v43, %v1288_v47  ;;  %1355 = vperm.xlu2 %4935, %v5537_v63  }
 0x1e7   :  { %v1294_v56 = vadd.f32 %v1292_v43, %v1285_v58  ;;  %v1295_v8 = vadd.f32 %v1292_v43, %v1286_v33  ;;  %v6983_v43 = vmov 1  }
 0x1e8   :  { %v1301_v27 = vsel %vm272_vm2, %v1296_v28, 0.0  ;;  %v1303_v34 = vsel %vm272_vm2, %v1297_v22, 0.0 }
 0x1e9   :  { %v1298_v14 = vsel %vm272_vm2, %v1294_v56, 0.0  ;;  %v1299_v29 = vsel %vm272_vm2, %v1295_v8, 0.0 }
 0x1ea   :  { %v1300_v10 = vadd.f32 %v1299_v29, %v1298_v14 }
 0x1ec   :  { %v1302_v31 = vadd.f32 %v1301_v27, %v1300_v10 }
 0x1ee   :  { %v1304_v51 = vadd.f32 %v1303_v34, %v1302_v31  ;;  %4936 = vset.pattern.permute.xlu2 %v6983_v43 }
 0x1f0   :  { %1305 = vadd.xlane.f32.xlu0 %v1304_v51 }
 0x263   :  { %v1306_v41 = vpop.xlane.xlu0 %1305 }
 0x264   :  { %v1314_v39 = vmul.f32 %v1313_v40, %v1306_v41 }
 0x266   :  { %v1315_v45 = vsub.f32 %v1294_v56, %v1314_v39  ;;  %v1316_v50 = vsub.f32 %v1295_v8, %v1314_v39  ;;  %v1317_v37 = vsub.f32 %v1296_v28, %v1314_v39  ;;  %v1318_v42 = vsub.f32 %v1297_v22, %v1314_v39  ;;  %v1356_v8 = vpop.permute.xlu2 %1355 }
 0x267   :  { %v6984_v56 = vmov 0  }
 0x268   :  { %v1319_v57 = vmul.f32 %v1315_v45, %v1315_v45  ;;  %v1320_v60 = vmul.f32 %v1316_v50, %v1316_v50  ;;  %v1321_v61 = vmul.f32 %v1317_v37, %v1317_v37  ;;  %v1322_v6 = vmul.f32 %v1318_v42, %v1318_v42 }
 0x26a   :  { %v1323_v62 = vsel %vm272_vm2, %v1319_v57, 0.0  ;;  %v1324_v2 = vsel %vm272_vm2, %v1320_v60, 0.0  ;;  %v1326_v0 = vsel %vm272_vm2, %v1321_v61, 0.0  ;;  %v1328_v25 = vsel %vm272_vm2, %v1322_v6, 0.0 }
 0x26b   :  { %v1325_v55 = vadd.f32 %v1324_v2, %v1323_v62 }
 0x26d   :  { %v1327_v1 = vadd.f32 %v1326_v0, %v1325_v55 }
 0x26f   :  { %v1329_v48 = vadd.f32 %v1328_v25, %v1327_v1 }
 0x271   :  { %1330 = vadd.xlane.f32.xlu1 %v1329_v48 }
 0x2e4   :  { %v1331_v16 = vpop.xlane.xlu1 %1330 }
 0x2e5   :  { %v1332_v4 = vmul.f32 %v1331_v16, %v1313_v40 }
 0x2e7   :  { %v1333_v7 = vadd.f32 1e-05, %v1332_v4 }
 0x2e9   :  { %4962 = vrsqrt.f32 %v1333_v7  ;;  %vm1340_vm6 = vweird.f32 %v1333_v7 }
 0x2ef   :  { %v4963_v11 = vpop.eup %4962 }
 0x2f0   :  { %v1335_v26 = vmul.f32 %v4963_v11, %v1333_v7  ;;  %vm1341_vm4 = vweird.f32 %v4963_v11 }
 0x2f1   :  { %vm1342_vm8 = vmor %vm1340_vm6, %vm1341_vm4  ;;  %vm2828_vm6 = vcmask 56320  }
 0x2f2   :  { %v1336_v12 = vmul.f32 %v4963_v11, %v1335_v26 }
 0x2f4   :  { %v1337_v13 = vmul.f32 0.5, %v1336_v12 }
 0x2f6   :  { %v1338_v20 = vsub.f32 1.5, %v1337_v13 }
 0x2f8   :  { %v1339_v47 = vmul.f32 %v4963_v11, %v1338_v20 }
 0x2fa   :  { %v1343_v58 = vsel %vm1342_vm8, %v4963_v11, %v1339_v47  ;;  %vm2774_vm8 = vcmask 64512  }
 0x2fb   :  { %v1344_v33 = vmul.f32 %v1343_v58, %v5537_v63 }
 0x2fd   :  { %1347 = vperm.xlu2 %4936, %v1344_v33  }
 0x305   :  { %4937 = vset.pattern.permute.xlu2 %v6984_v56 }
 0x357   :  { %v1348_v28 = vpop.permute.xlu2 %1347 }
 0x358   :  { %v1351_v22 = vmul.f32 %v1348_v28, %v1316_v50  ;;  %v1350_v14 = vmul.f32 %v1348_v28, %v1315_v45  ;;  %v1352_v63 = vmul.f32 %v1348_v28, %v1317_v37  ;;  %v1353_v35 = vmul.f32 %v1348_v28, %v1318_v42 }
 0x35a   :  { %v1359_v29 = vadd.f32 %v1356_v8, %v1351_v22  ;;  %v1358_v10 = vadd.f32 %v1356_v8, %v1350_v14  ;;  %v1360_v32 = vadd.f32 %v1356_v8, %v1352_v63  ;;  %v1361_v36 = vadd.f32 %v1356_v8, %v1353_v35 }
 0x35c   :  { %vm1363_vm10 = vcmp.ge.f32.partialorder %v1359_v29, 0.0  ;;  %v1367_v27 = vmul.f32 0.2, %v1359_v29  ;;  %vm1362_vm13 = vcmp.ge.f32.partialorder %v1358_v10, 0.0  ;;  %v1366_v31 = vmul.f32 0.2, %v1358_v10 }
 0x35d   :  { %v1368_v23 = vmul.f32 0.2, %v1360_v32  ;;  %vm1364_vm15 = vcmp.ge.f32.partialorder %v1360_v32, 0.0  ;;  %v1369_v38 = vmul.f32 0.2, %v1361_v36  ;;  %vm1365_vm4 = vcmp.ge.f32.partialorder %v1361_v36, 0.0 }
 0x35e   :  { %v1371_v34 = vsel %vm1363_vm10, %v1359_v29, %v1367_v27  ;;  %v1370_v51 = vsel %vm1362_vm13, %v1358_v10, %v1366_v31 }
 0x35f   :  { %1408 = vrot.lane.b32.xlu1 %v1371_v34, %s5069_s1  ;;  %1406 = vrot.lane.b32.xlu0 %v1370_v51, %s5069_s1  ;;  %v1372_v17 = vsel %vm1364_vm15, %v1360_v32, %v1368_v23  ;;  %v1373_v40 = vsel %vm1365_vm4, %v1361_v36, %v1369_v38  ;;  %v1398_v42 = vmul.f32 2.0, %v1370_v51  ;;  %v1399_v48 = vmul.f32 2.0, %v1371_v34 }
 0x360   :  { %1378 = vrot.lane.b32.xlu2 %v1370_v51, %s5068_s18  ;;  %v1400_v33 = vmul.f32 2.0, %v1372_v17  ;;  %v1401_v8 = vmul.f32 2.0, %v1373_v40  ;;  %vm2948_vm15 = vcmask 990208   ;;  %vm2767_vm4 = vcmask 72704  }
 0x368   :  { %1380 = vrot.lane.b32.xlu2 %v1371_v34, %s5068_s18 }
 0x370   :  { %1382 = vrot.lane.b32.xlu2 %v1372_v17, %s5068_s18 }
 0x378   :  { %1384 = vrot.lane.b32.xlu2 %v1373_v40, %s5068_s18 }
 0x380   :  { %1410 = vrot.lane.b32.xlu2 %v1372_v17, %s5069_s1 }
 0x388   :  { %1412 = vrot.lane.b32.xlu2 %v1373_v40, %s5069_s1 }
 0x3ba   :  { %v1379_v41 = vpop.permute.xlu2 %1378 }
 0x3bb   :  { %v1393_v50 = vsel %vm590_vm0, 0.0, %v1379_v41 }
 0x3bc   :  { %v1394_v37 = vmul.f32 %v5374_v18, %v1393_v50 }
 0x3be   :  { %v1402_v2 = vadd.f32 %v1398_v42, %v1394_v37 }
 0x3c2   :  { %v1381_v39 = vpop.permute.xlu2 %1380 }
 0x3c3   :  { %v1386_v55 = vsel %vm590_vm0, %v1379_v41, %v1381_v39 }
 0x3c4   :  { %v1395_v25 = vmul.f32 %v5377_v19, %v1386_v55 }
 0x3c6   :  { %v1403_v11 = vadd.f32 %v1399_v48, %v1395_v25 }
 0x3ca   :  { %v1383_v45 = vpop.permute.xlu2 %1382 }
 0x3cb   :  { %v1387_v26 = vsel %vm590_vm0, %v1381_v39, %v1383_v45 }
 0x3cc   :  { %v1396_v20 = vmul.f32 %v5342_v3, %v1387_v26 }
 0x3ce   :  { %v1404_v31 = vadd.f32 %v1400_v33, %v1396_v20 }
 0x3d1   :  { %v1409_v57 = vpop.permute.xlu1 %1408  ;;  %v1407_v60 = vpop.permute.xlu0 %1406 }
 0x3d2   :  { %v1414_v61 = vsel %vm809_vm5, %v1407_v60, %v1409_v57  ;;  %v1385_v6 = vpop.permute.xlu2 %1384 }
 0x3d3   :  { %v1422_v62 = vmul.f32 %v5382_v21, %v1414_v61  ;;  %v1388_v12 = vsel %vm590_vm0, %v1383_v45, %v1385_v6 }
 0x3d4   :  { %v1397_v47 = vmul.f32 %v5323_v53, %v1388_v12 }
 0x3d5   :  { %v1426_v0 = vadd.f32 %v1422_v62, %v1402_v2 }
 0x3d6   :  { %v1405_v29 = vadd.f32 %v1401_v8, %v1397_v47 }
 0x3d7   :  { %v5637_v1 = vmul.f32 0.25, %v1426_v0 }
 0x3d9   :  { %1438 = vrot.lane.b32.xlu0 %v5637_v1, %s5066_s0  ;;  %v1458_v20 = vmul.f32 2.0, %v5637_v1 }
 0x3da   :  { %v1411_v16 = vpop.permute.xlu2 %1410 }
 0x3db   :  { %v1415_v4 = vsel %vm809_vm5, %v1409_v57, %v1411_v16 }
 0x3dc   :  { %v1423_v7 = vmul.f32 %v5385_v24, %v1415_v4 }
 0x3de   :  { %v1427_v13 = vadd.f32 %v1423_v7, %v1403_v11 }
 0x3e0   :  { %v1431_v58 = vmul.f32 0.25, %v1427_v13 }
 0x3e2   :  { %1440 = vrot.lane.b32.xlu2 %v1431_v58, %s5066_s0  ;;  %v1413_v28 = vpop.permute.xlu2 %1412  ;;  %v1459_v57 = vmul.f32 2.0, %v1431_v58 }
 0x3e3   :  { %v1416_v22 = vsel %vm809_vm5, %v1411_v16, %v1413_v28  ;;  %v1421_v14 = vsel %vm809_vm5, %v1413_v28, 0.0 }
 0x3e4   :  { %v1424_v10 = vmul.f32 %v5347_v5, %v1416_v22  ;;  %v1425_v27 = vmul.f32 %v5427_v54, %v1421_v14 }
 0x3e6   :  { %v1428_v34 = vadd.f32 %v1424_v10, %v1404_v31  ;;  %v1429_v51 = vadd.f32 %v1425_v27, %v1405_v29  ;;  %v6985_v29 = vld [vmem:[#allocation21_spill] sm:$0xff] }
 0x3e8   :  { %v1432_v63 = vmul.f32 0.25, %v1428_v34  ;;  %v1433_v32 = vmul.f32 0.25, %v1429_v51 }
 0x3ea   :  { %1468 = vrot.lane.b32.xlu2 %v1431_v58, %s5071_s21  ;;  %1442 = vrot.lane.b32.xlu1 %v1432_v63, %s5066_s0  ;;  %v1460_v6 = vmul.f32 2.0, %v1432_v63  ;;  %v1461_v62 = vmul.f32 2.0, %v1433_v32 }
 0x3eb   :  { %1444 = vrot.lane.b32.xlu0 %v1433_v32, %s5066_s0 }
 0x3f2   :  { %1470 = vrot.lane.b32.xlu1 %v1432_v63, %s5071_s21  ;;  %1466 = vrot.lane.b32.xlu2 %v5637_v1, %s5071_s21 }
 0x3f3   :  { %1472 = vrot.lane.b32.xlu0 %v1433_v32, %s5071_s21  ;;  %v4742_v32 = vld [vmem:[%s6921_s4 + $0x8] sm:$0xff] }
 0x43c   :  { %v1441_v23 = vpop.permute.xlu2 %1440 }
 0x444   :  { %v1469_v36 = vpop.permute.xlu2 %1468 }
 0x44b   :  { %v1439_v35 = vpop.permute.xlu0 %1438 }
 0x44c   :  { %v1446_v40 = vsel %vm253_vm1, %v1439_v35, %v1441_v23  ;;  %v1453_v45 = vsel %vm253_vm1, 0.0, %v1439_v35  ;;  %v1467_v4 = vpop.permute.xlu2 %1466 }
 0x44d   :  { %v1455_v50 = vmul.f32 %v5307_v46, %v1446_v40  ;;  %v1454_v61 = vmul.f32 %v5282_v30, %v1453_v45  ;;  %v1474_v33 = vsel %vm1053_vm12, %v1467_v4, %v1469_v36 }
 0x44e   :  { %v1482_v10 = vmul.f32 %v6985_v29, %v1474_v33 }
 0x44f   :  { %v1463_v0 = vadd.f32 %v1459_v57, %v1455_v50  ;;  %v1462_v28 = vadd.f32 %v1458_v20, %v1454_v61 }
 0x451   :  { %v1486_v1 = vadd.f32 %v1482_v10, %v1462_v28  ;;  %v6992_v10 = vld [vmem:[#allocation12_spill] sm:$0xff] }
 0x453   :  { %v5689_v27 = vmul.f32 0.25, %v1486_v1 }
 0x45c   :  { %v1443_v17 = vpop.permute.xlu1 %1442 }
 0x45d   :  { %v1445_v38 = vpop.permute.xlu0 %1444  ;;  %v1447_v41 = vsel %vm253_vm1, %v1441_v23, %v1443_v17 }
 0x45e   :  { %v1448_v39 = vsel %vm253_vm1, %v1443_v17, %v1445_v38  ;;  %v1456_v37 = vmul.f32 %v5335_v59, %v1447_v41 }
 0x45f   :  { %v1457_v42 = vmul.f32 %v5320_v52, %v1448_v39 }
 0x460   :  { %v1464_v7 = vadd.f32 %v1460_v6, %v1456_v37 }
 0x461   :  { %v1465_v11 = vadd.f32 %v1461_v62, %v1457_v42 }
 0x464   :  { %v1471_v60 = vpop.permute.xlu1 %1470 }
 0x465   :  { %v1475_v2 = vsel %vm1053_vm12, %v1469_v36, %v1471_v60  ;;  %v1473_v55 = vpop.permute.xlu0 %1472 }
 0x466   :  { %v1483_v25 = vmul.f32 %v5505_v44, %v1475_v2  ;;  %v1476_v48 = vsel %vm1053_vm12, %v1471_v60, %v1473_v55  ;;  %v1481_v16 = vsel %vm1053_vm12, %v1473_v55, 0.0  ;;  %v6987_v2 = vld [vmem:[#allocation10_spill] sm:$0xff] }
 0x467   :  { %v1484_v26 = vmul.f32 %v5469_v9, %v1476_v48  ;;  %v1485_v12 = vmul.f32 %v5472_v15, %v1481_v16  ;;  %v6988_v16 = vld [vmem:[#allocation13_spill] sm:$0xff] }
 0x468   :  { %v1487_v13 = vadd.f32 %v1483_v25, %v1463_v0 }
 0x469   :  { %v1488_v47 = vadd.f32 %v1484_v26, %v1464_v7  ;;  %v1489_v58 = vadd.f32 %v1485_v12, %v1465_v11  ;;  %v6989_v7 = vld [vmem:[#allocation14_spill] sm:$0xff]  ;;  %v6990_v26 = vld [vmem:[#allocation15_spill] sm:$0xff] }
 0x46a   :  { %v5676_v8 = vmul.f32 0.25, %v1487_v13  ;;  %v6991_v13 = vld [vmem:[#allocation16_spill] sm:$0xff] }
 0x46b   :  { %v5678_v22 = vmul.f32 0.25, %v1488_v47  ;;  %v5680_v14 = vmul.f32 0.25, %v1489_v58 }
 0x46c   :  { %1521 = vrot.lane.b32.xlu1 %v5676_v8, %s5066_s0 }
 0x46d   :  { %1525 = vrot.lane.b32.xlu2 %v5680_v14, %s5066_s0  ;;  %1523 = vrot.lane.b32.xlu0 %v5678_v22, %s5066_s0 }
 0x474   :  { %1500 = vrot.lane.b32.xlu1 %v5676_v8, %s5065_s29 }
 0x475   :  { %1502 = vrot.lane.b32.xlu0 %v5678_v22, %s5065_s29  ;;  %1519 = vrot.lane.b32.xlu2 %v5689_v27, %s5066_s0 }
 0x47c   :  { %1504 = vrot.lane.b32.xlu1 %v5680_v14, %s5065_s29 }
 0x47d   :  { %1498 = vrot.lane.b32.xlu0 %v5689_v27, %s5065_s29  ;;  %1733 = vrot.lane.b32.xlu2 %v5676_v8, %s5067_s30 }
 0x484   :  { %1735 = vrot.lane.b32.xlu1 %v5678_v22, %s5067_s30 }
 0x485   :  { %1737 = vrot.lane.b32.xlu0 %v5680_v14, %s5067_s30  ;;  %1731 = vrot.lane.b32.xlu2 %v5689_v27, %s5067_s30  ;;  %s5078_s30 = smov 9  }
 0x48c   :  { %1854 = vrot.lane.b32.xlu1 %v5676_v8, %s5068_s18 }
 0x48d   :  { %1856 = vrot.lane.b32.xlu0 %v5678_v22, %s5068_s18  ;;  %1858 = vrot.lane.b32.xlu2 %v5680_v14, %s5068_s18 }
 0x494   :  { %1852 = vrot.lane.b32.xlu1 %v5689_v27, %s5068_s18 }
 0x495   :  { %2074 = vrot.lane.b32.xlu0 %v5678_v22, %s5069_s1  ;;  %2076 = vrot.lane.b32.xlu2 %v5680_v14, %s5069_s1 }
 0x49c   :  { %2070 = vrot.lane.b32.xlu1 %v5689_v27, %s5069_s1 }
 0x49d   :  { %2072 = vrot.lane.b32.xlu0 %v5676_v8, %s5069_s1  ;;  %2195 = vrot.lane.b32.xlu2 %v5678_v22, %s5070_s20 }
 0x4a4   :  { %2197 = vrot.lane.b32.xlu1 %v5680_v14, %s5070_s20 }
 0x4a5   :  { %2191 = vrot.lane.b32.xlu0 %v5689_v27, %s5070_s20  ;;  %2193 = vrot.lane.b32.xlu2 %v5676_v8, %s5070_s20  ;;  %s5079_s20 = smov 7  }
 0x4ac   :  { %2316 = vrot.lane.b32.xlu1 %v5678_v22, %s5071_s21 }
 0x4ad   :  { %2318 = vrot.lane.b32.xlu0 %v5680_v14, %s5071_s21  ;;  %2312 = vrot.lane.b32.xlu2 %v5689_v27, %s5071_s21 }
 0x4b4   :  { %2314 = vrot.lane.b32.xlu1 %v5676_v8, %s5071_s21 }
 0x4b5   :  { %2437 = vrot.lane.b32.xlu0 %v5678_v22, %s5072_s22  ;;  %2439 = vrot.lane.b32.xlu2 %v5680_v14, %s5072_s22 }
 0x4bc   :  { %2433 = vrot.lane.b32.xlu1 %v5689_v27, %s5072_s22 }
 0x4bd   :  { %2435 = vrot.lane.b32.xlu0 %v5676_v8, %s5072_s22  ;;  %s5080_s22 = smov 120  }
 0x4c7   :  { %v1526_v31 = vpop.permute.xlu2 %1525 }
 0x4cf   :  { %v1520_v34 = vpop.permute.xlu2 %1519 }
 0x4d0   :  { %v1534_v51 = vsel %vm253_vm1, 0.0, %v1520_v34 }
 0x4d1   :  { %v1535_v63 = vmul.f32 %v5282_v30, %v1534_v51  ;;  %v6993_v51 = vld [vmem:[#allocation17_spill] sm:$0xff] }
 0x4d3   :  { %4743 = vmatpush.msk.msrb.mxu0 %vm272_vm2, %v1535_v63 }
 0x4d4   :  { %4744 = vmatmul.msk.f32.vlgmr.msrb.gmra.mxu0 %vm268_vm3, %v4742_v32 }
 0x4d7   :  { %v1734_v23 = vpop.permute.xlu2 %1733 }
 0x4de   :  { %v1522_v35 = vpop.permute.xlu1 %1521 }
 0x4df   :  { %v1527_v17 = vsel %vm253_vm1, %v1520_v34, %v1522_v35  ;;  %v1524_v36 = vpop.permute.xlu0 %1523  ;;  %v1732_v45 = vpop.permute.xlu2 %1731  ;;  %v4759_v34 = vld [vmem:[%s6921_s4 + $0x10] sm:$0xff] }
 0x4e0   :  { %v1536_v38 = vmul.f32 %v5307_v46, %v1527_v17  ;;  %v1528_v40 = vsel %vm253_vm1, %v1522_v35, %v1524_v36  ;;  %v1529_v41 = vsel %vm253_vm1, %v1524_v36, %v1526_v31  ;;  %v1746_v62 = vsel %vm468_vm11, 0.0, %v1732_v45 }
 0x4e1   :  { %v1537_v30 = vmul.f32 %v5335_v59, %v1528_v40  ;;  %v1538_v39 = vmul.f32 %v5320_v52, %v1529_v41  ;;  %v6986_v59 = vld [vmem:[#allocation11_spill] sm:$0xff]  ;;  %v1739_v48 = vsel %vm468_vm11, %v1732_v45, %v1734_v23  ;;  %v1747_v12 = vmul.f32 %v1746_v62, %v6990_v26 }
 0x4e2   :  { %4745 = vmatpush.msk.msrb.mxu1 %vm272_vm2, %v1536_v38  ;;  %v1518_v52 = vld [vmem:[%s6921_s4] sm:$0xff]  ;;  %v1748_v20 = vmul.f32 %v1739_v48, %v6991_v13 }
 0x4e3   :  { %4747 = vmatpush.msk.msrb.mxu2 %vm272_vm2, %v1537_v30  ;;  %4749 = vmatpush.msk.msrb.mxu3 %vm272_vm2, %v1538_v39  ;;  %v4768_v30 = vld [vmem:[%s6921_s4 + $0x18] sm:$0xff] }
 0x4e4   :  { %4748 = vmatmul.msk.f32.vlgmr.msrb.gmra.mxu2 %vm268_vm3, %v4742_v32  ;;  %4746 = vmatmul.msk.f32.vlgmr.msrb.gmra.mxu1 %vm268_vm3, %v4742_v32 }
 0x4e5   :  { %4750 = vmatmul.msk.f32.vlgmr.msrb.gmra.mxu3 %vm268_vm3, %v4742_v32 }
 0x4e6   :  { %v1501_v46 = vpop.permute.xlu1 %1500 }
 0x4e7   :  { %v1503_v50 = vpop.permute.xlu0 %1502  ;;  %v1859_v57 = vpop.permute.xlu2 %1858 }
 0x4e8   :  { %v1507_v37 = vsel %vm231_vm7, %v1501_v46, %v1503_v50 }
 0x4e9   :  { %v1516_v42 = vmul.f32 %v1507_v37, %v6986_v59 }
 0x4eb   :  { %4755 = vmatpush.msk.msra.mxu2 %vm272_vm2, %v1516_v42 }
 0x4ec   :  { %4756 = vmatmul.msk.f32.vlgmr.msra.gmra.mxu2 %vm268_vm3, %v1518_v52 }
 0x4ee   :  { %v1505_v60 = vpop.permute.xlu1 %1504 }
 0x4ef   :  { %v1508_v61 = vsel %vm231_vm7, %v1503_v50, %v1505_v60  ;;  %v1499_v6 = vpop.permute.xlu0 %1498  ;;  %v2077_v47 = vpop.permute.xlu2 %2076 }
 0x4f0   :  { %v1517_v55 = vmul.f32 %v1508_v61, %v6987_v2  ;;  %v1506_v0 = vsel %vm231_vm7, %v1499_v6, %v1501_v46  ;;  %v1513_v25 = vsel %vm231_vm7, 0.0, %v1499_v6  ;;  %v2085_v38 = vsel %vm809_vm5, %v2077_v47, 0.0 }
 0x4f1   :  { %v1514_v4 = vmul.f32 %v1513_v25, %v6988_v16  ;;  %v1515_v11 = vmul.f32 %v1506_v0, %v6989_v7  ;;  %v2089_v39 = vmul.f32 %v5427_v54, %v2085_v38  ;;  %v6996_v25 = vld [vmem:[#allocation19_spill] sm:$0xff] }
 0x4f2   :  { %4757 = vmatpush.msk.msra.mxu3 %vm272_vm2, %v1517_v55  ;;  %v6995_v55 = vld [vmem:[#allocation18_spill] sm:$0xff] }
 0x4f3   :  { %4751 = vmatpush.msk.msra.mxu0 %vm272_vm2, %v1514_v4  ;;  %4753 = vmatpush.msk.msra.mxu1 %vm272_vm2, %v1515_v11  ;;  %v6997_v4 = vld [vmem:[#allocation22_spill] sm:$0xff]  ;;  %v4795_v11 = vld [vmem:[%s6921_s4 + $0x30] sm:$0xff] }
 0x4f4   :  { %4752 = vmatmul.msk.f32.vlgmr.msra.gmra.mxu0 %vm268_vm3, %v1518_v52  ;;  %4754 = vmatmul.msk.f32.vlgmr.msra.gmra.mxu1 %vm268_vm3, %v1518_v52 }
 0x4f5   :  { %4758 = vmatmul.msk.f32.vlgmr.msra.gmra.mxu3 %vm268_vm3, %v1518_v52  ;;  %4760 = vmatpush.msk.msrb.mxu0 %vm272_vm2, %v1747_v12 }
 0x4f6   :  { %4762 = vmatpush.msk.msrb.mxu1 %vm272_vm2, %v1748_v20  ;;  %v1736_v58 = vpop.permute.xlu1 %1735 }
 0x4f7   :  { %v1740_v33 = vsel %vm468_vm11, %v1734_v23, %v1736_v58  ;;  %v1738_v28 = vpop.permute.xlu0 %1737  ;;  %v2196_v23 = vpop.permute.xlu2 %2195 }
 0x4f8   :  { %v1749_v1 = vmul.f32 %v1740_v33, %v6992_v10  ;;  %v1741_v31 = vsel %vm468_vm11, %v1736_v58, %v1738_v28  ;;  %v4804_v10 = vld [vmem:[%s6921_s4 + $0x38] sm:$0xff] }
 0x4f9   :  { %v1750_v63 = vmul.f32 %v1741_v31, %v6993_v51 }
 0x4fa   :  { %4764 = vmatpush.msk.msrb.mxu2 %vm272_vm2, %v1749_v1  ;;  %v6998_v1 = vld [vmem:[#allocation23_spill] sm:$0xff] }
 0x4fb   :  { %4766 = vmatpush.msk.msrb.mxu3 %vm272_vm2, %v1750_v63  ;;  %4765 = vmatmul.msk.f32.vlgmr.msrb.gmra.mxu2 %vm268_vm3, %v4759_v34 }
 0x4fc   :  { %4761 = vmatmul.msk.f32.vlgmr.msrb.gmra.mxu0 %vm268_vm3, %v4759_v34  ;;  %4763 = vmatmul.msk.f32.vlgmr.msrb.gmra.mxu1 %vm268_vm3, %v4759_v34 }
 0x4fd   :  { %4767 = vmatmul.msk.f32.vlgmr.msrb.gmra.mxu3 %vm268_vm3, %v4759_v34 }
 0x4fe   :  { %v1855_v32 = vpop.permute.xlu1 %1854 }
 0x4ff   :  { %v1857_v35 = vpop.permute.xlu0 %1856 }
 0x500   :  { %v1861_v17 = vsel %vm590_vm0, %v1855_v32, %v1857_v35  ;;  %v1862_v36 = vsel %vm590_vm0, %v1857_v35, %v1859_v57  ;;  %v6999_v35 = vld [vmem:[#allocation24_spill] sm:$0xff] }
 0x501   :  { %v1870_v40 = vmul.f32 %v5342_v3, %v1861_v17  ;;  %v1871_v41 = vmul.f32 %v5323_v53, %v1862_v36  ;;  %v4813_v36 = vld [vmem:[%s6921_s4 + $0x40] sm:$0xff] }
 0x503   :  { %4773 = vmatpush.msk.msra.mxu2 %vm272_vm2, %v1870_v40  ;;  %4775 = vmatpush.msk.msra.mxu3 %vm272_vm2, %v1871_v41  ;;  %v7000_v41 = vld [vmem:[#allocation25_spill] sm:$0xff] }
 0x504   :  { %4774 = vmatmul.msk.f32.vlgmr.msra.gmra.mxu2 %vm268_vm3, %v4768_v30 }
 0x505   :  { %4784 = vmatpush.msk.msrb.mxu3 %vm272_vm2, %v5680_v14  ;;  %4782 = vmatpush.msk.msrb.mxu2 %vm272_vm2, %v5678_v22  ;;  %v2194_v14 = vpop.permute.xlu2 %2193  ;;  %v4777_v22 = vld [vmem:[%s6921_s4 + $0x20] sm:$0xff] }
 0x506   :  { %4776 = vmatmul.msk.f32.vlgmr.msra.gmra.mxu3 %vm268_vm3, %v4768_v30  ;;  %v1853_v53 = vpop.permute.xlu1 %1852 }
 0x507   :  { %4793 = vmatpush.msk.msra.mxu3 %vm272_vm2, %v2089_v39  ;;  %v1860_v3 = vsel %vm590_vm0, %v1853_v53, %v1855_v32  ;;  %v1867_v45 = vsel %vm590_vm0, 0.0, %v1853_v53  ;;  %v2075_v46 = vpop.permute.xlu0 %2074  ;;  %v7001_v39 = vld [vmem:[#allocation26_spill] sm:$0xff] }
 0x508   :  { %v1868_v54 = vmul.f32 %v5374_v18, %v1867_v45  ;;  %v1869_v50 = vmul.f32 %v5377_v19, %v1860_v3  ;;  %v2080_v37 = vsel %vm809_vm5, %v2075_v46, %v2077_v47  ;;  %v2200_v19 = vsel %vm931_vm9, %v2194_v14, %v2196_v23 }
 0x509   :  { %v2088_v59 = vmul.f32 %v5347_v5, %v2080_v37  ;;  %v2617_v37 = vld [vmem:[#allocation2 + $0x1f8] sm:$0xff] }
 0x50a   :  { %4769 = vmatpush.msk.msra.mxu0 %vm272_vm2, %v1868_v54  ;;  %4771 = vmatpush.msk.msra.mxu1 %vm272_vm2, %v1869_v50  ;;  %v2601_v50 = vld [vmem:[#allocation2 + $0x178] sm:$0xff] }
 0x50b   :  { %4791 = vmatpush.msk.msra.mxu2 %vm272_vm2, %v2088_v59  ;;  %4770 = vmatmul.msk.f32.vlgmr.msra.gmra.mxu0 %vm268_vm3, %v4768_v30  ;;  %v2585_v59 = vld [vmem:[#allocation2 + $0xf8] sm:$0xff] }
 0x50c   :  { %4772 = vmatmul.msk.f32.vlgmr.msra.gmra.mxu1 %vm268_vm3, %v4768_v30  ;;  %4778 = vmatpush.msk.msrb.mxu0 %vm272_vm2, %v5689_v27  ;;  %v6994_v27 = vld [vmem:[#allocation20_spill] sm:$0xff] }
 0x50d   :  { %4780 = vmatpush.msk.msrb.mxu1 %vm272_vm2, %v5676_v8  ;;  %4783 = vmatmul.msk.f32.vlgmr.msrb.gmra.mxu2 %vm268_vm3, %v4777_v22  ;;  %v4786_v8 = vld [vmem:[%s6921_s4 + $0x28] sm:$0xff]  ;;  %v2208_v61 = vmul.f32 %v2200_v19, %v6994_v27  ;;  %v2313_v6 = vpop.permute.xlu2 %2312 }
 0x50e   :  { %4785 = vmatmul.msk.f32.vlgmr.msrb.gmra.mxu3 %vm268_vm3, %v4777_v22  ;;  %v2071_v5 = vpop.permute.xlu1 %2070  ;;  %v2615_v27 = vld [vmem:[#allocation2 + $0x1e8] sm:$0xff] }
 0x50f   :  { %v2073_v18 = vpop.permute.xlu0 %2072 }
 0x510   :  { %v2078_v42 = vsel %vm809_vm5, %v2071_v5, %v2073_v18  ;;  %v2079_v52 = vsel %vm809_vm5, %v2073_v18, %v2075_v46  ;;  %v2616_v5 = vld [vmem:[#allocation2 + $0x1f0] sm:$0xff] }
 0x511   :  { %v2086_v57 = vmul.f32 %v5382_v21, %v2078_v42  ;;  %v2087_v60 = vmul.f32 %v5385_v24, %v2079_v52 }
 0x513   :  { %4787 = vmatpush.msk.msra.mxu0 %vm272_vm2, %v2086_v57  ;;  %4789 = vmatpush.msk.msra.mxu1 %vm272_vm2, %v2087_v60  ;;  %v2568_v57 = vld [vmem:[#allocation2 + $0x70] sm:$0xff] }
 0x514   :  { %4779 = vmatmul.msk.f32.vlgmr.msrb.gmra.mxu0 %vm268_vm3, %v4777_v22  ;;  %4781 = vmatmul.msk.f32.vlgmr.msrb.gmra.mxu1 %vm268_vm3, %v4777_v22  ;;  %v2600_v22 = vld [vmem:[#allocation2 + $0x170] sm:$0xff] }
 0x515   :  { %4792 = vmatmul.msk.f32.vlgmr.msra.gmra.mxu2 %vm268_vm3, %v4786_v8  ;;  %4798 = vmatpush.msk.msrb.mxu1 %vm272_vm2, %v2208_v61  ;;  %v2440_v26 = vpop.permute.xlu2 %2439  ;;  %v2584_v60 = vld [vmem:[#allocation2 + $0xf0] sm:$0xff]  ;;  %v2567_v61 = vld [vmem:[#allocation2 + $0x68] sm:$0xff] }
 0x516   :  { %4794 = vmatmul.msk.f32.vlgmr.msra.gmra.mxu3 %vm268_vm3, %v4786_v8  ;;  %v2198_v21 = vpop.permute.xlu1 %2197  ;;  %v2448_v20 = vsel %vm1175_vm14, %v2440_v26, 0.0 }
 0x517   :  { %v2201_v24 = vsel %vm931_vm9, %v2196_v23, %v2198_v21  ;;  %v2206_v62 = vsel %vm931_vm9, %v2198_v21, 0.0  ;;  %v2192_v2 = vpop.permute.xlu0 %2191  ;;  %v2452_v31 = vmul.f32 %v2448_v20, %v6998_v1  ;;  %v2598_v21 = vld [vmem:[#allocation2 + $0x160] sm:$0xff]  ;;  %v2595_v20 = vld [vmem:[#allocation2 + $0x148] sm:$0xff] }
 0x518   :  { %v2209_v0 = vmul.f32 %v2201_v24, %v6995_v55  ;;  %v2210_v48 = vmul.f32 %v2206_v62, %v6996_v25  ;;  %v2199_v16 = vsel %vm931_vm9, %v2192_v2, %v2194_v14  ;;  %v2569_v14 = vld [vmem:[#allocation2 + $0x78] sm:$0xff]  ;;  %v2614_v24 = vld [vmem:[#allocation2 + $0x1e0] sm:$0xff] }
 0x519   :  { %v2207_v7 = vmul.f32 %v2199_v16, %v6997_v4  ;;  %v2566_v62 = vld [vmem:[#allocation2 + $0x60] sm:$0xff]  ;;  %v2597_v55 = vld [vmem:[#allocation2 + $0x158] sm:$0xff]  ;;  %v2596_v16 = vld [vmem:[#allocation2 + $0x150] sm:$0xff] }
 0x51a   :  { %4800 = vmatpush.msk.msrb.mxu2 %vm272_vm2, %v2209_v0  ;;  %4802 = vmatpush.msk.msrb.mxu3 %vm272_vm2, %v2210_v48  ;;  %v2582_v2 = vld [vmem:[#allocation2 + $0xe0] sm:$0xff]  ;;  %v2613_v0 = vld [vmem:[#allocation2 + $0x1d8] sm:$0xff]  ;;  %v2612_v4 = vld [vmem:[#allocation2 + $0x1d0] sm:$0xff] }
 0x51b   :  { %4796 = vmatpush.msk.msrb.mxu0 %vm272_vm2, %v2207_v7  ;;  %v2565_v25 = vld [vmem:[#allocation2 + $0x58] sm:$0xff]  ;;  %v2610_v1 = vld [vmem:[#allocation2 + $0x1c0] sm:$0xff] }
 0x51c   :  { %4788 = vmatmul.msk.f32.vlgmr.msra.gmra.mxu0 %vm268_vm3, %v4786_v8  ;;  %4790 = vmatmul.msk.f32.vlgmr.msra.gmra.mxu1 %vm268_vm3, %v4786_v8  ;;  %v2599_v8 = vld [vmem:[#allocation2 + $0x168] sm:$0xff]  ;;  %v2581_v48 = vld [vmem:[#allocation2 + $0xd8] sm:$0xff] }
 0x51d   :  { %4801 = vmatmul.msk.f32.vlgmr.msrb.gmra.mxu2 %vm268_vm3, %v4795_v11 }
 0x51e   :  { %4803 = vmatmul.msk.f32.vlgmr.msrb.gmra.mxu3 %vm268_vm3, %v4795_v11  ;;  %v2317_v12 = vpop.permute.xlu1 %2316 }
 0x51f   :  { %v2319_v13 = vpop.permute.xlu0 %2318 }
 0x520   :  { %v2322_v47 = vsel %vm1053_vm12, %v2317_v12, %v2319_v13  ;;  %v2327_v58 = vsel %vm1053_vm12, %v2319_v13, 0.0  ;;  %v2580_v13 = vld [vmem:[#allocation2 + $0xd0] sm:$0xff] }
 0x521   :  { %v2330_v33 = vmul.f32 %v5469_v9, %v2322_v47  ;;  %v2331_v28 = vmul.f32 %v5472_v15, %v2327_v58  ;;  %v2611_v58 = vld [vmem:[#allocation2 + $0x1c8] sm:$0xff] }
 0x523   :  { %4809 = vmatpush.msk.msra.mxu2 %vm272_vm2, %v2330_v33  ;;  %4811 = vmatpush.msk.msra.mxu3 %vm272_vm2, %v2331_v28  ;;  %v2563_v33 = vld [vmem:[#allocation2 + $0x48] sm:$0xff] }
 0x524   :  { %4797 = vmatmul.msk.f32.vlgmr.msrb.gmra.mxu0 %vm268_vm3, %v4795_v11  ;;  %4799 = vmatmul.msk.f32.vlgmr.msrb.gmra.mxu1 %vm268_vm3, %v4795_v11  ;;  %v2579_v28 = vld [vmem:[#allocation2 + $0xc8] sm:$0xff] }
 0x525   :  { %4810 = vmatmul.msk.f32.vlgmr.msra.gmra.mxu2 %vm268_vm3, %v4804_v10  ;;  %4820 = vmatpush.msk.msrb.mxu3 %vm272_vm2, %v2452_v31  ;;  %v2562_v31 = vld [vmem:[#allocation2 + $0x40] sm:$0xff] }
 0x526   :  { %4812 = vmatmul.msk.f32.vlgmr.msra.gmra.mxu3 %vm268_vm3, %v4804_v10  ;;  %v2315_v9 = vpop.permute.xlu1 %2314 }
 0x527   :  { %v2320_v15 = vsel %vm1053_vm12, %v2313_v6, %v2315_v9  ;;  %v2321_v34 = vsel %vm1053_vm12, %v2315_v9, %v2317_v12  ;;  %v2438_v51 = vpop.permute.xlu0 %2437  ;;  %2684 = vmatpush.msra.mxu3 %v2617_v37  ;;  %v2583_v6 = vld [vmem:[#allocation2 + $0xe8] sm:$0xff]  ;;  %v2564_v12 = vld [vmem:[#allocation2 + $0x50] sm:$0xff]  ;;  %v2578_v9 = vld [vmem:[#allocation2 + $0xc0] sm:$0xff] }
 0x528   :  { %v2328_v63 = vmul.f32 %v6985_v29, %v2320_v15  ;;  %v2329_v32 = vmul.f32 %v5505_v44, %v2321_v34  ;;  %v2443_v23 = vsel %vm1175_vm14, %v2438_v51, %v2440_v26  ;;  %v2593_v15 = vld [vmem:[#allocation2 + $0x138] sm:$0xff]  ;;  %v2558_v37 = vld [vmem:[#allocation2 + $0x20] sm:$0xff] }
 0x529   :  { %v2451_v17 = vmul.f32 %v2443_v23, %v6999_v35  ;;  %2685 = vmatpush.msra.mxu3 %v2616_v5  ;;  %v2609_v34 = vld [vmem:[#allocation2 + $0x1b8] sm:$0xff]  ;;  %v2608_v23 = vld [vmem:[#allocation2 + $0x1b0] sm:$0xff] }
 0x52a   :  { %4805 = vmatpush.msk.msra.mxu0 %vm272_vm2, %v2328_v63  ;;  %4807 = vmatpush.msk.msra.mxu1 %vm272_vm2, %v2329_v32  ;;  %v2577_v63 = vld [vmem:[#allocation2 + $0xb8] sm:$0xff]  ;;  %v2592_v32 = vld [vmem:[#allocation2 + $0x130] sm:$0xff] }
 0x52b   :  { %4818 = vmatpush.msk.msrb.mxu2 %vm272_vm2, %v2451_v17  ;;  %2686 = vmatpush.msra.mxu3 %v2615_v27  ;;  %v2557_v5 = vld [vmem:[#allocation2 + $0x18] sm:$0xff] }
 0x52c   :  { %4806 = vmatmul.msk.f32.vlgmr.msra.gmra.mxu0 %vm268_vm3, %v4804_v10  ;;  %4808 = vmatmul.msk.f32.vlgmr.msra.gmra.mxu1 %vm268_vm3, %v4804_v10  ;;  %v2594_v10 = vld [vmem:[#allocation2 + $0x140] sm:$0xff] }
 0x52d   :  { %4819 = vmatmul.msk.f32.vlgmr.msrb.gmra.mxu2 %vm268_vm3, %v4813_v36  ;;  %2687 = vmatpush.msra.mxu3 %v2614_v24 }
 0x52e   :  { %4821 = vmatmul.msk.f32.vlgmr.msrb.gmra.mxu3 %vm268_vm3, %v4813_v36  ;;  %v2434_v44 = vpop.permute.xlu1 %2433  ;;  %2664 = vmatpush.msra.mxu2 %v2601_v50  ;;  %v2606_v50 = vld [vmem:[#allocation2 + $0x1a0] sm:$0xff] }
 0x52f   :  { %v2436_v29 = vpop.permute.xlu0 %2435  ;;  %2688 = vmatpush.msra.mxu3 %v2613_v0  ;;  %v2555_v0 = vld [vmem:[#allocation2 + $0x8] sm:$0xff] }
 0x530   :  { %v2441_v38 = vsel %vm1175_vm14, %v2434_v44, %v2436_v29  ;;  %v2442_v40 = vsel %vm1175_vm14, %v2436_v29, %v2438_v51  ;;  %2665 = vmatpush.msra.mxu2 %v2600_v22  ;;  %v2561_v51 = vld [vmem:[#allocation2 + $0x38] sm:$0xff]  ;;  %v2560_v44 = vld [vmem:[#allocation2 + $0x30] sm:$0xff] }
 0x531   :  { %v2449_v30 = vmul.f32 %v2441_v38, %v7000_v41  ;;  %v2450_v53 = vmul.f32 %v2442_v40, %v7001_v39  ;;  %2689 = vmatpush.msra.mxu3 %v2612_v4  ;;  %v2576_v29 = vld [vmem:[#allocation2 + $0xb0] sm:$0xff]  ;;  %v2591_v38 = vld [vmem:[#allocation2 + $0x128] sm:$0xff]  ;;  %v2605_v22 = vld [vmem:[#allocation2 + $0x198] sm:$0xff] }
 0x532   :  { %2666 = vmatpush.msra.mxu2 %v2599_v8  ;;  %v2607_v41 = vld [vmem:[#allocation2 + $0x1a8] sm:$0xff]  ;;  %v2604_v8 = vld [vmem:[#allocation2 + $0x190] sm:$0xff]  ;;  %v2554_v4 = vld [vmem:[#allocation2] sm:$0xff] }
 0x533   :  { %4814 = vmatpush.msk.msrb.mxu0 %vm272_vm2, %v2449_v30  ;;  %4816 = vmatpush.msk.msrb.mxu1 %vm272_vm2, %v2450_v53  ;;  %v2559_v30 = vld [vmem:[#allocation2 + $0x28] sm:$0xff]  ;;  %v2590_v53 = vld [vmem:[#allocation2 + $0x120] sm:$0xff] }
 0x534   :  { %4815 = vmatmul.msk.f32.vlgmr.msrb.gmra.mxu0 %vm268_vm3, %v4813_v36  ;;  %4817 = vmatmul.msk.f32.vlgmr.msrb.gmra.mxu1 %vm268_vm3, %v4813_v36  ;;  %v2575_v39 = vld [vmem:[#allocation2 + $0xa8] sm:$0xff] }
 0x535   :  { %2624 = vmatpush.msra.mxu0 %v2569_v14  ;;  %2644 = vmatpush.msra.mxu1 %v2585_v59  ;;  %v2574_v14 = vld [vmem:[#allocation2 + $0xa0] sm:$0xff]  ;;  %v2589_v59 = vld [vmem:[#allocation2 + $0x118] sm:$0xff] }
 0x536   :  { %2667 = vmatpush.msra.mxu2 %v2598_v21  ;;  %2690 = vmatpush.msra.mxu3 %v2611_v58  ;;  %v2587_v21 = vld [vmem:[#allocation2 + $0x108] sm:$0xff] }
 0x537   :  { %2625 = vmatpush.msra.mxu0 %v2568_v57  ;;  %2645 = vmatpush.msra.mxu1 %v2584_v60  ;;  %v2573_v57 = vld [vmem:[#allocation2 + $0x98] sm:$0xff]  ;;  %v2588_v60 = vld [vmem:[#allocation2 + $0x110] sm:$0xff] }
 0x538   :  { %2668 = vmatpush.msra.mxu2 %v2597_v55  ;;  %2691 = vmatpush.msra.mxu3 %v2610_v1 }
 0x539   :  { %2626 = vmatpush.msra.mxu0 %v2567_v61  ;;  %2646 = vmatpush.msra.mxu1 %v2583_v6  ;;  %v2556_v61 = vld [vmem:[#allocation2 + $0x10] sm:$0xff] }
 0x53a   :  { %2669 = vmatpush.msra.mxu2 %v2596_v16  ;;  %2692 = vmatpush.msra.mxu3 %v2609_v34  ;;  %v2572_v6 = vld [vmem:[#allocation2 + $0x90] sm:$0xff]  ;;  %v2602_v16 = vld [vmem:[#allocation2 + $0x180] sm:$0xff] }
 0x53b   :  { %2627 = vmatpush.msra.mxu0 %v2566_v62  ;;  %2647 = vmatpush.msra.mxu1 %v2582_v2  ;;  %v2603_v2 = vld [vmem:[#allocation2 + $0x188] sm:$0xff] }
 0x53c   :  { %2670 = vmatpush.msra.mxu2 %v2595_v20  ;;  %2693 = vmatpush.msra.mxu3 %v2608_v23 }
 0x53d   :  { %2628 = vmatpush.msra.mxu0 %v2565_v25  ;;  %2648 = vmatpush.msra.mxu1 %v2581_v48  ;;  %v2571_v25 = vld [vmem:[#allocation2 + $0x88] sm:$0xff]  ;;  %v2586_v48 = vld [vmem:[#allocation2 + $0x100] sm:$0xff] }
 0x53e   :  { %2671 = vmatpush.msra.mxu2 %v2594_v10  ;;  %2694 = vmatpush.msra.mxu3 %v2607_v41 }
 0x53f   :  { %2629 = vmatpush.msra.mxu0 %v2564_v12  ;;  %2649 = vmatpush.msra.mxu1 %v2580_v13  ;;  %v2570_v12 = vld [vmem:[#allocation2 + $0x80] sm:$0xff] }
 0x540   :  { %2672 = vmatpush.msra.mxu2 %v2593_v15  ;;  %2695 = vmatpush.msra.mxu3 %v2606_v50  ;;  %v5951_v13 = vld [vmem:[%s6922_s5] sm:$0xff]  ;;  %s5077_s5 = smov 121  }
 0x541   :  { %2630 = vmatpush.msra.mxu0 %v2563_v33  ;;  %2650 = vmatpush.msra.mxu1 %v2579_v28 }
 0x542   :  { %2673 = vmatpush.msra.mxu2 %v2592_v32  ;;  %2696 = vmatpush.msra.mxu3 %v2605_v22 }
 0x543   :  { %2631 = vmatpush.msra.mxu0 %v2562_v31  ;;  %2651 = vmatpush.msra.mxu1 %v2578_v9 }
 0x544   :  { %2674 = vmatpush.msra.mxu2 %v2591_v38  ;;  %2697 = vmatpush.msra.mxu3 %v2604_v8 }
 0x545   :  { %2632 = vmatpush.msra.mxu0 %v2561_v51  ;;  %2652 = vmatpush.msra.mxu1 %v2577_v63 }
 0x546   :  { %2675 = vmatpush.msra.mxu2 %v2590_v53  ;;  %2698 = vmatpush.msra.mxu3 %v2603_v2 }
 0x547   :  { %2633 = vmatpush.msra.mxu0 %v2560_v44  ;;  %2653 = vmatpush.msra.mxu1 %v2576_v29 }
 0x548   :  { %2676 = vmatpush.msra.mxu2 %v2589_v59  ;;  %2699 = vmatpush.msra.mxu3 %v2602_v16  ;;  %v5076_v16 = vmov 128.0  }
 0x549   :  { %2634 = vmatpush.msra.mxu0 %v2559_v30  ;;  %2654 = vmatpush.msra.mxu1 %v2575_v39  ;;  %4964 = vrcp.f32 %v5076_v16  ;;  %v2770_v16 = vld [vmem:[%s6924_s7] sm:$0xff] }
 0x54a   :  { %2677 = vmatpush.msra.mxu2 %v2588_v60  ;;  %2621 = vperm.xlu2 %4937, %v5951_v13  }
 0x54b   :  { %2635 = vmatpush.msra.mxu0 %v2558_v37  ;;  %2655 = vmatpush.msra.mxu1 %v2574_v14 }
 0x54c   :  { %2678 = vmatpush.msra.mxu2 %v2587_v21 }
 0x54d   :  { %2636 = vmatpush.msra.mxu0 %v2557_v5  ;;  %2656 = vmatpush.msra.mxu1 %v2573_v57 }
 0x54e   :  { %2679 = vmatpush.msra.mxu2 %v2586_v48 }
 0x54f   :  { %2637 = vmatpush.msra.mxu0 %v2556_v61  ;;  %2657 = vmatpush.msra.mxu1 %v2572_v6 }
 0x551   :  { %v5918_v45 = vpop.f32.mrf.mxu0  ;;  %2638 = vmatpush.msra.mxu0 %v2555_v0  ;;  %2658 = vmatpush.msra.mxu1 %v2571_v25 }
 0x552   :  { %4938 = vset.pattern.permute.xlu2 %v6983_v43 }
 0x553   :  { %2639 = vmatpush.msra.mxu0 %v2554_v4  ;;  %2659 = vmatpush.msra.mxu1 %v2570_v12  ;;  %v4965_v4 = vpop.eup %4964 }
 0x554   :  { %v2707_v12 = vmul.f32 128.0, %v4965_v4  ;;  %vm2711_vm2 = vweird.f32 %v4965_v4 }
 0x561   :  { %v5920_v46 = vpop.f32.mrf.mxu1 }
 0x567   :  { %v5916_v3 = vpop.f32.mrf.mxu2 }
 0x568   :  { %v5922_v54 = vpop.f32.mrf.mxu3 }
 0x56f   :  { %v5924_v18 = vpop.f32.mrf.mxu2 }
 0x570   :  { %v1709_v15 = vadd.f32 %v5924_v18, %v5916_v3 }
 0x571   :  { %v5926_v19 = vpop.f32.mrf.mxu0  ;;  %v5928_v42 = vpop.f32.mrf.mxu1 }
 0x572   :  { %v1669_v34 = vadd.f32 %v5926_v19, %v5918_v45  ;;  %v1689_v63 = vadd.f32 %v5928_v42, %v5920_v46 }
 0x578   :  { %v5930_v52 = vpop.f32.mrf.mxu3 }
 0x579   :  { %v5934_v11 = vpop.f32.mrf.mxu0  ;;  %v5938_v47 = vpop.f32.mrf.mxu1  ;;  %v1729_v51 = vadd.f32 %v5930_v52, %v5922_v54 }
 0x57a   :  { %v1848_v23 = vadd.f32 %v5934_v11, %v1669_v34  ;;  %v1849_v29 = vadd.f32 %v5938_v47, %v1689_v63 }
 0x57e   :  { %v5932_v7 = vpop.f32.mrf.mxu2 }
 0x57f   :  { %v1850_v32 = vadd.f32 %v5932_v7, %v1709_v15 }
 0x580   :  { %v5936_v26 = vpop.f32.mrf.mxu3 }
 0x581   :  { %v1851_v44 = vadd.f32 %v5936_v26, %v1729_v51 }
 0x587   :  { %v5940_v35 = vpop.f32.mrf.mxu2 }
 0x588   :  { %v5944_v36 = vpop.f32.mrf.mxu0  ;;  %v1971_v38 = vadd.f32 %v5940_v35, %v1850_v32 }
 0x589   :  { %v5942_v17 = vpop.f32.mrf.mxu3  ;;  %v5946_v40 = vpop.f32.mrf.mxu1  ;;  %v1969_v45 = vadd.f32 %v5944_v36, %v1848_v23 }
 0x58a   :  { %v1972_v3 = vadd.f32 %v5942_v17, %v1851_v44  ;;  %v1970_v54 = vadd.f32 %v5946_v40, %v1849_v29 }
 0x590   :  { %v2043_v27 = vpop.f32.mrf.mxu2 }
 0x591   :  { %v2063_v24 = vpop.f32.mrf.mxu3  ;;  %v2003_v62 = vpop.f32.mrf.mxu0  ;;  %v2068_v19 = vadd.f32 %v2043_v27, %v1971_v38 }
 0x592   :  { %v2023_v55 = vpop.f32.mrf.mxu1  ;;  %v2069_v42 = vadd.f32 %v2063_v24, %v1972_v3  ;;  %v2066_v7 = vadd.f32 %v2003_v62, %v1969_v45 }
 0x593   :  { %v2067_v11 = vadd.f32 %v2023_v55, %v1970_v54 }
 0x598   :  { %v2164_v20 = vpop.f32.mrf.mxu2 }
 0x599   :  { %v2184_v58 = vpop.f32.mrf.mxu3  ;;  %v2124_v33 = vpop.f32.mrf.mxu0  ;;  %v2189_v30 = vadd.f32 %v2164_v20, %v2068_v19  ;;  %v2708_v20 = vsub.f32 1.0, %v2707_v12  ;;  %v4837_v12 = vld [vmem:[%s6924_s7 + $0x30] sm:$0xff] }
 0x59a   :  { %v2144_v28 = vpop.f32.mrf.mxu1  ;;  %v2190_v26 = vadd.f32 %v2184_v58, %v2069_v42  ;;  %v2187_v39 = vadd.f32 %v2124_v33, %v2066_v7 }
 0x59b   :  { %v2188_v47 = vadd.f32 %v2144_v28, %v2067_v11  ;;  %v2709_v58 = vmul.f32 %v4965_v4, %v2708_v20  ;;  %v7003_v11 = vmov 0.0   ;;  %v4839_v20 = vld [vmem:[%s6924_s7 + $0x38] sm:$0xff] }
 0x59d   :  { %v2710_v33 = vadd.f32 %v4965_v4, %v2709_v58 }
 0x59f   :  { %v5971_v28 = vsel %vm2711_vm2, %v4965_v4, %v2710_v33  ;;  %vm2980_vm2 = vcmask 982016  }
 0x5a0   :  { %v2285_v10 = vpop.f32.mrf.mxu2 }
 0x5a1   :  { %v2305_v1 = vpop.f32.mrf.mxu3  ;;  %v2245_v31 = vpop.f32.mrf.mxu0  ;;  %v2310_v53 = vadd.f32 %v2285_v10, %v2189_v30 }
 0x5a2   :  { %v2265_v9 = vpop.f32.mrf.mxu1  ;;  %v2311_v35 = vadd.f32 %v2305_v1, %v2190_v26  ;;  %v2308_v50 = vadd.f32 %v2245_v31, %v2187_v39 }
 0x5a3   :  { %v2309_v17 = vadd.f32 %v2265_v9, %v2188_v47 }
 0x5a4   :  { %v2622_v6 = vpop.permute.xlu2 %2621 }
 0x5a8   :  { %v2406_v18 = vpop.f32.mrf.mxu2 }
 0x5a9   :  { %v2426_v52 = vpop.f32.mrf.mxu3  ;;  %v2366_v46 = vpop.f32.mrf.mxu0  ;;  %v2431_v37 = vadd.f32 %v2406_v18, %v2310_v53 }
 0x5aa   :  { %v2386_v41 = vpop.f32.mrf.mxu1  ;;  %v2432_v36 = vadd.f32 %v2426_v52, %v2311_v35  ;;  %v2429_v14 = vadd.f32 %v2366_v46, %v2308_v50  ;;  %v4829_v50 = vld [vmem:[%s6924_s7 + $0x10] sm:$0xff] }
 0x5ab   :  { %v2430_v40 = vadd.f32 %v2386_v41, %v2309_v17 }
 0x5b0   :  { %v2527_v59 = vpop.f32.mrf.mxu2 }
 0x5b1   :  { %v2552_v22 = vadd.f32 %v2527_v59, %v2431_v37  ;;  %v2547_v5 = vpop.f32.mrf.mxu3  ;;  %v2487_v57 = vpop.f32.mrf.mxu0  ;;  %v6013_v59 = vld [vmem:[%s6925_s8] sm:$0xff] }
 0x5b2   :  { %v2553_v60 = vadd.f32 %v2547_v5, %v2432_v36  ;;  %v2550_v8 = vadd.f32 %v2487_v57, %v2429_v14  ;;  %v2507_v27 = vpop.f32.mrf.mxu1  ;;  %v4826_v14 = vld [vmem:[%s6924_s7 + $0x8] sm:$0xff] }
 0x5b3   :  { %v2551_v61 = vadd.f32 %v2507_v27, %v2430_v40  ;;  %2680 = vmatmul.f32.vlgmr.msra.gmra.mxu2 %v2552_v22  ;;  %v4833_v27 = vld [vmem:[%s6924_s7 + $0x20] sm:$0xff] }
 0x5b4   :  { %2700 = vmatmul.f32.vlgmr.msra.gmra.mxu3 %v2553_v60  ;;  %2640 = vmatmul.f32.vlgmr.msra.gmra.mxu0 %v2550_v8  ;;  %v4831_v8 = vld [vmem:[%s6924_s7 + $0x18] sm:$0xff] }
 0x5b5   :  { %2660 = vmatmul.f32.vlgmr.msra.gmra.mxu1 %v2551_v61 }
 0x631   :  { %v2641_v21 = vpop.f32.mrf.mxu0 }
 0x632   :  { %v2642_v24 = vadd.f32 %v2641_v21, %v2622_v6  ;;  %v2661_v62 = vpop.f32.mrf.mxu1 }
 0x634   :  { %v2662_v2 = vadd.f32 %v2661_v62, %v2642_v24 }
 0x636   :  { %v2681_v55 = vpop.f32.mrf.mxu2 }
 0x637   :  { %v2682_v0 = vadd.f32 %v2681_v55, %v2662_v2  ;;  %v2701_v25 = vpop.f32.mrf.mxu3 }
 0x639   :  { %v2702_v48 = vadd.f32 %v2701_v25, %v2682_v0 }
 0x63b   :  { %2704 = vadd.xlane.f32.xlu1 %v2702_v48 }
 0x6ae   :  { %v2705_v10 = vpop.xlane.xlu1 %2704 }
 0x6af   :  { %v2713_v1 = vmul.f32 %v5971_v28, %v2705_v10 }
 0x6b1   :  { %v2714_v31 = vsub.f32 %v2702_v48, %v2713_v1  ;;  %v4835_v1 = vld [vmem:[%s6924_s7 + $0x28] sm:$0xff] }
 0x6b3   :  { %v2715_v9 = vmul.f32 %v2714_v31, %v2714_v31 }
 0x6b5   :  { %2716 = vadd.xlane.f32.xlu0 %v2715_v9 }
 0x728   :  { %v2717_v15 = vpop.xlane.xlu0 %2716 }
 0x729   :  { %v2718_v34 = vmul.f32 %v2717_v15, %v5971_v28 }
 0x72b   :  { %v2719_v51 = vadd.f32 1e-05, %v2718_v34 }
 0x72d   :  { %4966 = vrsqrt.f32 %v2719_v51  ;;  %vm2726_vm11 = vweird.f32 %v2719_v51 }
 0x733   :  { %v4967_v63 = vpop.eup %4966 }
 0x734   :  { %v2721_v32 = vmul.f32 %v4967_v63, %v2719_v51  ;;  %vm2727_vm7 = vweird.f32 %v4967_v63  ;;  %v4841_v51 = vld [vmem:[%s6924_s7 + $0x40] sm:$0xff]  ;;  %s5087_s7 = smov 3  }
 0x735   :  { %vm2728_vm9 = vmor %vm2726_vm11, %vm2727_vm7  ;;  %vm3012_vm7 = vcmask 973824  }
 0x736   :  { %v2722_v23 = vmul.f32 %v4967_v63, %v2721_v32 }
 0x738   :  { %v2723_v44 = vmul.f32 0.5, %v2722_v23 }
 0x73a   :  { %v2724_v29 = vsub.f32 1.5, %v2723_v44 }
 0x73c   :  { %v2725_v38 = vmul.f32 %v4967_v63, %v2724_v29 }
 0x73e   :  { %v2729_v3 = vsel %vm2728_vm9, %v4967_v63, %v2725_v38 }
 0x73f   :  { %v2730_v45 = vmul.f32 %v2729_v3, %v5951_v13 }
 0x741   :  { %2733 = vperm.xlu2 %4938, %v2730_v45  }
 0x749   :  { %4939 = vset.pattern.permute.xlu2 %v5075_v49 }
 0x74a   :  { %2738 = vperm.xlu2 %4939, %v5951_v13   ;;  %v7002_v13 = vld [vmem:[#allocation9_spill] sm:$0xff] }
 0x74b   :  { %v2744_v42 = vshra.s32 %v7002_v13, 3  ;;  %v2743_v7 = vand.u32 7, %v7002_v13 }
 0x74d   :  { %v2745_v41 = vand.u32 7, %v2744_v42  ;;  %vm2755_vm14 = vcmp.le.s32.totalorder %v2743_v7, 6  ;;  %vm2752_vm10 = vcmp.ge.s32.totalorder %v2743_v7, 1 }
 0x74e   :  { %v5993_v26 = vsel %vm2755_vm14, 1.0, %v7003_v11  ;;  %v6018_v40 = vsel %vm2752_vm10, 1.0, %v7003_v11 }
 0x74f   :  { %vm2746_vm12 = vcmp.ge.s32.totalorder %v2745_v41, 1  ;;  %vm2749_vm13 = vcmp.le.s32.totalorder %v2745_v41, 6 }
 0x750   :  { %v5990_v30 = vsel %vm2746_vm12, 1.0, %v7003_v11  ;;  %v6023_v60 = vsel %vm2749_vm13, 1.0, %v7003_v11 }
 0x751   :  { %v5997_v39 = vmul.f32 %v5993_v26, %v5990_v30  ;;  %v6033_v61 = vmul.f32 %v6018_v40, %v6023_v60  ;;  %v6037_v6 = vmul.f32 %v6018_v40, %v5990_v30 }
 0x752   :  { %4943 = vset.pattern.permute.xlu2 %v6984_v56 }
 0x79b   :  { %v2734_v18 = vpop.permute.xlu2 %2733 }
 0x79c   :  { %v2736_v54 = vmul.f32 %v2734_v18, %v2714_v31  ;;  %v6068_v31 = vmul.f32 %v5993_v26, %v6023_v60 }
 0x7a4   :  { %v2739_v19 = vpop.permute.xlu2 %2738 }
 0x7a5   :  { %v2741_v52 = vadd.f32 %v2739_v19, %v2736_v54 }
 0x7a7   :  { %v2742_v46 = vmax.f32 %v2741_v52, 0.0 }
 0x7a9   :  { %2945 = vrot.lane.b32.xlu0 %v2742_v46, %s5077_s5  ;;  %2764 = vrot.lane.b32.xlu1 %v2742_v46, %s5078_s30 }
 0x7aa   :  { %2825 = vrot.lane.b32.xlu2 %v2742_v46, %s5079_s20 }
 0x7b1   :  { %3043 = vperm.xlu0 %4940, %v6013_v59  }
 0x7b2   :  { %2771 = vrot.lane.b32.xlu2 %v2742_v46, %s5060_s19 }
 0x7b9   :  { %4941 = vset.pattern.permute.xlu0 %v6983_v43 }
 0x7ba   :  { %2857 = vrot.lane.b32.xlu2 %v2742_v46, %s5068_s18 }
 0x7c2   :  { %2977 = vrot.lane.b32.xlu2 %v2742_v46, %s5080_s22 }
 0x7ca   :  { %2914 = vrot.lane.b32.xlu2 %v2742_v46, %s5069_s1 }
 0x7d2   :  { %3009 = vrot.lane.b32.xlu2 %v2742_v46, %s5081_s11 }
 0x804   :  { %v2826_v47 = vpop.permute.xlu2 %2825 }
 0x805   :  { %v2829_v53 = vsel %vm2828_vm6, 0.0, %v2826_v47 }
 0x806   :  { %v2830_v35 = vmul.f32 %v2829_v53, %v5997_v39 }
 0x808   :  { %2851 = vmatpush.msrb.mxu2 %v2830_v35 }
 0x809   :  { %4830 = vmatmul.msk.f32.vlgmr.msrb.gmra.mxu2 %vm2774_vm8, %v4829_v50 }
 0x80c   :  { %v2772_v17 = vpop.permute.xlu2 %2771 }
 0x80d   :  { %v2775_v37 = vsel %vm2774_vm8, 0.0, %v2772_v17 }
 0x80e   :  { %v2776_v36 = vmul.f32 %v5990_v30, %v2775_v37 }
 0x810   :  { %2797 = vmatpush.msrb.mxu0 %v2776_v36 }
 0x811   :  { %4827 = vmatmul.msk.f32.vlgmr.msrb.gmra.mxu0 %vm2774_vm8, %v4826_v14 }
 0x812   :  { %2908 = vmatpush.msra.mxu0 %v2742_v46 }
 0x814   :  { %v2858_v22 = vpop.permute.xlu2 %2857 }
 0x815   :  { %v2860_v5 = vsel %vm590_vm0, 0.0, %v2858_v22 }
 0x816   :  { %v2861_v57 = vmul.f32 %v6018_v40, %v2860_v5 }
 0x818   :  { %2882 = vmatpush.msrb.mxu3 %v2861_v57 }
 0x819   :  { %4832 = vmatmul.msk.f32.vlgmr.msrb.gmra.mxu3 %vm2774_vm8, %v4831_v8  ;;  %4834 = vmatmul.msk.f32.vlgmr.msra.gmra.mxu0 %vm2774_vm8, %v4833_v27 }
 0x81b   :  { %v2946_v21 = vpop.permute.xlu0 %2945  ;;  %v2765_v24 = vpop.permute.xlu1 %2764 }
 0x81c   :  { %v2949_v62 = vsel %vm2948_vm15, %v2946_v21, 0.0  ;;  %v2768_v2 = vsel %vm2767_vm4, 0.0, %v2765_v24  ;;  %v2978_v55 = vpop.permute.xlu2 %2977 }
 0x81d   :  { %v2950_v0 = vmul.f32 %v2949_v62, %v6033_v61  ;;  %v2769_v25 = vmul.f32 %v2768_v2, %v6037_v6  ;;  %v2981_v48 = vsel %vm2980_vm2, %v2978_v55, 0.0 }
 0x81e   :  { %v2982_v4 = vmul.f32 %v6023_v60, %v2981_v48 }
 0x81f   :  { %2820 = vmatpush.msrb.mxu1 %v2769_v25  ;;  %2971 = vmatpush.msra.mxu2 %v2950_v0 }
 0x820   :  { %3003 = vmatpush.msra.mxu3 %v2982_v4  ;;  %4828 = vmatmul.msk.f32.vlgmr.msrb.gmra.mxu1 %vm2774_vm8, %v2770_v16 }
 0x821   :  { %4838 = vmatmul.msk.f32.vlgmr.msra.gmra.mxu2 %vm2774_vm8, %v4837_v12  ;;  %4840 = vmatmul.msk.f32.vlgmr.msra.gmra.mxu3 %vm2774_vm8, %v4839_v20 }
 0x823   :  { %v3044_v47 = vpop.permute.xlu0 %3043 }
 0x824   :  { %v2915_v58 = vpop.permute.xlu2 %2914 }
 0x825   :  { %v2917_v33 = vsel %vm809_vm5, %v2915_v58, 0.0 }
 0x826   :  { %v2918_v10 = vmul.f32 %v5993_v26, %v2917_v33 }
 0x828   :  { %2939 = vmatpush.msra.mxu1 %v2918_v10 }
 0x829   :  { %4836 = vmatmul.msk.f32.vlgmr.msra.gmra.mxu1 %vm2774_vm8, %v4835_v1 }
 0x82c   :  { %v3010_v9 = vpop.permute.xlu2 %3009 }
 0x82d   :  { %v3013_v15 = vsel %vm3012_vm7, %v3010_v9, 0.0 }
 0x82e   :  { %v3014_v34 = vmul.f32 %v3013_v15, %v6068_v31 }
 0x830   :  { %3035 = vmatpush.msrb.mxu0 %v3014_v34 }
 0x831   :  { %4842 = vmatmul.msk.f32.vlgmr.msrb.gmra.mxu0 %vm2774_vm8, %v4841_v51 }
 0x88c   :  { %v2853_v32 = vpop.f32.mrf.mxu2 }
 0x88e   :  { %v2799_v63 = vpop.f32.mrf.mxu0 }
 0x896   :  { %v2910_v3 = vpop.f32.mrf.mxu0 }
 0x89c   :  { %v2884_v29 = vpop.f32.mrf.mxu3 }
 0x89d   :  { %v2822_v23 = vpop.f32.mrf.mxu1 }
 0x89e   :  { %v2823_v44 = vadd.f32 %v2822_v23, %v2799_v63 }
 0x8a0   :  { %v2856_v38 = vadd.f32 %v2853_v32, %v2823_v44 }
 0x8a2   :  { %v2887_v45 = vadd.f32 %v2884_v29, %v2856_v38 }
 0x8a4   :  { %v2913_v18 = vadd.f32 %v2910_v3, %v2887_v45  ;;  %v2973_v19 = vpop.f32.mrf.mxu2  ;;  %v3005_v42 = vpop.f32.mrf.mxu3 }
 0x8a6   :  { %v2941_v54 = vpop.f32.mrf.mxu1 }
 0x8a7   :  { %v2944_v52 = vadd.f32 %v2941_v54, %v2913_v18 }
 0x8a9   :  { %v2976_v46 = vadd.f32 %v2973_v19, %v2944_v52 }
 0x8ab   :  { %v3008_v7 = vadd.f32 %v3005_v42, %v2976_v46  ;;  %v4849_v46 = vld [vmem:[%s6926_s9 + $0x20] sm:$0xff] }
 0x8ae   :  { %v3037_v41 = vpop.f32.mrf.mxu0 }
 0x8af   :  { %v3040_v53 = vadd.f32 %v3037_v41, %v3008_v7 }
 0x8b1   :  { %v3046_v35 = vadd.f32 %v3044_v47, %v3040_v53  ;;  %v4850_v47 = vld [vmem:[%s6926_s9 + $0x28] sm:$0xff] }
 0x8b3   :  { %3047 = vadd.xlane.f32.xlu1 %v3046_v35 }
 0x926   :  { %v3048_v50 = vpop.xlane.xlu1 %3047 }
 0x927   :  { %v3049_v17 = vmul.f32 %v3048_v50, %v5971_v28 }
 0x929   :  { %v3050_v37 = vsub.f32 %v3046_v35, %v3049_v17 }
 0x92b   :  { %v3051_v36 = vmul.f32 %v3050_v37, %v3050_v37 }
 0x92d   :  { %3052 = vadd.xlane.f32.xlu2 %v3051_v36 }
 0x9a0   :  { %v3053_v14 = vpop.xlane.xlu2 %3052 }
 0x9a1   :  { %v3054_v22 = vmul.f32 %v3053_v14, %v5971_v28  ;;  %v4843_v14 = vld [vmem:[%s6926_s9 + $0x10] sm:$0xff] }
 0x9a3   :  { %v3055_v5 = vadd.f32 1e-05, %v3054_v22  ;;  %v4866_v22 = vld [vmem:[%s6926_s9 + $0x68] sm:$0xff] }
 0x9a5   :  { %4968 = vrsqrt.f32 %v3055_v5  ;;  %vm3062_vm9 = vweird.f32 %v3055_v5 }
 0x9ab   :  { %v4969_v57 = vpop.eup %4968 }
 0x9ac   :  { %v3057_v8 = vmul.f32 %v4969_v57, %v3055_v5  ;;  %vm3063_vm11 = vweird.f32 %v4969_v57 }
 0x9ad   :  { %vm3064_vm12 = vmor %vm3062_vm9, %vm3063_vm11  ;;  %vm3609_vm9 = vcmask 39936  }
 0x9ae   :  { %v3058_v27 = vmul.f32 %v4969_v57, %v3057_v8 }
 0x9b0   :  { %v3059_v21 = vmul.f32 0.5, %v3058_v27  ;;  %v3118_v27 = vld [vmem:[%s6926_s9 + $0x8] sm:$0xff] }
 0x9b2   :  { %v3060_v24 = vsub.f32 1.5, %v3059_v21 }
 0x9b4   :  { %v3061_v62 = vmul.f32 %v4969_v57, %v3060_v24  ;;  %v4844_v24 = vld [vmem:[%s6926_s9 + $0x18] sm:$0xff] }
 0x9b6   :  { %v3065_v2 = vsel %vm3064_vm12, %v4969_v57, %v3061_v62  ;;  %v4853_v62 = vld [vmem:[%s6926_s9 + $0x30] sm:$0xff] }
 0x9b7   :  { %v3066_v55 = vmul.f32 %v3065_v2, %v6013_v59 }
 0x9b9   :  { %3069 = vperm.xlu0 %4941, %v3066_v55  }
 0x9c1   :  { %4942 = vset.pattern.permute.xlu0 %v5075_v49 }
 0x9c2   :  { %3074 = vperm.xlu0 %4942, %v6013_v59  }
 0x9ca   :  { %4944 = vset.pattern.permute.xlu0 %v6984_v56 }
 0xa2b   :  { %v3070_v28 = vpop.permute.xlu0 %3069 }
 0xa2c   :  { %v3072_v0 = vmul.f32 %v3070_v28, %v3050_v37  ;;  %v3117_v37 = vld [vmem:[%s6926_s9] sm:$0xff] }
 0xa34   :  { %v3075_v25 = vpop.permute.xlu0 %3074 }
 0xa35   :  { %v3077_v48 = vadd.f32 %v3075_v25, %v3072_v0  ;;  %v4861_v0 = vld [vmem:[%s6926_s9 + $0x50] sm:$0xff] }
 0xa37   :  { %v3079_v16 = vmul.f32 0.2, %v3077_v48  ;;  %vm3078_vm14 = vcmp.ge.f32.partialorder %v3077_v48, 0.0 }
 0xa39   :  { %v3080_v4 = vsel %vm3078_vm14, %v3077_v48, %v3079_v16  ;;  %v4857_v48 = vld [vmem:[%s6926_s9 + $0x40] sm:$0xff]  ;;  %v4854_v16 = vld [vmem:[%s6926_s9 + $0x38] sm:$0xff]  ;;  %vm3906_vm14 = vcmask 228352  }
 0xa3a   :  { %3089 = vrot.lane.b32.xlu2 %v3080_v4, %s5069_s1  ;;  %3082 = vrot.lane.b32.xlu1 %v3080_v4, %s5068_s18  ;;  %v3087_v59 = vmul.f32 2.0, %v3080_v4  ;;  %v4869_v4 = vld [vmem:[%s6926_s9 + $0x70] sm:$0xff] }
 0xa94   :  { %v3090_v12 = vpop.permute.xlu2 %3089 }
 0xa95   :  { %v3092_v58 = vsel %vm809_vm5, %v3090_v12, 0.0  ;;  %v4873_v12 = vld [vmem:[%s6926_s9 + $0x80] sm:$0xff] }
 0xa96   :  { %v3093_v1 = vmul.f32 %v5993_v26, %v3092_v58  ;;  %v4874_v58 = vld [vmem:[%s6926_s9 + $0x88] sm:$0xff] }
 0xaac   :  { %v3083_v20 = vpop.permute.xlu1 %3082 }
 0xaad   :  { %v3085_v33 = vsel %vm590_vm0, 0.0, %v3083_v20  ;;  %v4870_v20 = vld [vmem:[%s6926_s9 + $0x78] sm:$0xff] }
 0xaae   :  { %v3086_v10 = vmul.f32 %v6018_v40, %v3085_v33  ;;  %v3468_v33 = vld [vmem:[#allocation4 + $0x78] sm:$0xff] }
 0xab0   :  { %v3088_v9 = vadd.f32 %v3087_v59, %v3086_v10  ;;  %v3467_v59 = vld [vmem:[#allocation4 + $0x70] sm:$0xff]  ;;  %v3466_v10 = vld [vmem:[#allocation4 + $0x68] sm:$0xff] }
 0xab2   :  { %v3094_v15 = vadd.f32 %v3093_v1, %v3088_v9  ;;  %v3465_v1 = vld [vmem:[#allocation4 + $0x60] sm:$0xff]  ;;  %v3464_v9 = vld [vmem:[#allocation4 + $0x58] sm:$0xff] }
 0xab4   :  { %v3095_v34 = vmul.f32 0.25, %v3094_v15  ;;  %v3463_v15 = vld [vmem:[#allocation4 + $0x50] sm:$0xff] }
 0xab6   :  { %3097 = vrot.lane.b32.xlu0 %v3095_v34, %s5060_s19  ;;  %v3102_v23 = vmul.f32 2.0, %v3095_v34 }
 0xabe   :  { %3104 = vrot.lane.b32.xlu0 %v3095_v34, %s5080_s22  ;;  %v3462_v34 = vld [vmem:[#allocation4 + $0x48] sm:$0xff] }
 0xb28   :  { %v3098_v51 = vpop.permute.xlu0 %3097 }
 0xb29   :  { %v3100_v63 = vsel %vm2774_vm8, 0.0, %v3098_v51  ;;  %v3461_v51 = vld [vmem:[#allocation4 + $0x40] sm:$0xff] }
 0xb2a   :  { %v3101_v32 = vmul.f32 %v5990_v30, %v3100_v63  ;;  %v3460_v63 = vld [vmem:[#allocation4 + $0x38] sm:$0xff] }
 0xb2c   :  { %v3103_v38 = vadd.f32 %v3102_v23, %v3101_v32  ;;  %v3459_v32 = vld [vmem:[#allocation4 + $0x30] sm:$0xff]  ;;  %v3458_v23 = vld [vmem:[#allocation4 + $0x28] sm:$0xff] }
 0xb30   :  { %v3105_v44 = vpop.permute.xlu0 %3104 }
 0xb31   :  { %v3107_v29 = vsel %vm2980_vm2, %v3105_v44, 0.0  ;;  %v3457_v44 = vld [vmem:[#allocation4 + $0x20] sm:$0xff] }
 0xb32   :  { %v3108_v3 = vmul.f32 %v6023_v60, %v3107_v29  ;;  %v3456_v29 = vld [vmem:[#allocation4 + $0x18] sm:$0xff] }
 0xb34   :  { %v3109_v45 = vadd.f32 %v3108_v3, %v3103_v38  ;;  %v3455_v38 = vld [vmem:[#allocation4 + $0x10] sm:$0xff] }
 0xb36   :  { %v3110_v18 = vmul.f32 0.25, %v3109_v45  ;;  %v3454_v45 = vld [vmem:[#allocation4 + $0x8] sm:$0xff] }
 0xb38   :  { %3185 = vrot.lane.b32.xlu2 %v3110_v18, %s5079_s20  ;;  %3112 = vrot.lane.b32.xlu1 %v3110_v18, %s5078_s30  ;;  %s5088_s20 = smov 123  }
 0xb39   :  { %3119 = vrot.lane.b32.xlu0 %v3110_v18, %s5060_s19 }
 0xb40   :  { %3336 = vrot.lane.b32.xlu2 %v3110_v18, %s5077_s5  ;;  %3297 = vrot.lane.b32.xlu1 %v3110_v18, %s5069_s1 }
 0xb41   :  { %3224 = vrot.lane.b32.xlu0 %v3110_v18, %s5068_s18 }
 0xb48   :  { %3414 = vrot.lane.b32.xlu1 %v3110_v18, %s5081_s11 }
 0xb49   :  { %3375 = vrot.lane.b32.xlu0 %v3110_v18, %s5080_s22 }
 0xb92   :  { %v3186_v54 = vpop.permute.xlu2 %3185 }
 0xb93   :  { %v3188_v19 = vsel %vm2828_vm6, 0.0, %v3186_v54  ;;  %v3453_v54 = vld [vmem:[#allocation4] sm:$0xff] }
 0xb94   :  { %v3189_v52 = vmul.f32 %v3188_v19, %v5997_v39  ;;  %v4865_v39 = vld [vmem:[%s6926_s9 + $0x60] sm:$0xff] }
 0xb96   :  { %3214 = vmatpush.msrb.mxu3 %v3189_v52 }
 0xb97   :  { %4851 = vmatmul.msk.f32.vlgmr.msrb.gmra.mxu3 %vm2774_vm8, %v4849_v46 }
 0xb9a   :  { %v3337_v42 = vpop.permute.xlu2 %3336 }
 0xb9b   :  { %v3339_v7 = vsel %vm2948_vm15, %v3337_v42, 0.0 }
 0xb9c   :  { %v3340_v41 = vmul.f32 %v3339_v7, %v6033_v61  ;;  %v6193_v7 = vld [vmem:[%s6927_s10] sm:$0xff] }
 0xb9d   :  { %3473 = vperm.xlu0 %4944, %v6193_v7  }
 0xb9e   :  { %3365 = vmatpush.msra.mxu3 %v3340_v41  ;;  %v6198_v41 = vld [vmem:[%s6927_s10 + $0x8] sm:$0xff]  ;;  %s5083_s10 = smov 4  }
 0xb9f   :  { %4852 = vmatmul.msk.f32.gmra.mxu3 %vm2774_vm8, %v4850_v47  ;;  %3478 = vperm.xlu2 %4943, %v6198_v41  }
 0xba5   :  { %4946 = vset.pattern.permute.xlu0 %v5075_v49 }
 0xba7   :  { %4867 = vmatmul.msk.f32.vlgmr.msra.gmra.mxu3 %vm2774_vm8, %v4865_v39  ;;  %4945 = vset.pattern.permute.xlu2 %v6983_v43 }
 0xbaa   :  { %v3113_v53 = vpop.permute.xlu1 %3112 }
 0xbab   :  { %v3115_v35 = vsel %vm2767_vm4, 0.0, %v3113_v53  ;;  %v3120_v50 = vpop.permute.xlu0 %3119 }
 0xbac   :  { %v3116_v17 = vmul.f32 %v3115_v35, %v6037_v6  ;;  %v3122_v61 = vsel %vm2774_vm8, 0.0, %v3120_v50 }
 0xbad   :  { %v3123_v36 = vmul.f32 %v5990_v30, %v3122_v61 }
 0xbae   :  { %3177 = vmatpush.msrb.mxu2 %v3116_v17 }
 0xbaf   :  { %3148 = vmatpush.msrb.mxu1 %v3123_v36  ;;  %4847 = vmatmul.msk.f32.vlgmr.msrb.gmra.mxu2 %vm2774_vm8, %v3117_v37 }
 0xbb0   :  { %4845 = vmatmul.msk.f32.vlgmr.msrb.gmra.mxu1 %vm2774_vm8, %v4843_v14  ;;  %4868 = vmatmul.msk.f32.gmra.mxu3 %vm2774_vm8, %v4866_v22 }
 0xbb1   :  { %3287 = vmatpush.msra.mxu1 %v3110_v18 }
 0xbb2   :  { %v3298_v6 = vpop.permute.xlu1 %3297 }
 0xbb3   :  { %v3300_v30 = vsel %vm809_vm5, %v3298_v6, 0.0  ;;  %v3225_v5 = vpop.permute.xlu0 %3224  ;;  %vm3504_vm5 = vcmask 261120  }
 0xbb4   :  { %v3301_v57 = vmul.f32 %v5993_v26, %v3300_v30  ;;  %v3227_v8 = vsel %vm590_vm0, 0.0, %v3225_v5 }
 0xbb5   :  { %v3228_v21 = vmul.f32 %v6018_v40, %v3227_v8 }
 0xbb6   :  { %3326 = vmatpush.msra.mxu2 %v3301_v57 }
 0xbb7   :  { %3253 = vmatpush.msra.mxu0 %v3228_v21  ;;  %4848 = vmatmul.msk.f32.gmra.mxu2 %vm2774_vm8, %v3118_v27 }
 0xbb8   :  { %4846 = vmatmul.msk.f32.gmra.mxu1 %vm2774_vm8, %v4844_v24  ;;  %4855 = vmatmul.msk.f32.vlgmr.msra.gmra.mxu0 %vm2774_vm8, %v4853_v62 }
 0xbb9   :  { %3481 = vmatpush.msrb.mxu2 %v3468_v33 }
 0xbba   :  { %v3415_v26 = vpop.permute.xlu1 %3414 }
 0xbbb   :  { %v3417_v2 = vsel %vm3012_vm7, %v3415_v26, 0.0  ;;  %v3376_v40 = vpop.permute.xlu0 %3375  ;;  %3482 = vmatpush.msrb.mxu2 %v3467_v59  ;;  %v5082_v59 = vmov 32.0  }
 0xbbc   :  { %v3418_v55 = vmul.f32 %v3417_v2, %v6068_v31  ;;  %v3378_v28 = vsel %vm2980_vm2, %v3376_v40, 0.0  ;;  %v4858_v31 = vld [vmem:[%s6926_s9 + $0x48] sm:$0xff]  ;;  %4970 = vrcp.f32 %v5082_v59 }
 0xbbd   :  { %v3379_v25 = vmul.f32 %v6023_v60, %v3378_v28  ;;  %v4862_v60 = vld [vmem:[%s6926_s9 + $0x58] sm:$0xff]  ;;  %3483 = vmatpush.msrb.mxu2 %v3466_v10 }
 0xbbe   :  { %3443 = vmatpush.msrb.mxu1 %v3418_v55 }
 0xbbf   :  { %3404 = vmatpush.msrb.mxu0 %v3379_v25  ;;  %4863 = vmatmul.msk.f32.vlgmr.msra.gmra.mxu2 %vm2774_vm8, %v4861_v0 }
 0xbc0   :  { %4859 = vmatmul.msk.f32.vlgmr.msra.gmra.mxu1 %vm2774_vm8, %v4857_v48  ;;  %4856 = vmatmul.msk.f32.gmra.mxu0 %vm2774_vm8, %v4854_v16 }
 0xbc1   :  { %3484 = vmatpush.msrb.mxu2 %v3465_v1 }
 0xbc2   :  { %v4971_v10 = vpop.eup %4970 }
 0xbc3   :  { %3485 = vmatpush.msrb.mxu2 %v3464_v9  ;;  %v3512_v1 = vmul.f32 32.0, %v4971_v10  ;;  %vm3516_vm6 = vweird.f32 %v4971_v10 }
 0xbc5   :  { %3486 = vmatpush.msrb.mxu2 %v3463_v15  ;;  %v3513_v9 = vsub.f32 1.0, %v3512_v1 }
 0xbc7   :  { %4864 = vmatmul.msk.f32.gmra.mxu2 %vm2774_vm8, %v4862_v60  ;;  %v3514_v15 = vmul.f32 %v4971_v10, %v3513_v9 }
 0xbc8   :  { %4860 = vmatmul.msk.f32.gmra.mxu1 %vm2774_vm8, %v4858_v31  ;;  %4871 = vmatmul.msk.f32.vlgmr.msrb.gmra.mxu0 %vm2774_vm8, %v4869_v4 }
 0xbc9   :  { %3487 = vmatpush.msrb.mxu2 %v3462_v34  ;;  %v3515_v34 = vadd.f32 %v4971_v10, %v3514_v15 }
 0xbcb   :  { %3488 = vmatpush.msrb.mxu2 %v3461_v51  ;;  %v6206_v51 = vsel %vm3516_vm6, %v4971_v10, %v3515_v34  ;;  %vm3693_vm6 = vcmask 23552  }
 0xbcd   :  { %3489 = vmatpush.msrb.mxu2 %v3460_v63 }
 0xbcf   :  { %3490 = vmatpush.msrb.mxu2 %v3459_v32 }
 0xbd0   :  { %4875 = vmatmul.msk.f32.vlgmr.msrb.gmra.mxu1 %vm2774_vm8, %v4873_v12  ;;  %4872 = vmatmul.msk.f32.gmra.mxu0 %vm2774_vm8, %v4870_v20 }
 0xbd1   :  { %3491 = vmatpush.msrb.mxu2 %v3458_v23 }
 0xbd3   :  { %3492 = vmatpush.msrb.mxu2 %v3457_v44 }
 0xbd5   :  { %3493 = vmatpush.msrb.mxu2 %v3456_v29 }
 0xbd7   :  { %3494 = vmatpush.msrb.mxu2 %v3455_v38 }
 0xbd8   :  { %4876 = vmatmul.msk.f32.gmra.mxu1 %vm2774_vm8, %v4874_v58 }
 0xbd9   :  { %3495 = vmatpush.msrb.mxu2 %v3454_v45 }
 0xbdb   :  { %3496 = vmatpush.msrb.mxu2 %v3453_v54 }
 0xbf9   :  { %v3479_v12 = vpop.permute.xlu2 %3478 }
 0xc0f   :  { %v3474_v16 = vpop.permute.xlu0 %3473 }
 0xc1a   :  { %v3216_v18 = vpop.f32.mrf.mxu3 }
 0xc22   :  { %v3219_v47 = vpop.f32.mrf.mxu3 }
 0xc2a   :  { %v3367_v14 = vpop.f32.mrf.mxu3 }
 0xc2d   :  { %v3150_v3 = vpop.f32.mrf.mxu1 }
 0xc32   :  { %v3179_v19 = vpop.f32.mrf.mxu2 }
 0xc33   :  { %v3180_v42 = vadd.f32 %v3179_v19, %v3150_v3  ;;  %v3370_v26 = vpop.f32.mrf.mxu3 }
 0xc35   :  { %v3153_v52 = vpop.f32.mrf.mxu1  ;;  %v3255_v46 = vpop.f32.mrf.mxu0  ;;  %v3222_v53 = vadd.f32 %v3216_v18, %v3180_v42 }
 0xc37   :  { %v3261_v17 = vadd.f32 %v3255_v46, %v3222_v53 }
 0xc3a   :  { %v3182_v39 = vpop.f32.mrf.mxu2 }
 0xc3b   :  { %v3183_v61 = vadd.f32 %v3182_v39, %v3153_v52 }
 0xc3d   :  { %v3289_v35 = vpop.f32.mrf.mxu1  ;;  %v3258_v50 = vpop.f32.mrf.mxu0  ;;  %v3223_v22 = vadd.f32 %v3219_v47, %v3183_v61 }
 0xc3e   :  { %v3295_v37 = vadd.f32 %v3289_v35, %v3261_v17 }
 0xc3f   :  { %v3262_v57 = vadd.f32 %v3258_v50, %v3223_v22 }
 0xc42   :  { %v3328_v36 = vpop.f32.mrf.mxu2 }
 0xc43   :  { %v3334_v6 = vadd.f32 %v3328_v36, %v3295_v37 }
 0xc45   :  { %v3292_v30 = vpop.f32.mrf.mxu1  ;;  %v3406_v5 = vpop.f32.mrf.mxu0  ;;  %v3373_v8 = vadd.f32 %v3367_v14, %v3334_v6 }
 0xc46   :  { %v3296_v27 = vadd.f32 %v3292_v30, %v3262_v57 }
 0xc47   :  { %v3412_v24 = vadd.f32 %v3406_v5, %v3373_v8 }
 0xc4a   :  { %v3331_v21 = vpop.f32.mrf.mxu2 }
 0xc4b   :  { %v3335_v62 = vadd.f32 %v3331_v21, %v3296_v27 }
 0xc4d   :  { %v3445_v2 = vpop.f32.mrf.mxu1  ;;  %v3374_v55 = vadd.f32 %v3370_v26, %v3335_v62  ;;  %v3409_v28 = vpop.f32.mrf.mxu0 }
 0xc4e   :  { %v3451_v40 = vadd.f32 %v3445_v2, %v3412_v24 }
 0xc4f   :  { %v3413_v0 = vadd.f32 %v3409_v28, %v3374_v55 }
 0xc50   :  { %3497 = vmatmul.f32.vlgmr.msrb.gmra.mxu2 %v3451_v40 }
 0xc55   :  { %v3448_v25 = vpop.f32.mrf.mxu1 }
 0xc56   :  { %v3452_v48 = vadd.f32 %v3448_v25, %v3413_v0 }
 0xc58   :  { %3500 = vmatmul.f32.gmra.mxu2 %v3452_v48 }
 0xcd3   :  { %v3498_v60 = vpop.f32.mrf.mxu2 }
 0xcd4   :  { %v3499_v31 = vadd.f32 %v3498_v60, %v3474_v16  ;;  %v3580_v16 = vand.u32 3, %v7002_v13 }
 0xcd6   :  { %v3505_v4 = vsel %vm3504_vm5, %v3499_v31, 0.0  ;;  %vm3589_vm11 = vcmp.ge.s32.totalorder %v3580_v16, 1 }
 0xcd7   :  { %3506 = vadd.xlane.f32.xlu2 %v3505_v4 }
 0xcdb   :  { %v3501_v20 = vpop.f32.mrf.mxu2 }
 0xcdc   :  { %v3502_v58 = vadd.f32 %v3501_v20, %v3479_v12  ;;  %v6250_v20 = vsel %vm3589_vm11, 1.0, %v7003_v11 }
 0xcde   :  { %v3508_v33 = vsel %vm3504_vm5, %v3502_v58, 0.0 }
 0xcdf   :  { %3509 = vadd.xlane.f32.xlu1 %v3508_v33 }
 0xd4a   :  { %v3507_v63 = vpop.xlane.xlu2 %3506 }
 0xd4b   :  { %v3518_v32 = vmul.f32 %v6206_v51, %v3507_v63 }
 0xd4d   :  { %v3520_v23 = vsub.f32 %v3499_v31, %v3518_v32 }
 0xd4f   :  { %v3522_v44 = vmul.f32 %v3520_v23, %v3520_v23 }
 0xd51   :  { %v3524_v29 = vsel %vm3504_vm5, %v3522_v44, 0.0 }
 0xd52   :  { %v3510_v38 = vpop.xlane.xlu1 %3509  ;;  %3525 = vadd.xlane.f32.xlu2 %v3524_v29  ;;  %v3627_v29 = vld [vmem:[#allocation6 + $0x10] sm:$0xff] }
 0xd53   :  { %v3519_v3 = vmul.f32 %v6206_v51, %v3510_v38 }
 0xd55   :  { %v3521_v45 = vsub.f32 %v3502_v58, %v3519_v3 }
 0xd57   :  { %v3523_v18 = vmul.f32 %v3521_v45, %v3521_v45 }
 0xd59   :  { %v3527_v54 = vsel %vm3504_vm5, %v3523_v18, 0.0 }
 0xd5a   :  { %3528 = vadd.xlane.f32.xlu0 %v3527_v54 }
 0xd6e   :  { %3573 = vperm.xlu0 %4946, %v6198_v41  }
 0xdc5   :  { %v3526_v19 = vpop.xlane.xlu2 %3525 }
 0xdc6   :  { %v3530_v52 = vmul.f32 %v3526_v19, %v6206_v51 }
 0xdc8   :  { %v3532_v46 = vadd.f32 1e-05, %v3530_v52 }
 0xdca   :  { %4972 = vrsqrt.f32 %v3532_v46  ;;  %vm3540_vm10 = vweird.f32 %v3532_v46 }
 0xdcd   :  { %v3529_v42 = vpop.xlane.xlu0 %3528 }
 0xdce   :  { %v3531_v47 = vmul.f32 %v3529_v42, %v6206_v51 }
 0xdd0   :  { %v4973_v39 = vpop.eup %4972  ;;  %v3533_v53 = vadd.f32 1e-05, %v3531_v47 }
 0xdd1   :  { %v3535_v35 = vmul.f32 %v4973_v39, %v3532_v46  ;;  %vm3541_vm8 = vweird.f32 %v4973_v39 }
 0xdd2   :  { %4974 = vrsqrt.f32 %v3533_v53  ;;  %vm3542_vm13 = vmor %vm3540_vm10, %vm3541_vm8  ;;  %vm3550_vm4 = vweird.f32 %v3533_v53  ;;  %vm3861_vm8 = vcmask 236544   ;;  %vm3816_vm10 = vcmask 252928  }
 0xdd3   :  { %v3536_v50 = vmul.f32 %v4973_v39, %v3535_v35 }
 0xdd5   :  { %v3537_v17 = vmul.f32 0.5, %v3536_v50 }
 0xdd7   :  { %v3538_v61 = vsub.f32 1.5, %v3537_v17 }
 0xdd8   :  { %v4975_v37 = vpop.eup %4974 }
 0xdd9   :  { %v3539_v36 = vmul.f32 %v4973_v39, %v3538_v61  ;;  %v3545_v14 = vmul.f32 %v4975_v37, %v3533_v53  ;;  %vm3551_vm15 = vweird.f32 %v4975_v37  ;;  %v3614_v53 = vld [vmem:[#allocation6] sm:$0xff] }
 0xdda   :  { %vm3552_vm2 = vmor %vm3550_vm4, %vm3551_vm15 }
 0xddb   :  { %v3546_v22 = vmul.f32 %v4975_v37, %v3545_v14  ;;  %v3543_v6 = vsel %vm3542_vm13, %v4973_v39, %v3539_v36  ;;  %v3628_v39 = vld [vmem:[#allocation6 + $0x18] sm:$0xff]  ;;  %vm3951_vm13 = vcmask 220160  }
 0xddc   :  { %v3554_v30 = vmul.f32 %v3543_v6, %v6193_v7  ;;  %v3615_v6 = vld [vmem:[#allocation6 + $0x8] sm:$0xff] }
 0xddd   :  { %v3547_v5 = vmul.f32 0.5, %v3546_v22 }
 0xdde   :  { %3558 = vperm.xlu2 %4945, %v3554_v30   ;;  %v3743_v30 = vld [vmem:[#allocation6 + $0x30] sm:$0xff] }
 0xddf   :  { %v3548_v57 = vsub.f32 1.5, %v3547_v5 }
 0xde0   :  { %v3574_v62 = vpop.permute.xlu0 %3573 }
 0xde1   :  { %v3549_v8 = vmul.f32 %v4975_v37, %v3548_v57  ;;  %v3699_v57 = vld [vmem:[#allocation6 + $0x20] sm:$0xff] }
 0xde3   :  { %v3553_v27 = vsel %vm3552_vm2, %v4975_v37, %v3549_v8  ;;  %v6282_v8 = vld [vmem:[%s6930_s13 + $0x8] sm:$0xff] }
 0xde4   :  { %v3555_v21 = vmul.f32 %v3553_v27, %v6198_v41  ;;  %v6287_v27 = vld [vmem:[%s6930_s13] sm:$0xff] }
 0xde6   :  { %3563 = vperm.xlu1 %4947, %v3555_v21   ;;  %4949 = vset.pattern.permute.xlu2 %v6984_v56 }
 0xdee   :  { %4948 = vset.pattern.permute.xlu1 %v5075_v49 }
 0xdef   :  { %3569 = vperm.xlu1 %4948, %v6193_v7   ;;  %v3581_v7 = vshra.s32 %v7002_v13, 2 }
 0xdf1   :  { %v3582_v48 = vand.u32 3, %v3581_v7 }
 0xdf3   :  { %vm3583_vm7 = vcmp.ge.s32.totalorder %v3582_v48, 1  ;;  %vm3586_vm12 = vcmp.le.s32.totalorder %v3582_v48, 2 }
 0xdf4   :  { %v4877_v60 = vsel %vm3583_vm7, 1.0, %v7003_v11 }
 0xdf5   :  { %v3595_v58 = vmul.f32 %v6250_v20, %v4877_v60 }
 0xdf7   :  { %4950 = vset.pattern.permute.xlu1 %v6984_v56 }
 0xe38   :  { %v3559_v40 = vpop.permute.xlu2 %3558 }
 0xe39   :  { %v3566_v41 = vmul.f32 %v3559_v40, %v3520_v23  ;;  %v3744_v40 = vld [vmem:[#allocation6 + $0x38] sm:$0xff] }
 0xe58   :  { %v3564_v24 = vpop.permute.xlu1 %3563 }
 0xe59   :  { %v3567_v26 = vmul.f32 %v3564_v24, %v3521_v45  ;;  %v6259_v45 = vsel %vm3586_vm12, 1.0, %v7003_v11 }
 0xe5a   :  { %v3597_v21 = vmul.f32 %v6250_v20, %v6259_v45 }
 0xe5b   :  { %v3577_v2 = vadd.f32 %v3574_v62, %v3567_v26 }
 0xe5d   :  { %v6221_v55 = vmax.f32 %v3577_v2, 0.0 }
 0xe5f   :  { %3618 = vrot.lane.b32.xlu2 %v6221_v55, %s5083_s10 }
 0xe61   :  { %v3570_v28 = vpop.permute.xlu1 %3569 }
 0xe62   :  { %v3576_v0 = vadd.f32 %v3570_v28, %v3566_v41  ;;  %v3700_v28 = vld [vmem:[#allocation6 + $0x28] sm:$0xff] }
 0xe64   :  { %v6224_v25 = vmax.f32 %v3576_v0, 0.0  ;;  %v3867_v0 = vld [vmem:[#allocation6 + $0x60] sm:$0xff] }
 0xe66   :  { %3732 = vrot.lane.b32.xlu0 %v6224_v25, %s5068_s18  ;;  %3616 = vrot.lane.b32.xlu1 %v6224_v25, %s5083_s10 }
 0xe67   :  { %3605 = vrot.lane.b32.xlu2 %v6221_v55, %s5084_s3 }
 0xe6e   :  { %3855 = vrot.lane.b32.xlu0 %v6224_v25, %s5085_s25  ;;  %3603 = vrot.lane.b32.xlu1 %v6224_v25, %s5084_s3 }
 0xe6f   :  { %3734 = vrot.lane.b32.xlu2 %v6221_v55, %s5068_s18 }
 0xe76   :  { %3900 = vrot.lane.b32.xlu0 %v6224_v25, %s5086_s26  ;;  %3689 = vrot.lane.b32.xlu1 %v6221_v55, %s5087_s7 }
 0xe77   :  { %3687 = vrot.lane.b32.xlu2 %v6224_v25, %s5087_s7 }
 0xe7e   :  { %3945 = vrot.lane.b32.xlu0 %v6224_v25, %s5088_s20  ;;  %3857 = vrot.lane.b32.xlu1 %v6221_v55, %s5085_s25 }
 0xe7f   :  { %3902 = vrot.lane.b32.xlu2 %v6221_v55, %s5086_s26 }
 0xe86   :  { %3812 = vrot.lane.b32.xlu1 %v6221_v55, %s5069_s1 }
 0xe87   :  { %3810 = vrot.lane.b32.xlu2 %v6224_v25, %s5069_s1 }
 0xe8e   :  { %3947 = vrot.lane.b32.xlu1 %v6221_v55, %s5088_s20 }
 0xe8f   :  { %3992 = vperm.xlu2 %4949, %v6287_v27  }
 0xe96   :  { %3997 = vperm.xlu1 %4950, %v6282_v8  }
 0xe97   :  { %4951 = vset.pattern.permute.xlu2 %v5075_v49 }
 0xe98   :  { %4063 = vperm.xlu2 %4951, %v6282_v8  }
 0xe9e   :  { %4953 = vset.pattern.permute.xlu1 %v6983_v43 }
 0xea0   :  { %4952 = vset.pattern.permute.xlu2 %v6983_v43 }
 0xeb9   :  { %v3619_v31 = vpop.permute.xlu2 %3618 }
 0xeba   :  { %v3623_v4 = vsel %vm268_vm3, 0.0, %v3619_v31  ;;  %v3778_v31 = vld [vmem:[#allocation6 + $0x48] sm:$0xff] }
 0xebb   :  { %v3625_v12 = vmul.f32 %v4877_v60, %v3623_v4  ;;  %v3912_v4 = vld [vmem:[#allocation6 + $0x70] sm:$0xff] }
 0xebd   :  { %3649 = vmatpush.msrb.mxu3 %v3625_v12 }
 0xec1   :  { %v3606_v33 = vpop.permute.xlu2 %3605 }
 0xec2   :  { %v3611_v59 = vsel %vm3609_vm9, 0.0, %v3606_v33 }
 0xec3   :  { %v3613_v10 = vmul.f32 %v3611_v59, %v3595_v58 }
 0xec5   :  { %3678 = vmatpush.msra.mxu0 %v3613_v10 }
 0xec9   :  { %v3735_v1 = vpop.permute.xlu2 %3734 }
 0xeca   :  { %v3739_v63 = vsel %vm590_vm0, 0.0, %v3735_v1 }
 0xecb   :  { %v3741_v3 = vmul.f32 %v6250_v20, %v3739_v63 }
 0xed1   :  { %v3688_v9 = vpop.permute.xlu2 %3687 }
 0xed2   :  { %v3694_v37 = vsel %vm3693_vm6, 0.0, %v3688_v9 }
 0xed8   :  { %v3617_v15 = vpop.permute.xlu1 %3616  ;;  %v3733_v34 = vpop.permute.xlu0 %3732 }
 0xed9   :  { %v3622_v32 = vsel %vm268_vm3, 0.0, %v3617_v15  ;;  %v3903_v23 = vpop.permute.xlu2 %3902  ;;  %v3738_v38 = vsel %vm590_vm0, 0.0, %v3733_v34  ;;  %vm3592_vm3 = vcmp.le.s32.totalorder %v3580_v16, 2  ;;  %v3913_v34 = vld [vmem:[#allocation6 + $0x78] sm:$0xff] }
 0xeda   :  { %v3624_v44 = vmul.f32 %v4877_v60, %v3622_v32  ;;  %v3908_v18 = vsel %vm3906_vm14, %v3903_v23, 0.0  ;;  %v3740_v54 = vmul.f32 %v6250_v20, %v3738_v38  ;;  %v6267_v35 = vsel %vm3592_vm3, 1.0, %v7003_v11  ;;  %v3822_v20 = vld [vmem:[#allocation6 + $0x50] sm:$0xff]  ;;  %v3823_v32 = vld [vmem:[#allocation6 + $0x58] sm:$0xff]  ;;  %v3957_v23 = vld [vmem:[#allocation6 + $0x80] sm:$0xff] }
 0xedb   :  { %v3910_v19 = vmul.f32 %v6259_v45, %v3908_v18  ;;  %v3596_v50 = vmul.f32 %v6267_v35, %v4877_v60  ;;  %v3598_v59 = vmul.f32 %v6267_v35, %v6259_v45  ;;  %vm4316_vm3 = vcmask 1041409  }
 0xedc   :  { %3650 = vmatpush.msrb.mxu3 %v3624_v44  ;;  %v3958_v44 = vld [vmem:[#allocation6 + $0x88] sm:$0xff] }
 0xedd   :  { %4881 = vmatmul.msk.f32.vlgmr.msrb.gmra.mxu3 %vm253_vm1, %v3627_v29  ;;  %v3696_v5 = vmul.f32 %v3694_v37, %v3596_v50 }
 0xede   :  { %3765 = vmatpush.msra.mxu3 %v3741_v3 }
 0xee0   :  { %3766 = vmatpush.msra.mxu3 %v3740_v54  ;;  %v3604_v52 = vpop.permute.xlu1 %3603  ;;  %v3856_v46 = vpop.permute.xlu0 %3855 }
 0xee1   :  { %v3610_v42 = vsel %vm3609_vm9, 0.0, %v3604_v52  ;;  %v3862_v62 = vsel %vm3861_vm8, %v3856_v46, 0.0 }
 0xee2   :  { %3934 = vmatpush.msrb.mxu3 %v3910_v19  ;;  %v3612_v47 = vmul.f32 %v3610_v42, %v3595_v58  ;;  %v3864_v41 = vmul.f32 %v3862_v62, %v3597_v21  ;;  %v3868_v58 = vld [vmem:[#allocation6 + $0x68] sm:$0xff] }
 0xee4   :  { %3679 = vmatpush.msra.mxu0 %v3612_v47 }
 0xee5   :  { %4882 = vmatmul.msk.f32.gmra.mxu3 %vm253_vm1, %v3628_v39  ;;  %4883 = vmatmul.msk.f32.vlgmr.msra.gmra.mxu0 %vm253_vm1, %v3614_v53 }
 0xee6   :  { %3799 = vmatpush.msrb.mxu0 %v6221_v55  ;;  %v3777_v55 = vld [vmem:[#allocation6 + $0x40] sm:$0xff] }
 0xee8   :  { %3800 = vmatpush.msrb.mxu0 %v6224_v25  ;;  %v3690_v17 = vpop.permute.xlu1 %3689  ;;  %v3901_v61 = vpop.permute.xlu0 %3900 }
 0xee9   :  { %v3695_v36 = vsel %vm3693_vm6, 0.0, %v3690_v17  ;;  %v3907_v14 = vsel %vm3906_vm14, %v3901_v61, 0.0  ;;  %v3811_v25 = vpop.permute.xlu2 %3810  ;;  %vm4269_vm14 = vcmask 130112   ;;  %vm4318_vm6 = vcmask 1042434  }
 0xeea   :  { %v3697_v22 = vmul.f32 %v3695_v36, %v3596_v50  ;;  %v3909_v11 = vmul.f32 %v6259_v45, %v3907_v14  ;;  %v3817_v48 = vsel %vm3816_vm10, %v3811_v25, 0.0 }
 0xeeb   :  { %v3819_v12 = vmul.f32 %v6267_v35, %v3817_v48 }
 0xeec   :  { %3721 = vmatpush.msra.mxu1 %v3697_v22  ;;  %3935 = vmatpush.msrb.mxu3 %v3909_v11 }
 0xeed   :  { %4884 = vmatmul.msk.f32.gmra.mxu0 %vm253_vm1, %v3615_v6  ;;  %4887 = vmatmul.msk.f32.vlgmr.msra.gmra.mxu3 %vm253_vm1, %v3743_v30 }
 0xeee   :  { %3722 = vmatpush.msra.mxu1 %v3696_v5 }
 0xeef   :  { %4885 = vmatmul.msk.f32.vlgmr.msra.gmra.mxu1 %vm253_vm1, %v3699_v57 }
 0xef0   :  { %v3858_v24 = vpop.permute.xlu1 %3857  ;;  %v3946_v33 = vpop.permute.xlu0 %3945 }
 0xef1   :  { %v3863_v26 = vsel %vm3861_vm8, %v3858_v24, 0.0  ;;  %v3952_v1 = vsel %vm3951_vm13, %v3946_v33, 0.0  ;;  %v3993_v5 = vpop.permute.xlu2 %3992  ;;  %vm4320_vm8 = vcmask 1043459  }
 0xef2   :  { %v3865_v2 = vmul.f32 %v3863_v26, %v3597_v21  ;;  %v3954_v63 = vmul.f32 %v3952_v1, %v3598_v59 }
 0xef4   :  { %3889 = vmatpush.msra.mxu2 %v3865_v2 }
 0xef5   :  { %4888 = vmatmul.msk.f32.gmra.mxu3 %vm253_vm1, %v3744_v40  ;;  %4889 = vmatmul.msk.f32.vlgmr.msrb.gmra.mxu0 %vm253_vm1, %v3777_v55 }
 0xef6   :  { %3890 = vmatpush.msra.mxu2 %v3864_v41 }
 0xef7   :  { %4886 = vmatmul.msk.f32.gmra.mxu1 %vm253_vm1, %v3700_v28  ;;  %4893 = vmatmul.msk.f32.vlgmr.msra.gmra.mxu2 %vm253_vm1, %v3867_v0 }
 0xef8   :  { %v3813_v7 = vpop.permute.xlu1 %3812 }
 0xef9   :  { %v3818_v16 = vsel %vm3816_vm10, %v3813_v7, 0.0  ;;  %vm4322_vm10 = vcmask 1044484  }
 0xefa   :  { %v3820_v60 = vmul.f32 %v6267_v35, %v3818_v16 }
 0xefc   :  { %3844 = vmatpush.msrb.mxu1 %v3820_v60  ;;  %v6317_v60 = vpop.permute.xlu2 %4063 }
 0xefd   :  { %4890 = vmatmul.msk.f32.gmra.mxu0 %vm253_vm1, %v3778_v31  ;;  %4895 = vmatmul.msk.f32.vlgmr.msrb.gmra.mxu3 %vm253_vm1, %v3912_v4 }
 0xefe   :  { %3845 = vmatpush.msrb.mxu1 %v3819_v12 }
 0xeff   :  { %4891 = vmatmul.msk.f32.vlgmr.msrb.gmra.mxu1 %vm253_vm1, %v3822_v20  ;;  %4894 = vmatmul.msk.f32.gmra.mxu2 %vm253_vm1, %v3868_v58 }
 0xf00   :  { %v3948_v10 = vpop.permute.xlu1 %3947 }
 0xf01   :  { %v3953_v9 = vsel %vm3951_vm13, %v3948_v10, 0.0  ;;  %vm4324_vm13 = vcmask 1045509  }
 0xf02   :  { %v3955_v15 = vmul.f32 %v3953_v9, %v3598_v59 }
 0xf04   :  { %3979 = vmatpush.msra.mxu0 %v3955_v15 }
 0xf05   :  { %4896 = vmatmul.msk.f32.gmra.mxu3 %vm253_vm1, %v3913_v34 }
 0xf06   :  { %3980 = vmatpush.msra.mxu0 %v3954_v63 }
 0xf07   :  { %4892 = vmatmul.msk.f32.gmra.mxu1 %vm253_vm1, %v3823_v32  ;;  %4897 = vmatmul.msk.f32.vlgmr.msra.gmra.mxu0 %vm253_vm1, %v3957_v23 }
 0xf08   :  { %v3998_v25 = vpop.permute.xlu1 %3997 }
 0xf0f   :  { %4898 = vmatmul.msk.f32.gmra.mxu0 %vm253_vm1, %v3958_v44 }
 0xf60   :  { %v3652_v29 = vpop.f32.mrf.mxu3 }
 0xf62   :  { %v3681_v38 = vpop.f32.mrf.mxu0 }
 0xf63   :  { %v3682_v52 = vadd.f32 %v3681_v38, %v3652_v29 }
 0xf68   :  { %v3655_v3 = vpop.f32.mrf.mxu3 }
 0xf6a   :  { %v3684_v45 = vpop.f32.mrf.mxu0 }
 0xf6b   :  { %v3685_v35 = vadd.f32 %v3684_v45, %v3655_v3 }
 0xf6c   :  { %v3724_v18 = vpop.f32.mrf.mxu1 }
 0xf6d   :  { %v3730_v42 = vadd.f32 %v3724_v18, %v3682_v52 }
 0xf70   :  { %v3768_v54 = vpop.f32.mrf.mxu3 }
 0xf71   :  { %v3774_v47 = vadd.f32 %v3768_v54, %v3730_v42 }
 0xf72   :  { %v3802_v19 = vpop.f32.mrf.mxu0 }
 0xf73   :  { %v3808_v50 = vadd.f32 %v3802_v19, %v3774_v47 }
 0xf74   :  { %v3727_v46 = vpop.f32.mrf.mxu1 }
 0xf75   :  { %v3731_v37 = vadd.f32 %v3727_v46, %v3685_v35 }
 0xf78   :  { %v3771_v39 = vpop.f32.mrf.mxu3 }
 0xf79   :  { %v3775_v14 = vadd.f32 %v3771_v39, %v3731_v37 }
 0xf7a   :  { %v3892_v53 = vpop.f32.mrf.mxu2  ;;  %v3805_v17 = vpop.f32.mrf.mxu0 }
 0xf7b   :  { %v3809_v6 = vadd.f32 %v3805_v17, %v3775_v14  ;;  %v6339_v14 = vld [vmem:[%s6931_s14] sm:$0xff] }
 0xf7c   :  { %v3847_v61 = vpop.f32.mrf.mxu1 }
 0xf7d   :  { %v3853_v36 = vadd.f32 %v3847_v61, %v3808_v50 }
 0xf7f   :  { %v3898_v22 = vadd.f32 %v3892_v53, %v3853_v36 }
 0xf80   :  { %v3937_v11 = vpop.f32.mrf.mxu3 }
 0xf81   :  { %v3943_v30 = vadd.f32 %v3937_v11, %v3898_v22 }
 0xf82   :  { %v3895_v57 = vpop.f32.mrf.mxu2 }
 0xf84   :  { %v3850_v21 = vpop.f32.mrf.mxu1  ;;  %v3982_v24 = vpop.f32.mrf.mxu0 }
 0xf85   :  { %v3854_v62 = vadd.f32 %v3850_v21, %v3809_v6  ;;  %v3988_v26 = vadd.f32 %v3982_v24, %v3943_v30 }
 0xf87   :  { %v4000_v2 = vadd.f32 %v3993_v5, %v3988_v26  ;;  %v3899_v40 = vadd.f32 %v3895_v57, %v3854_v62  ;;  %v6354_v5 = vld [vmem:[%s6931_s14 + $0x90] sm:$0xff]  ;;  %v6359_v57 = vld [vmem:[%s6931_s14 + $0x80] sm:$0xff] }
 0xf88   :  { %v3940_v55 = vpop.f32.mrf.mxu3 }
 0xf89   :  { %v4002_v41 = vsel %vm3504_vm5, %v4000_v2, 0.0  ;;  %v3944_v28 = vadd.f32 %v3940_v55, %v3899_v40  ;;  %v6375_v40 = vld [vmem:[%s6931_s14 + $0xb0] sm:$0xff] }
 0xf8a   :  { %4003 = vadd.xlane.f32.xlu0 %v4002_v41 }
 0xf8c   :  { %v3985_v0 = vpop.f32.mrf.mxu0 }
 0xf8d   :  { %v3989_v7 = vadd.f32 %v3985_v0, %v3944_v28 }
 0xf8f   :  { %v4001_v48 = vadd.f32 %v3998_v25, %v3989_v7  ;;  %v6386_v25 = vld [vmem:[%s6931_s14 + $0x20] sm:$0xff]  ;;  %v6391_v7 = vld [vmem:[%s6931_s14 + $0xd0] sm:$0xff] }
 0xf91   :  { %v4005_v16 = vsel %vm3504_vm5, %v4001_v48, 0.0 }
 0xf92   :  { %4006 = vadd.xlane.f32.xlu2 %v4005_v16 }
 0xf9e   :  { %4059 = vperm.xlu0 %4946, %v6287_v27  }
 0xfa6   :  { %4956 = vset.pattern.permute.xlu0 %v6984_v56 }
 0xffd   :  { %v4004_v31 = vpop.xlane.xlu0 %4003 }
 0xffe   :  { %v4008_v4 = vmul.f32 %v4004_v31, %v6206_v51 }
0x1000   :  { %v4010_v12 = vsub.f32 %v4000_v2, %v4008_v4  ;;  %v6370_v2 = vld [vmem:[%s6931_s14 + $0xa0] sm:$0xff] }
0x1002   :  { %v4012_v20 = vmul.f32 %v4010_v12, %v4010_v12 }
0x1004   :  { %v4014_v58 = vsel %vm3504_vm5, %v4012_v20, 0.0 }
0x1005   :  { %4015 = vadd.xlane.f32.xlu1 %v4014_v58  ;;  %v4007_v33 = vpop.xlane.xlu2 %4006 }
0x1006   :  { %v4009_v59 = vmul.f32 %v4007_v33, %v6206_v51  ;;  %v6404_v33 = vld [vmem:[%s6931_s14 + $0xe0] sm:$0xff] }
0x1008   :  { %v6322_v10 = vsub.f32 %v4001_v48, %v4009_v59  ;;  %v6409_v59 = vld [vmem:[%s6931_s14 + $0x40] sm:$0xff] }
0x100a   :  { %v4013_v1 = vmul.f32 %v6322_v10, %v6322_v10 }
0x100c   :  { %v4017_v56 = vsel %vm3504_vm5, %v4013_v1, 0.0 }
0x100d   :  { %4018 = vadd.xlane.f32.xlu0 %v4017_v56 }
0x1010   :  { %v4060_v9 = vpop.permute.xlu0 %4059 }
0x1078   :  { %v4016_v15 = vpop.xlane.xlu1 %4015 }
0x1079   :  { %v4020_v34 = vmul.f32 %v4016_v15, %v6206_v51  ;;  %v6420_v15 = vld [vmem:[%s6931_s14 + $0xc0] sm:$0xff] }
0x107b   :  { %v4022_v63 = vadd.f32 1e-05, %v4020_v34 }
0x107d   :  { %4976 = vrsqrt.f32 %v4022_v63  ;;  %vm4030_vm5 = vweird.f32 %v4022_v63 }
0x1080   :  { %v4019_v32 = vpop.xlane.xlu0 %4018 }
0x1081   :  { %v4021_v23 = vmul.f32 %v4019_v32, %v6206_v51  ;;  %v6432_v32 = vld [vmem:[%s6931_s14 + $0x18] sm:$0xff] }
0x1083   :  { %v4977_v44 = vpop.eup %4976  ;;  %v4023_v29 = vadd.f32 1e-05, %v4021_v23 }
0x1084   :  { %v4025_v38 = vmul.f32 %v4977_v44, %v4022_v63  ;;  %vm4031_vm15 = vweird.f32 %v4977_v44  ;;  %v6427_v63 = vld [vmem:[%s6931_s14 + $0x50] sm:$0xff] }
0x1085   :  { %4978 = vrsqrt.f32 %v4023_v29  ;;  %vm4032_vm4 = vmor %vm4030_vm5, %vm4031_vm15  ;;  %vm4040_vm7 = vweird.f32 %v4023_v29  ;;  %vm4326_vm15 = vcmask 1046534   ;;  %vm4328_vm5 = vcmask 1047559  }
0x1086   :  { %v4026_v3 = vmul.f32 %v4977_v44, %v4025_v38 }
0x1088   :  { %v4027_v45 = vmul.f32 0.5, %v4026_v3 }
0x108a   :  { %v4028_v18 = vsub.f32 1.5, %v4027_v45 }
0x108b   :  { %v4979_v54 = vpop.eup %4978 }
0x108c   :  { %v4029_v19 = vmul.f32 %v4977_v44, %v4028_v18  ;;  %v4035_v52 = vmul.f32 %v4979_v54, %v4023_v29  ;;  %vm4041_vm2 = vweird.f32 %v4979_v54  ;;  %v6446_v18 = vld [vmem:[%s6931_s14 + $0x30] sm:$0xff] }
0x108d   :  { %vm4042_vm11 = vmor %vm4040_vm7, %vm4041_vm2 }
0x108e   :  { %v4036_v46 = vmul.f32 %v4979_v54, %v4035_v52  ;;  %v4033_v42 = vsel %vm4032_vm4, %v4977_v44, %v4029_v19  ;;  %v6456_v19 = vld [vmem:[%s6931_s14 + $0x98] sm:$0xff]  ;;  %vm4637_vm4 = vcmask 10240  }
0x108f   :  { %v4044_v47 = vmul.f32 %v4033_v42, %v6287_v27  ;;  %v6334_v27 = vld [vmem:[%s6931_s14 + $0x10] sm:$0xff] }
0x1090   :  { %v4037_v39 = vmul.f32 0.5, %v4036_v46 }
0x1091   :  { %4048 = vperm.xlu2 %4952, %v4044_v47  }
0x1092   :  { %v4038_v51 = vsub.f32 1.5, %v4037_v39 }
0x1094   :  { %v4039_v53 = vmul.f32 %v4979_v54, %v4038_v51 }
0x1096   :  { %v4043_v35 = vsel %vm4042_vm11, %v4979_v54, %v4039_v53  ;;  %v6451_v54 = vld [vmem:[%s6931_s14 + $0x70] sm:$0xff] }
0x1097   :  { %v4045_v50 = vmul.f32 %v4043_v35, %v6282_v8  ;;  %v6470_v53 = vld [vmem:[%s6931_s14 + $0xf0] sm:$0xff]  ;;  %v6475_v35 = vld [vmem:[%s6931_s14 + $0xa8] sm:$0xff] }
0x1099   :  { %4053 = vperm.xlu1 %4953, %v4045_v50  }
0x10eb   :  { %v4049_v17 = vpop.permute.xlu2 %4048 }
0x10ec   :  { %v4056_v61 = vmul.f32 %v4049_v17, %v4010_v12 }
0x10ee   :  { %v4066_v37 = vadd.f32 %v4060_v9, %v4056_v61 }
0x10f0   :  { %vm4068_vm9 = vcmp.ge.f32.partialorder %v4066_v37, 0.0  ;;  %v4070_v36 = vmul.f32 0.2, %v4066_v37 }
0x10f2   :  { %v6341_v22 = vsel %vm4068_vm9, %v4066_v37, %v4070_v36  ;;  %v6486_v36 = vld [vmem:[%s6931_s14 + $0x60] sm:$0xff] }
0x10f3   :  { %4347 = vrot.lane.b32.xlu1 %v6341_v22, %s5071_s21  ;;  %v4108_v8 = vmul.f32 %v6334_v27, %v6341_v22  ;;  %v4106_v11 = vmul.f32 %v6339_v14, %v6341_v22  ;;  %v4124_v21 = vmul.f32 %v6354_v5, %v6341_v22  ;;  %v4122_v24 = vmul.f32 %v6359_v57, %v6341_v22 }
0x10f4   :  { %v4126_v55 = vmul.f32 %v6370_v2, %v6341_v22  ;;  %v4128_v41 = vmul.f32 %v6375_v40, %v6341_v22  ;;  %v4110_v48 = vmul.f32 %v6386_v25, %v6341_v22  ;;  %v4132_v16 = vmul.f32 %v6391_v7, %v6341_v22 }
0x10f5   :  { %v4144_v6 = vsel %vm253_vm1, %v4108_v8, 0.0  ;;  %v4138_v30 = vsel %vm253_vm1, %v4106_v11, 0.0  ;;  %v4192_v62 = vsel %vm253_vm1, %v4124_v21, 0.0  ;;  %v4186_v26 = vsel %vm253_vm1, %v4122_v24, 0.0  ;;  %v6491_v8 = vld [vmem:[%s6931_s14 + $0x28] sm:$0xff] }
0x10f6   :  { %4145 = vadd.xlane.f32.xlu2 %v4144_v6  ;;  %4139 = vadd.xlane.f32.xlu0 %v4138_v30  ;;  %v4198_v28 = vsel %vm253_vm1, %v4126_v55, 0.0  ;;  %v4204_v0 = vsel %vm253_vm1, %v4128_v41, 0.0  ;;  %v4150_v12 = vsel %vm253_vm1, %v4110_v48, 0.0  ;;  %v4216_v20 = vsel %vm253_vm1, %v4132_v16, 0.0  ;;  %v6502_v24 = vld [vmem:[%s6931_s14 + $0x8] sm:$0xff] }
0x10f7   :  { %v4114_v1 = vmul.f32 %v6409_v59, %v6341_v22  ;;  %v4130_v23 = vmul.f32 %v6420_v15, %v6341_v22  ;;  %v4116_v44 = vmul.f32 %v6427_v63, %v6341_v22  ;;  %v4112_v52 = vmul.f32 %v6446_v18, %v6341_v22 }
0x10f8   :  { %v4120_v46 = vmul.f32 %v6451_v54, %v6341_v22  ;;  %v4136_v50 = vmul.f32 %v6470_v53, %v6341_v22  ;;  %v4118_v11 = vmul.f32 %v6486_v36, %v6341_v22 }
0x10f9   :  { %v4162_v9 = vsel %vm253_vm1, %v4114_v1, 0.0  ;;  %v4210_v38 = vsel %vm253_vm1, %v4130_v23, 0.0  ;;  %v4168_v3 = vsel %vm253_vm1, %v4116_v44, 0.0  ;;  %v4156_v47 = vsel %vm253_vm1, %v4112_v52, 0.0  ;;  %v6560_v44 = vld [vmem:[%s6931_s14 + $0xc8] sm:$0xff] }
0x10fa   :  { %v4180_v39 = vsel %vm253_vm1, %v4120_v46, 0.0  ;;  %v4228_v61 = vsel %vm253_vm1, %v4136_v50, 0.0  ;;  %v4174_v30 = vsel %vm253_vm1, %v4118_v11, 0.0  ;;  %v6574_v46 = vld [vmem:[%s6931_s14 + $0x38] sm:$0xff] }
0x10fe   :  { %4193 = vadd.xlane.f32.xlu2 %v4192_v62  ;;  %4187 = vadd.xlane.f32.xlu0 %v4186_v26  ;;  %v6507_v62 = vld [vmem:[%s6931_s14 + $0xe8] sm:$0xff] }
0x1106   :  { %4199 = vadd.xlane.f32.xlu2 %v4198_v28  ;;  %4205 = vadd.xlane.f32.xlu0 %v4204_v0  ;;  %v6518_v28 = vld [vmem:[%s6931_s14 + $0x88] sm:$0xff]  ;;  %v6525_v0 = vld [vmem:[%s6931_s14 + $0x58] sm:$0xff] }
0x110b   :  { %v4054_v31 = vpop.permute.xlu1 %4053 }
0x110c   :  { %v4057_v4 = vmul.f32 %v4054_v31, %v6322_v10  ;;  %v4134_v10 = vmul.f32 %v6404_v33, %v6341_v22 }
0x110e   :  { %v4067_v58 = vadd.f32 %v6317_v60, %v4057_v4  ;;  %4151 = vadd.xlane.f32.xlu2 %v4150_v12  ;;  %4217 = vadd.xlane.f32.xlu0 %v4216_v20  ;;  %v4222_v60 = vsel %vm253_vm1, %v4134_v10, 0.0  ;;  %v6536_v12 = vld [vmem:[%s6931_s14 + $0xb8] sm:$0xff] }
0x110f   :  { %v6544_v10 = vld [vmem:[%s6931_s14 + $0xd8] sm:$0xff] }
0x1110   :  { %v4071_v56 = vmul.f32 0.2, %v4067_v58  ;;  %vm4069_vm12 = vcmp.ge.f32.partialorder %v4067_v58, 0.0 }
0x1112   :  { %v6422_v34 = vsel %vm4069_vm12, %v4067_v58, %v4071_v56 }
0x1113   :  { %v4109_v29 = vmul.f32 %v6432_v32, %v6422_v34  ;;  %v4125_v42 = vmul.f32 %v6456_v19, %v6422_v34  ;;  %v4127_v17 = vmul.f32 %v6475_v35, %v6422_v34  ;;  %v4111_v6 = vmul.f32 %v6491_v8, %v6422_v34 }
0x1114   :  { %v4107_v22 = vmul.f32 %v6502_v24, %v6422_v34  ;;  %v4135_v26 = vmul.f32 %v6507_v62, %v6422_v34  ;;  %v4123_v48 = vmul.f32 %v6518_v28, %v6422_v34  ;;  %v4117_v16 = vmul.f32 %v6525_v0, %v6422_v34 }
0x1115   :  { %v4147_v45 = vsel %vm253_vm1, %v4109_v29, 0.0  ;;  %v4195_v51 = vsel %vm253_vm1, %v4125_v42, 0.0  ;;  %v4201_v37 = vsel %vm253_vm1, %v4127_v17, 0.0  ;;  %v4153_v21 = vsel %vm253_vm1, %v4111_v6, 0.0 }
0x1116   :  { %4223 = vadd.xlane.f32.xlu2 %v4222_v60  ;;  %4163 = vadd.xlane.f32.xlu0 %v4162_v9  ;;  %v4141_v55 = vsel %vm253_vm1, %v4107_v22, 0.0  ;;  %v4225_v41 = vsel %vm253_vm1, %v4135_v26, 0.0  ;;  %v4189_v31 = vsel %vm253_vm1, %v4123_v48, 0.0  ;;  %v4171_v4 = vsel %vm253_vm1, %v4117_v16, 0.0  ;;  %v6552_v60 = vld [vmem:[%s6931_s14 + $0x48] sm:$0xff] }
0x1117   :  { %v4129_v20 = vmul.f32 %v6536_v12, %v6422_v34  ;;  %v4133_v1 = vmul.f32 %v6544_v10, %v6422_v34  ;;  %v4115_v9 = vmul.f32 %v6552_v60, %v6422_v34  ;;  %v4131_v29 = vmul.f32 %v6560_v44, %v6422_v34  ;;  %v6610_v26 = vld [vmem:[%s6931_s14 + $0x68] sm:$0xff] }
0x1119   :  { %v4207_v58 = vsel %vm253_vm1, %v4129_v20, 0.0  ;;  %v4219_v56 = vsel %vm253_vm1, %v4133_v1, 0.0  ;;  %v4165_v23 = vsel %vm253_vm1, %v4115_v9, 0.0 }
0x111d   :  { %4211 = vadd.xlane.f32.xlu1 %v4210_v38 }
0x111e   :  { %4169 = vadd.xlane.f32.xlu2 %v4168_v3  ;;  %4148 = vadd.xlane.f32.xlu0 %v4147_v45  ;;  %v4213_v3 = vsel %vm253_vm1, %v4131_v29, 0.0 }
0x1125   :  { %4157 = vadd.xlane.f32.xlu1 %v4156_v47 }
0x1126   :  { %4181 = vadd.xlane.f32.xlu2 %v4180_v39  ;;  %4196 = vadd.xlane.f32.xlu0 %v4195_v51 }
0x112d   :  { %4229 = vadd.xlane.f32.xlu1 %v4228_v61  ;;  %v6592_v61 = vld [vmem:[%s6931_s14 + $0xf8] sm:$0xff] }
0x112e   :  { %4202 = vadd.xlane.f32.xlu0 %v4201_v37 }
0x1135   :  { %4175 = vadd.xlane.f32.xlu1 %v4174_v30 }
0x1136   :  { %4154 = vadd.xlane.f32.xlu0 %v4153_v21 }
0x113d   :  { %4142 = vadd.xlane.f32.xlu1 %v4141_v55 }
0x113e   :  { %4349 = vrot.lane.b32.xlu2 %v6422_v34, %s5071_s21  ;;  %4226 = vadd.xlane.f32.xlu0 %v4225_v41 }
0x1145   :  { %4190 = vadd.xlane.f32.xlu1 %v4189_v31 }
0x1146   :  { %4172 = vadd.xlane.f32.xlu0 %v4171_v4 }
0x114d   :  { %4208 = vadd.xlane.f32.xlu1 %v4207_v58 }
0x1155   :  { %4220 = vadd.xlane.f32.xlu1 %v4219_v56 }
0x115d   :  { %4166 = vadd.xlane.f32.xlu1 %v4165_v23 }
0x1165   :  { %v6564_v38 = vpop.permute.xlu1 %4347 }
0x1166   :  { %v4369_v45 = vmul.f32 %v6564_v38, %v6359_v57  ;;  %v4371_v52 = vmul.f32 %v6564_v38, %v6354_v5  ;;  %v4113_v57 = vmul.f32 %v6574_v46, %v6422_v34  ;;  %v4373_v5 = vmul.f32 %v6564_v38, %v6370_v2 }
0x1167   :  { %4214 = vadd.xlane.f32.xlu2 %v4213_v3  ;;  %v4375_v50 = vmul.f32 %v6564_v38, %v6375_v40  ;;  %v4137_v40 = vmul.f32 %v6592_v61, %v6422_v34  ;;  %v4355_v30 = vmul.f32 %v6564_v38, %v6334_v27  ;;  %v4357_v21 = vmul.f32 %v6564_v38, %v6386_v25 }
0x1168   :  { %v4433_v42 = vsel %vm253_vm1, %v4369_v45, 0.0  ;;  %v4439_v47 = vsel %vm253_vm1, %v4371_v52, 0.0  ;;  %v4159_v17 = vsel %vm253_vm1, %v4113_v57, 0.0  ;;  %v4445_v37 = vsel %vm253_vm1, %v4373_v5, 0.0 }
0x1169   :  { %4434 = vadd.xlane.f32.xlu1 %v4433_v42  ;;  %v6578_v39 = vpop.xlane.xlu2 %4145  ;;  %4440 = vadd.xlane.f32.xlu0 %v4439_v47  ;;  %v6580_v51 = vpop.xlane.xlu0 %4139  ;;  %v4451_v11 = vsel %vm253_vm1, %v4375_v50, 0.0  ;;  %v4231_v22 = vsel %vm253_vm1, %v4137_v40, 0.0  ;;  %v4391_v55 = vsel %vm253_vm1, %v4355_v30, 0.0  ;;  %v4397_v41 = vsel %vm253_vm1, %v4357_v21, 0.0 }
0x116a   :  { %v4119_v25 = vmul.f32 %v6610_v26, %v6422_v34  ;;  %v4379_v16 = vmul.f32 %v6564_v38, %v6391_v7  ;;  %v4381_v31 = vmul.f32 %v6564_v38, %v6404_v33  ;;  %v4353_v9 = vmul.f32 %v6564_v38, %v6339_v14 }
0x116b   :  { %v4361_v7 = vmul.f32 %v6564_v38, %v6409_v59  ;;  %v4363_v33 = vmul.f32 %v6564_v38, %v6427_v63  ;;  %v4377_v14 = vmul.f32 %v6564_v38, %v6420_v15  ;;  %v4365_v59 = vmul.f32 %v6564_v38, %v6486_v36 }
0x116c   :  { %v4177_v4 = vsel %vm253_vm1, %v4119_v25, 0.0  ;;  %v4463_v20 = vsel %vm253_vm1, %v4379_v16, 0.0  ;;  %v4469_v58 = vsel %vm253_vm1, %v4381_v31, 0.0  ;;  %v4385_v23 = vsel %vm253_vm1, %v4353_v9, 0.0 }
0x116d   :  { %v4409_v29 = vsel %vm253_vm1, %v4361_v7, 0.0  ;;  %v4415_v3 = vsel %vm253_vm1, %v4363_v33, 0.0  ;;  %v4457_v63 = vsel %vm253_vm1, %v4377_v14, 0.0  ;;  %v6648_v42 = vadd.s32 4294967288, %v7002_v13 }
0x116e   :  { %v4421_v57 = vsel %vm253_vm1, %v4365_v59, 0.0  ;;  %v4271_v15 = vperm.slane %v6578_v39, %v7002_v13 }
0x116f   :  { %4160 = vadd.xlane.f32.xlu2 %v4159_v17  ;;  %v4359_v17 = vmul.f32 %v6564_v38, %v6446_v18 }
0x1171   :  { %4446 = vadd.xlane.f32.xlu1 %v4445_v37  ;;  %v6596_v6 = vpop.xlane.xlu2 %4193  ;;  %4452 = vadd.xlane.f32.xlu0 %v4451_v11  ;;  %v6598_v2 = vpop.xlane.xlu0 %4187  ;;  %v4403_v11 = vsel %vm253_vm1, %v4359_v17, 0.0 }
0x1177   :  { %4232 = vadd.xlane.f32.xlu2 %v4231_v22  ;;  %v4383_v22 = vmul.f32 %v6564_v38, %v6470_v53 }
0x1179   :  { %4392 = vadd.xlane.f32.xlu1 %v4391_v55  ;;  %v6614_v48 = vpop.xlane.xlu2 %4199  ;;  %4398 = vadd.xlane.f32.xlu0 %v4397_v41  ;;  %v6616_v27 = vpop.xlane.xlu0 %4205  ;;  %v4475_v39 = vsel %vm253_vm1, %v4383_v22, 0.0 }
0x117f   :  { %4178 = vadd.xlane.f32.xlu2 %v4177_v4 }
0x1181   :  { %4464 = vadd.xlane.f32.xlu1 %v4463_v20  ;;  %v4152_v1 = vpop.xlane.xlu2 %4151  ;;  %4470 = vadd.xlane.f32.xlu0 %v4469_v58  ;;  %v6627_v56 = vpop.xlane.xlu0 %4217 }
0x1187   :  { %4386 = vadd.xlane.f32.xlu2 %v4385_v23 }
0x1189   :  { %4410 = vadd.xlane.f32.xlu1 %v4409_v29  ;;  %v6638_v45 = vpop.xlane.xlu2 %4223  ;;  %4416 = vadd.xlane.f32.xlu0 %v4415_v3  ;;  %v6640_v52 = vpop.xlane.xlu0 %4163 }
0x118f   :  { %4458 = vadd.xlane.f32.xlu2 %v4457_v63 }
0x1190   :  { %v6650_v47 = vpop.xlane.xlu1 %4211 }
0x1191   :  { %v6653_v5 = vpop.xlane.xlu2 %4169  ;;  %4422 = vadd.xlane.f32.xlu0 %v4421_v57  ;;  %v4149_v50 = vpop.xlane.xlu0 %4148 }
0x1192   :  { %v4272_v36 = vperm.slane %v4149_v50, %v6648_v42 }
0x1194   :  { %v4273_v37 = vsel %vm4269_vm14, %v4272_v36, %v4271_v15 }
0x1197   :  { %4404 = vadd.xlane.f32.xlu2 %v4403_v11 }
0x1198   :  { %v6662_v40 = vpop.xlane.xlu1 %4157 }
0x1199   :  { %v6664_v30 = vpop.xlane.xlu2 %4181  ;;  %v6666_v21 = vpop.xlane.xlu0 %4196 }
0x119a   :  { %v4296_v17 = vperm.slane %v6666_v21, %v6648_v42 }
0x119f   :  { %4476 = vadd.xlane.f32.xlu2 %v4475_v39  ;;  %v4295_v39 = vperm.slane %v6596_v6, %v7002_v13 }
0x11a0   :  { %v6671_v55 = vpop.xlane.xlu1 %4229 }
0x11a1   :  { %v6673_v18 = vpop.permute.xlu2 %4349  ;;  %v4203_v41 = vpop.xlane.xlu0 %4202 }
0x11a2   :  { %v4372_v25 = vmul.f32 %v6673_v18, %v6456_v19  ;;  %v4354_v16 = vmul.f32 %v6673_v18, %v6502_v24  ;;  %v4370_v31 = vmul.f32 %v6673_v18, %v6518_v28  ;;  %v4376_v19 = vmul.f32 %v6673_v18, %v6536_v12 }
0x11a3   :  { %v4378_v24 = vmul.f32 %v6673_v18, %v6560_v44  ;;  %v4274_v28 = vperm.slane %v4152_v1, %v7002_v13  ;;  %v4374_v33 = vmul.f32 %v6673_v18, %v6475_v35  ;;  %v4358_v1 = vmul.f32 %v6673_v18, %v6491_v8 }
0x11a4   :  { %v4442_v4 = vsel %vm253_vm1, %v4372_v25, 0.0  ;;  %v4388_v53 = vsel %vm253_vm1, %v4354_v16, 0.0  ;;  %v4436_v20 = vsel %vm253_vm1, %v4370_v31, 0.0  ;;  %v4454_v29 = vsel %vm253_vm1, %v4376_v19, 0.0 }
0x11a5   :  { %4443 = vadd.xlane.f32.xlu1 %v4442_v4  ;;  %4389 = vadd.xlane.f32.xlu0 %v4388_v53  ;;  %v4460_v3 = vsel %vm253_vm1, %v4378_v24, 0.0  ;;  %v4448_v12 = vsel %vm253_vm1, %v4374_v33, 0.0  ;;  %v4360_v14 = vmul.f32 %v6673_v18, %v6574_v46  ;;  %v4266_v35 = vperm.slane %v6580_v51, %v7002_v13 }
0x11a6   :  { %v4356_v57 = vmul.f32 %v6673_v18, %v6432_v32  ;;  %v4400_v8 = vsel %vm253_vm1, %v4358_v1, 0.0  ;;  %v4299_v32 = vperm.slane %v4203_v41, %v6648_v42  ;;  %v4384_v22 = vmul.f32 %v6673_v18, %v6592_v61 }
0x11a7   :  { %4437 = vadd.xlane.f32.xlu2 %v4436_v20  ;;  %v4406_v46 = vsel %vm253_vm1, %v4360_v14, 0.0  ;;  %v4292_v25 = vperm.slane %v6598_v2, %v7002_v13  ;;  %v4298_v16 = vperm.slane %v6614_v48, %v7002_v13  ;;  %v4283_v31 = vperm.slane %v6653_v5, %v7002_v13 }
0x11a8   :  { %v6684_v58 = vpop.xlane.xlu1 %4175  ;;  %v4394_v36 = vsel %vm253_vm1, %v4356_v57, 0.0  ;;  %v4380_v61 = vmul.f32 %v6673_v18, %v6544_v10  ;;  %v4297_v4 = vsel %vm4269_vm14, %v4296_v17, %v4295_v39  ;;  %v4478_v5 = vsel %vm253_vm1, %v4384_v22, 0.0  ;;  %v4089_v10 = vld [vmem:[%s6931_s14 + $0x78] sm:$0xff] }
0x11a9   :  { %v4155_v9 = vpop.xlane.xlu0 %4154  ;;  %v4300_v6 = vsel %vm4269_vm14, %v4299_v32, %v4298_v16  ;;  %v4301_v33 = vperm.slane %v6616_v27, %v7002_v13  ;;  %v4367_v27 = vmul.f32 %v6564_v38, %v6451_v54  ;;  %v4368_v14 = vmul.f32 %v6673_v18, %v4089_v10 }
0x11aa   :  { %v4275_v7 = vperm.slane %v4155_v9, %v6648_v42  ;;  %v4466_v24 = vsel %vm253_vm1, %v4380_v61, 0.0  ;;  %v4366_v57 = vmul.f32 %v6673_v18, %v6610_v26 }
0x11ac   :  { %v4276_v23 = vsel %vm4269_vm14, %v4275_v7, %v4274_v28  ;;  %v4364_v28 = vmul.f32 %v6673_v18, %v6525_v0  ;;  %v4121_v7 = vmul.f32 %v4089_v10, %v6422_v34  ;;  %v4424_v54 = vsel %vm253_vm1, %v4366_v57, 0.0 }
0x11ad   :  { %4455 = vadd.xlane.f32.xlu1 %v4454_v29  ;;  %4461 = vadd.xlane.f32.xlu0 %v4460_v3  ;;  %v4362_v29 = vmul.f32 %v6673_v18, %v6552_v60  ;;  %v4427_v60 = vsel %vm253_vm1, %v4367_v27, 0.0 }
0x11ae   :  { %v4183_v1 = vsel %vm253_vm1, %v4121_v7, 0.0 }
0x11af   :  { %4449 = vadd.xlane.f32.xlu2 %v4448_v12  ;;  %v4412_v34 = vsel %vm253_vm1, %v4362_v29, 0.0 }
0x11b0   :  { %v4143_v44 = vpop.xlane.xlu1 %4142 }
0x11b1   :  { %v4268_v59 = vperm.slane %v4143_v44, %v6648_v42  ;;  %v6705_v63 = vpop.xlane.xlu0 %4226  ;;  %v4418_v44 = vsel %vm253_vm1, %v4364_v28, 0.0 }
0x11b2   :  { %v4311_v17 = vperm.slane %v6705_v63, %v6648_v42 }
0x11b3   :  { %v4270_v50 = vsel %vm4269_vm14, %v4268_v59, %v4266_v35  ;;  %v4430_v35 = vsel %vm253_vm1, %v4368_v14, 0.0 }
0x11b4   :  { %v4317_v15 = vsel %vm4316_vm3, %v4273_v37, %v4270_v50  ;;  %v4382_v37 = vmul.f32 %v6673_v18, %v6507_v62  ;;  %v4280_v50 = vperm.slane %v6640_v52, %v7002_v13  ;;  %v4307_v52 = vperm.slane %v6627_v56, %v7002_v13 }
0x11b5   :  { %4401 = vadd.xlane.f32.xlu1 %v4400_v8  ;;  %4407 = vadd.xlane.f32.xlu0 %v4406_v46  ;;  %v6714_v51 = vsel %vm4318_vm6, %v4276_v23, %v4317_v15  ;;  %v4310_v18 = vperm.slane %v6638_v45, %v7002_v13  ;;  %v4277_v56 = vperm.slane %v6662_v40, %v7002_v13 }
0x11b6   :  { %v4472_v20 = vsel %vm253_vm1, %v4382_v37, 0.0 }
0x11b7   :  { %4395 = vadd.xlane.f32.xlu2 %v4394_v36  ;;  %v4304_v36 = vperm.slane %v6650_v47, %v7002_v13  ;;  %v4312_v63 = vsel %vm4269_vm14, %v4311_v17, %v4310_v18 }
0x11b8   :  { %v4191_v11 = vpop.xlane.xlu1 %4190 }
0x11b9   :  { %v4293_v21 = vperm.slane %v4191_v11, %v6648_v42  ;;  %v4173_v41 = vpop.xlane.xlu0 %4172 }
0x11ba   :  { %v4284_v62 = vperm.slane %v4173_v41, %v6648_v42 }
0x11bb   :  { %v4294_v2 = vsel %vm4269_vm14, %v4293_v21, %v4292_v25 }
0x11bc   :  { %v4330_v53 = vsel %vm4316_vm3, %v4297_v4, %v4294_v2  ;;  %v6741_v48 = vsel %vm4269_vm14, %v4284_v62, %v4283_v31 }
0x11bd   :  { %4473 = vadd.xlane.f32.xlu1 %v4472_v20  ;;  %4479 = vadd.xlane.f32.xlu0 %v4478_v5  ;;  %v4331_v19 = vsel %vm4318_vm6, %v4300_v6, %v4330_v53  ;;  %v4313_v6 = vperm.slane %v6671_v55, %v7002_v13 }
0x11bf   :  { %4467 = vadd.xlane.f32.xlu2 %v4466_v24 }
0x11c0   :  { %v4209_v9 = vpop.xlane.xlu1 %4208 }
0x11c1   :  { %v4302_v23 = vperm.slane %v4209_v9, %v6648_v42 }
0x11c3   :  { %v4303_v3 = vsel %vm4269_vm14, %v4302_v23, %v4301_v33 }
0x11c4   :  { %v4332_v12 = vsel %vm4320_vm8, %v4303_v3, %v4331_v19 }
0x11c5   :  { %4419 = vadd.xlane.f32.xlu1 %v4418_v44  ;;  %4184 = vadd.xlane.f32.xlu0 %v4183_v1 }
0x11c7   :  { %4413 = vadd.xlane.f32.xlu2 %v4412_v34 }
0x11c8   :  { %v4221_v0 = vpop.xlane.xlu1 %4220 }
0x11c9   :  { %v4308_v38 = vperm.slane %v4221_v0, %v6648_v42 }
0x11cb   :  { %v4309_v11 = vsel %vm4269_vm14, %v4308_v38, %v4307_v52 }
0x11cd   :  { %4428 = vadd.xlane.f32.xlu1 %v4427_v60 }
0x11cf   :  { %4431 = vadd.xlane.f32.xlu2 %v4430_v35 }
0x11d0   :  { %v4167_v59 = vpop.xlane.xlu1 %4166 }
0x11d1   :  { %v4281_v15 = vperm.slane %v4167_v59, %v6648_v42 }
0x11d3   :  { %v4282_v8 = vsel %vm4269_vm14, %v4281_v15, %v4280_v50 }
0x11d5   :  { %4425 = vadd.xlane.f32.xlu1 %v4424_v54 }
0x11da   :  { %v4215_v46 = vpop.xlane.xlu2 %4214 }
0x11db   :  { %v4305_v26 = vperm.slane %v4215_v46, %v6648_v42 }
0x11dc   :  { %v4441_v37 = vpop.xlane.xlu0 %4440  ;;  %v4435_v41 = vpop.xlane.xlu1 %4434 }
0x11dd   :  { %v4306_v32 = vsel %vm4269_vm14, %v4305_v26, %v4304_v36  ;;  %v4537_v14 = vperm.slane %v4435_v41, %v7002_v13  ;;  %v4540_v57 = vperm.slane %v4441_v37, %v7002_v13 }
0x11de   :  { %v4333_v47 = vsel %vm4322_vm10, %v4306_v32, %v4332_v12 }
0x11df   :  { %v4334_v22 = vsel %vm4324_vm13, %v4309_v11, %v4333_v47 }
0x11e0   :  { %v4335_v39 = vsel %vm4326_vm15, %v4312_v63, %v4334_v22 }
0x11e2   :  { %v4161_v25 = vpop.xlane.xlu2 %4160 }
0x11e3   :  { %v4278_v45 = vperm.slane %v4161_v25, %v6648_v42 }
0x11e4   :  { %v4453_v62 = vpop.xlane.xlu0 %4452  ;;  %v4447_v20 = vpop.xlane.xlu1 %4446 }
0x11e5   :  { %v4279_v16 = vsel %vm4269_vm14, %v4278_v45, %v4277_v56  ;;  %v4543_v54 = vperm.slane %v4447_v20, %v7002_v13  ;;  %v4546_v46 = vperm.slane %v4453_v62, %v7002_v13 }
0x11e6   :  { %v4321_v21 = vsel %vm4320_vm8, %v4279_v16, %v6714_v51 }
0x11e7   :  { %v4323_v31 = vsel %vm4322_vm10, %v4282_v8, %v4321_v21 }
0x11e8   :  { %v4325_v61 = vsel %vm4324_vm13, %v6741_v48, %v4323_v31  ;;  %v4286_v48 = vperm.slane %v6684_v58, %v7002_v13 }
0x11ea   :  { %v4233_v4 = vpop.xlane.xlu2 %4232 }
0x11eb   :  { %v4314_v40 = vperm.slane %v4233_v4, %v6648_v42 }
0x11ec   :  { %v4399_v5 = vpop.xlane.xlu0 %4398  ;;  %v4393_v28 = vpop.xlane.xlu1 %4392 }
0x11ed   :  { %v4315_v2 = vsel %vm4269_vm14, %v4314_v40, %v4313_v6  ;;  %v4519_v45 = vperm.slane %v4399_v5, %v7002_v13  ;;  %v5089_v40 = vmov 3  }
0x11ee   :  { %v4336_v53 = vsel %vm4328_vm5, %v4315_v2, %v4335_v39  ;;  %v4516_v39 = vperm.slane %v4393_v28, %v7002_v13  ;;  %4954 = vset.pattern.permute.xlu1 %v5089_v40  ;;  %4955 = vset.pattern.permute.xlu2 %v5089_v40 }
0x11ef   :  { %v4342_v51 = vsel %vm253_vm1, %v4336_v53, 0.0 }
0x11f0   :  { %4343 = vadd.xlane.f32.xlu0 %v4342_v51 }
0x11f2   :  { %v4179_v19 = vpop.xlane.xlu2 %4178 }
0x11f3   :  { %v4287_v10 = vperm.slane %v4179_v19, %v6648_v42 }
0x11f4   :  { %v4471_v7 = vpop.xlane.xlu0 %4470  ;;  %v4465_v23 = vpop.xlane.xlu1 %4464 }
0x11f5   :  { %v4288_v55 = vsel %vm4269_vm14, %v4287_v10, %v4286_v48  ;;  %v4552_v20 = vperm.slane %v4465_v23, %v7002_v13  ;;  %v4555_v48 = vperm.slane %v4471_v7, %v7002_v13 }
0x11f6   :  { %v6811_v24 = vsel %vm4326_vm15, %v4288_v55, %v4325_v61 }
0x11fa   :  { %v4387_v9 = vpop.xlane.xlu2 %4386 }
0x11fb   :  { %v4513_v25 = vperm.slane %v4387_v9, %v7002_v13 }
0x11fc   :  { %v6813_v29 = vpop.xlane.xlu0 %4416  ;;  %v6817_v12 = vpop.xlane.xlu1 %4410 }
0x1202   :  { %v4459_v33 = vpop.xlane.xlu2 %4458 }
0x1203   :  { %v4549_v2 = vperm.slane %v4459_v33, %v7002_v13 }
0x1204   :  { %v6819_v44 = vpop.xlane.xlu0 %4422 }
0x120a   :  { %v6815_v3 = vpop.xlane.xlu2 %4404 }
0x1212   :  { %v4477_v58 = vpop.xlane.xlu2 %4476 }
0x1213   :  { %v4558_v55 = vperm.slane %v4477_v58, %v7002_v13 }
0x1218   :  { %v4444_v1 = vpop.xlane.xlu1 %4443  ;;  %v4390_v34 = vpop.xlane.xlu0 %4389 }
0x1219   :  { %v4541_v60 = vperm.slane %v4444_v1, %v6648_v42  ;;  %v4514_v37 = vperm.slane %v4390_v34, %v6648_v42 }
0x121a   :  { %v4438_v0 = vpop.xlane.xlu2 %4437 }
0x121b   :  { %v4538_v27 = vperm.slane %v4438_v0, %v6648_v42  ;;  %v4542_v36 = vsel %vm4269_vm14, %v4541_v60, %v4540_v57  ;;  %v4515_v16 = vsel %vm4269_vm14, %v4514_v37, %v4513_v25 }
0x121d   :  { %v4539_v50 = vsel %vm4269_vm14, %v4538_v27, %v4537_v14  ;;  %v4289_v14 = vperm.slane %v6664_v30, %v7002_v13  ;;  %v4525_v30 = vperm.slane %v6817_v12, %v7002_v13 }
0x121e   :  { %v4568_v17 = vsel %vm4316_vm3, %v4542_v36, %v4539_v50 }
0x1220   :  { %v4456_v35 = vpop.xlane.xlu1 %4455  ;;  %v4462_v59 = vpop.xlane.xlu0 %4461 }
0x1221   :  { %v4547_v15 = vperm.slane %v4456_v35, %v6648_v42  ;;  %v4550_v61 = vperm.slane %v4462_v59, %v6648_v42 }
0x1222   :  { %v4450_v8 = vpop.xlane.xlu2 %4449 }
0x1223   :  { %v4544_v38 = vperm.slane %v4450_v8, %v6648_v42  ;;  %v4548_v52 = vsel %vm4269_vm14, %v4547_v15, %v4546_v46  ;;  %v4551_v10 = vsel %vm4269_vm14, %v4550_v61, %v4549_v2 }
0x1225   :  { %v4545_v26 = vsel %vm4269_vm14, %v4544_v38, %v4543_v54  ;;  %v4522_v38 = vperm.slane %v6815_v3, %v7002_v13  ;;  %v4531_v3 = vperm.slane %v6819_v44, %v7002_v13  ;;  %v4597_v44 = vld [vmem:[%s6933_s16] sm:$0x7] }
0x1226   :  { %v4569_v18 = vsel %vm4318_vm6, %v4545_v26, %v4568_v17 }
0x1227   :  { %v4570_v32 = vsel %vm4320_vm8, %v4548_v52, %v4569_v18  ;;  %v4528_v52 = vperm.slane %v6813_v29, %v7002_v13 }
0x1228   :  { %v4402_v11 = vpop.xlane.xlu1 %4401  ;;  %v4408_v47 = vpop.xlane.xlu0 %4407  ;;  %v4571_v28 = vsel %vm4322_vm10, %v4551_v10, %v4570_v32 }
0x1229   :  { %v4520_v63 = vperm.slane %v4402_v11, %v6648_v42  ;;  %v4523_v54 = vperm.slane %v4408_v47, %v6648_v42 }
0x122a   :  { %v4396_v22 = vpop.xlane.xlu2 %4395 }
0x122b   :  { %v4517_v56 = vperm.slane %v4396_v22, %v6648_v42  ;;  %v4521_v41 = vsel %vm4269_vm14, %v4520_v63, %v4519_v45  ;;  %v4524_v17 = vsel %vm4269_vm14, %v4523_v54, %v4522_v38 }
0x122d   :  { %v4518_v21 = vsel %vm4269_vm14, %v4517_v56, %v4516_v39 }
0x122e   :  { %v4561_v31 = vsel %vm4316_vm3, %v4518_v21, %v4515_v16 }
0x122f   :  { %v4562_v62 = vsel %vm4318_vm6, %v4521_v41, %v4561_v31 }
0x1230   :  { %v4474_v4 = vpop.xlane.xlu1 %4473  ;;  %v4480_v6 = vpop.xlane.xlu0 %4479  ;;  %v4563_v26 = vsel %vm4320_vm8, %v4524_v17, %v4562_v62 }
0x1231   :  { %v4556_v53 = vperm.slane %v4474_v4, %v6648_v42  ;;  %v4559_v5 = vperm.slane %v4480_v6, %v6648_v42 }
0x1232   :  { %v4468_v51 = vpop.xlane.xlu2 %4467 }
0x1233   :  { %v4553_v19 = vperm.slane %v4468_v51, %v6648_v42  ;;  %v4557_v33 = vsel %vm4269_vm14, %v4556_v53, %v4555_v48  ;;  %v4560_v23 = vsel %vm4269_vm14, %v4559_v5, %v4558_v55  ;;  %v4598_v53 = vld [vmem:[%s6932_s15] sm:$0x7] }
0x1235   :  { %v4554_v9 = vsel %vm4269_vm14, %v4553_v19, %v4552_v20 }
0x1236   :  { %v4572_v1 = vsel %vm4324_vm13, %v4554_v9, %v4571_v28 }
0x1237   :  { %v4573_v34 = vsel %vm4326_vm15, %v4557_v33, %v4572_v1 }
0x1238   :  { %v4420_v0 = vpop.xlane.xlu1 %4419  ;;  %v4185_v27 = vpop.xlane.xlu0 %4184  ;;  %v4574_v7 = vsel %vm4328_vm5, %v4560_v23, %v4573_v34 }
0x1239   :  { %v4290_v58 = vperm.slane %v4185_v27, %v6648_v42  ;;  %v4580_v60 = vsel %vm253_vm1, %v4574_v7, 0.0 }
0x123a   :  { %4581 = vadd.xlane.f32.xlu1 %v4580_v60  ;;  %v4414_v35 = vpop.xlane.xlu2 %4413 }
0x123b   :  { %v4291_v59 = vsel %vm4269_vm14, %v4290_v58, %v4289_v14  ;;  %v4526_v8 = vperm.slane %v4414_v35, %v6648_v42 }
0x123c   :  { %v4329_v57 = vsel %vm4328_vm5, %v4291_v59, %v6811_v24  ;;  %v4529_v24 = vperm.slane %v4420_v0, %v6648_v42 }
0x123d   :  { %v4339_v50 = vsel %vm253_vm1, %v4329_v57, 0.0  ;;  %v4527_v46 = vsel %vm4269_vm14, %v4526_v8, %v4525_v30 }
0x123e   :  { %4340 = vadd.xlane.f32.xlu2 %v4339_v50  ;;  %v4564_v18 = vsel %vm4322_vm10, %v4527_v46, %v4563_v26  ;;  %v4530_v47 = vsel %vm4269_vm14, %v4529_v24, %v4528_v52 }
0x123f   :  { %v4565_v22 = vsel %vm4324_vm13, %v4530_v47, %v4564_v18 }
0x1240   :  { %v4429_v15 = vpop.xlane.xlu1 %4428 }
0x1241   :  { %v4534_v37 = vperm.slane %v4429_v15, %v7002_v13  ;;  %v4981_v13 = vld [vmem:[%s6930_s13] sm:$0xff] }
0x1242   :  { %v4432_v36 = vpop.xlane.xlu2 %4431 }
0x1243   :  { %v4535_v32 = vperm.slane %v4432_v36, %v6648_v42 }
0x1245   :  { %v4536_v29 = vsel %vm4269_vm14, %v4535_v32, %v4534_v37 }
0x1248   :  { %v4426_v12 = vpop.xlane.xlu1 %4425 }
0x1249   :  { %v4532_v11 = vperm.slane %v4426_v12, %v6648_v42  ;;  %v4980_v42 = vld [vmem:[%s6930_s13 + $0x8] sm:$0xff] }
0x124b   :  { %v4533_v63 = vsel %vm4269_vm14, %v4532_v11, %v4531_v3 }
0x124c   :  { %v4566_v39 = vsel %vm4326_vm15, %v4533_v63, %v4565_v22 }
0x124d   :  { %v4567_v25 = vsel %vm4328_vm5, %v4536_v29, %v4566_v39 }
0x124e   :  { %v4577_v56 = vsel %vm253_vm1, %v4567_v25, 0.0 }
0x124f   :  { %4578 = vadd.xlane.f32.xlu0 %v4577_v56 }
0x1253   :  { %4590 = vperm.xlu1 %4954, %v4980_v42  }
0x1256   :  { %4586 = vperm.xlu2 %4955, %v4981_v13  }
0x125b   :  { %4957 = vset.pattern.permute.xlu1 %v6983_v43 }
0x125c   :  { %4628 = vperm.xlu1 %4957, %v4597_v44  }
0x125e   :  { %4958 = vset.pattern.permute.xlu2 %v5075_v49 }
0x125f   :  { %4633 = vperm.xlu2 %4958, %v4597_v44  }
0x1263   :  { %4601 = vperm.xlu0 %4956, %v4597_v44   ;;  %v4344_v45 = vpop.xlane.xlu0 %4343 }
0x126b   :  { %4959 = vset.pattern.permute.xlu0 %v5075_v49 }
0x12ad   :  { %v4582_v21 = vpop.xlane.xlu1 %4581 }
0x12ae   :  { %v4584_v43 = vsel %vm590_vm0, %v4344_v45, %v4582_v21 }
0x12b1   :  { %v4341_v16 = vpop.xlane.xlu2 %4340 }
0x12b9   :  { %v4587_v31 = vpop.permute.xlu2 %4586 }
0x12c1   :  { %v4634_v19 = vpop.permute.xlu2 %4633 }
0x12c2   :  { %v4579_v41 = vpop.xlane.xlu0 %4578 }
0x12c3   :  { %v4583_v62 = vsel %vm590_vm0, %v4341_v16, %v4579_v41 }
0x12c4   :  { %v4593_v4 = vadd.f32 %v4587_v31, %v4583_v62 }
0x12c5   :  { %v4591_v61 = vpop.permute.xlu1 %4590 }
0x12c6   :  { %v4594_v6 = vadd.f32 %v4591_v61, %v4584_v43  ;;  %v4595_v2 = vmax.f32 %v4593_v4, 0.0 }
0x12c8   :  { %v4596_v40 = vmax.f32 %v4594_v6, 0.0 }
0x12ca   :  { %4621 = vmatpush.msra.mxu1 %v4596_v40 }
0x12cc   :  { %4622 = vmatpush.msra.mxu1 %v4595_v2 }
0x12cd   :  { %4899 = vmatmul.msk.f32.vlgmr.msra.gmra.mxu1 %vm253_vm1, %v4598_v53 }
0x12ce   :  { %v4629_v20 = vpop.permute.xlu1 %4628 }
0x12d5   :  { %v4602_v49 = vpop.permute.xlu0 %4601 }
0x134a   :  { %v4624_v51 = vpop.f32.mrf.mxu1 }
0x134b   :  { %v4625_v5 = vadd.f32 %v4624_v51, %v4602_v49 }
0x134d   :  { %v4631_v48 = vmul.f32 %v4629_v20, %v4625_v5 }
0x134f   :  { %v4636_v10 = vadd.f32 %v4634_v19, %v4631_v48 }
0x1351   :  { %4638 = vst.msk [vmem:[%s6934_s17] sm:$0x7] %vm4637_vm4, %v4636_v10 }
0x1352   :  { %4643 = vsyncpa [#allocation3], 1 }
0x1353   :  { %4644 = vsyncpa [#allocation5], 1 }

</bundles_post_ra>
